<compile_context>
chip_gen: v7x
topology: tpu7x:2x2x1
jax: 0.10.0
libtpu: 0.0.40
codegen_flags: <defaults>
</compile_context>

<pallas_src>
import functools
import math

import jax
import jax.numpy as jnp
from jax.experimental import pallas as pl
from jax.experimental.pallas import tpu as pltpu

_LN_EPS = 1e-5
_NEG_INF = -1e30

_SEQ = pltpu.CompilerParams(dimension_semantics=("arbitrary",))


# ----------------------------------------------------------------------------
# In-kernel building blocks (values, not refs)
# ----------------------------------------------------------------------------
def _layernorm_rows(y, ln, eps=_LN_EPS):
    """Row-wise LayerNorm over the last axis; ln = (2, D) holding [gamma; beta]."""
    mu = jnp.mean(y, axis=-1, keepdims=True)
    yc = y - mu
    var = jnp.mean(yc * yc, axis=-1, keepdims=True)
    return (yc * jax.lax.rsqrt(var + eps)) * ln[0:1] + ln[1:2]


def _gau_attend(q, k, v, causal):
    """softmax(q k^T) v (scale already folded into q); q,k,v are (B, L, *)."""
    s = jnp.einsum("bqd,bkd->bqk", q, k, preferred_element_type=jnp.float32)
    if causal:
        row = jax.lax.broadcasted_iota(jnp.int32, s.shape, 1)
        col = jax.lax.broadcasted_iota(jnp.int32, s.shape, 2)
        s = jnp.where(col <= row, s, _NEG_INF)
    m = jnp.max(s, axis=-1, keepdims=True)
    p = jnp.exp(s - m)
    inv = pl.reciprocal(jnp.sum(p, axis=-1, keepdims=True), approx=True)
    return jnp.einsum("bqk,bkd->bqd", p, v, preferred_element_type=jnp.float32) * inv


def _gau_self_block(x2, B, L, w_in, b_in, aff, wo, bo, ln, *, causal):
    """norm(x + GAU(x, x)) on a flattened (B*L, D) residual stream."""
    P = wo.shape[0]        # padded uv width (lane-aligned)
    Sp = aff.shape[-1]     # padded qk width (lane-aligned)
    h = jax.nn.gelu(jnp.dot(x2, w_in, preferred_element_type=jnp.float32) + b_in)
    u = h[:, :P]
    v = h[:, P:2 * P].reshape(B, L, P)
    z = h[:, 2 * P:2 * P + Sp]
    q = (z * aff[0:1] + aff[1:2]).reshape(B, L, Sp)   # softmax scale folded into aff[0:2]
    k = (z * aff[2:3] + aff[3:4]).reshape(B, L, Sp)
    ctx = _gau_attend(q, k, v, causal).reshape(B * L, P)
    y = x2 + jnp.dot(u * ctx, wo, preferred_element_type=jnp.float32) + bo
    return _layernorm_rows(y, ln)


def _gau_cross_block(xq2, B, Lq, ekv2, Lk, w_q, b_q, w_kv, b_kv, aff, wo, bo, ln):
    """norm(xq + GAU(xq, xkv)) on flattened streams."""
    P = wo.shape[0]
    Sp = aff.shape[-1]
    hq = jax.nn.gelu(jnp.dot(xq2, w_q, preferred_element_type=jnp.float32) + b_q)
    hk = jax.nn.gelu(jnp.dot(ekv2, w_kv, preferred_element_type=jnp.float32) + b_kv)
    u = hq[:, :P]
    zq = hq[:, P:P + Sp]
    v = hk[:, :P].reshape(B, Lk, P)
    zk = hk[:, P:P + Sp]
    q = (zq * aff[0:1] + aff[1:2]).reshape(B, Lq, Sp)
    k = (zk * aff[2:3] + aff[3:4]).reshape(B, Lk, Sp)
    ctx = _gau_attend(q, k, v, causal=False).reshape(B * Lq, P)
    y = xq2 + jnp.dot(u * ctx, wo, preferred_element_type=jnp.float32) + bo
    return _layernorm_rows(y, ln)


def _embed(feats_ref, w_emb_ref, pos_ref, B, L, D):
    K = feats_ref.shape[-1]
    emb = jnp.dot(feats_ref[...].reshape(B * L, K), w_emb_ref[...],
                  preferred_element_type=jnp.float32).reshape(B, L, D)
    return emb + pos_ref[...]


# ----------------------------------------------------------------------------
# Pallas kernels (one per stack; grid axis = layer, residual stream in VMEM scratch)
# ----------------------------------------------------------------------------
def _encoder_stack_kernel(feats_ref, pos_ref, w_emb_ref,
                          w_in_ref, b_in_ref, aff_ref, wo_ref, bo_ref, ln_ref,
                          enc_norm_ref, o_ref, x_scr):
    l = pl.program_id(0)
    B, L, D = x_scr.shape

    @pl.when(l == 0)
    def _():
        x_scr[...] = _embed(feats_ref, w_emb_ref, pos_ref, B, L, D)

    x2 = x_scr[...].reshape(B * L, D)
    y2 = _gau_self_block(x2, B, L, w_in_ref[0], b_in_ref[0], aff_ref[0],
                         wo_ref[0], bo_ref[0], ln_ref[0], causal=False)
    x_scr[...] = y2.reshape(B, L, D)

    @pl.when(l == pl.num_programs(0) - 1)
    def _():
        out = _layernorm_rows(y2, enc_norm_ref[...])
        o_ref[...] = out.reshape(B, L, D).astype(o_ref.dtype)


def _decoder_stack_kernel(feats_ref, pos_ref, w_emb_ref, enc_ref,
                          sw_in_ref, sb_in_ref, saff_ref, swo_ref, sbo_ref, sln_ref,
                          cw_q_ref, cb_q_ref, cw_kv_ref, cb_kv_ref, caff_ref,
                          cwo_ref, cbo_ref, cln_ref,
                          dec_norm_ref, proj_w_ref, proj_b_ref,
                          o_ref, x_scr):
    l = pl.program_id(0)
    B, Lq, D = x_scr.shape
    Lk = enc_ref.shape[1]
    N = o_ref.shape[-1]

    @pl.when(l == 0)
    def _():
        x_scr[...] = _embed(feats_ref, w_emb_ref, pos_ref, B, Lq, D)

    x2 = x_scr[...].reshape(B * Lq, D)
    # Causal GAU self-attention + residual + norm1
    y2 = _gau_self_block(x2, B, Lq, sw_in_ref[0], sb_in_ref[0], saff_ref[0],
                         swo_ref[0], sbo_ref[0], sln_ref[0], causal=True)
    # GAU cross-attention (queries from decoder, keys/values from encoder) + norm2
    e2 = enc_ref[...].reshape(B * Lk, D)
    y2 = _gau_cross_block(y2, B, Lq, e2, Lk,
                          cw_q_ref[0], cb_q_ref[0], cw_kv_ref[0], cb_kv_ref[0],
                          caff_ref[0], cwo_ref[0], cbo_ref[0], cln_ref[0])
    x_scr[...] = y2.reshape(B, Lq, D)

    @pl.when(l == pl.num_programs(0) - 1)
    def _():
        yn = _layernorm_rows(y2, dec_norm_ref[...])
        out = jnp.dot(yn, proj_w_ref[...], preferred_element_type=jnp.float32) + proj_b_ref[...]
        o_ref[...] = out.reshape(B, Lq, N).astype(o_ref.dtype)


# ----------------------------------------------------------------------------
# pallas_call wrappers
# ----------------------------------------------------------------------------
def _const_spec(shape):
    nd = len(shape)
    return pl.BlockSpec(shape, lambda l, _nd=nd: (0,) * _nd)


def _layer_spec(shape):
    nd = len(shape)
    return pl.BlockSpec((1,) + tuple(shape[1:]),
                        lambda l, _nd=nd: (l,) + (0,) * (_nd - 1))


def encoder_forward(feats, pos, emb_w, enc_stack, enc_norm):
    B, L, _ = feats.shape
    D = emb_w.shape[1]
    n_layers = enc_stack["w_in"].shape[0]
    return pl.pallas_call(
        _encoder_stack_kernel,
        out_shape=jax.ShapeDtypeStruct((B, L, D), jnp.float32),
        grid=(n_layers,),
        in_specs=[
            _const_spec(feats.shape), _const_spec(pos.shape), _const_spec(emb_w.shape),
            _layer_spec(enc_stack["w_in"].shape), _layer_spec(enc_stack["b_in"].shape),
            _layer_spec(enc_stack["aff"].shape), _layer_spec(enc_stack["wo"].shape),
            _layer_spec(enc_stack["bo"].shape), _layer_spec(enc_stack["ln"].shape),
            _const_spec(enc_norm.shape),
        ],
        out_specs=pl.BlockSpec((B, L, D), lambda l: (0, 0, 0)),
        scratch_shapes=[pltpu.VMEM((B, L, D), jnp.float32)],
        compiler_params=_SEQ,
    )(feats, pos, emb_w,
      enc_stack["w_in"], enc_stack["b_in"], enc_stack["aff"],
      enc_stack["wo"], enc_stack["bo"], enc_stack["ln"], enc_norm)


def decoder_forward(feats, pos, emb_w, enc, self_stack, cross_stack,
                    dec_norm, proj_w, proj_b):
    B, Lq, _ = feats.shape
    D = emb_w.shape[1]
    N = proj_w.shape[1]
    n_layers = self_stack["w_in"].shape[0]
    in_specs = [
        _const_spec(feats.shape), _const_spec(pos.shape), _const_spec(emb_w.shape),
        _const_spec(enc.shape),
        _layer_spec(self_stack["w_in"].shape), _layer_spec(self_stack["b_in"].shape),
        _layer_spec(self_stack["aff"].shape), _layer_spec(self_stack["wo"].shape),
        _layer_spec(self_stack["bo"].shape), _layer_spec(self_stack["ln"].shape),
        _layer_spec(cross_stack["w_q"].shape), _layer_spec(cross_stack["b_q"].shape),
        _layer_spec(cross_stack["w_kv"].shape), _layer_spec(cross_stack["b_kv"].shape),
        _layer_spec(cross_stack["aff"].shape), _layer_spec(cross_stack["wo"].shape),
        _layer_spec(cross_stack["bo"].shape), _layer_spec(cross_stack["ln"].shape),
        _const_spec(dec_norm.shape), _const_spec(proj_w.shape), _const_spec(proj_b.shape),
    ]
    return pl.pallas_call(
        _decoder_stack_kernel,
        out_shape=jax.ShapeDtypeStruct((B, Lq, N), jnp.float32),
        grid=(n_layers,),
        in_specs=in_specs,
        out_specs=pl.BlockSpec((B, Lq, N), lambda l: (0, 0, 0)),
        scratch_shapes=[pltpu.VMEM((B, Lq, D), jnp.float32)],
        compiler_params=_SEQ,
    )(feats, pos, emb_w, enc,
      self_stack["w_in"], self_stack["b_in"], self_stack["aff"],
      self_stack["wo"], self_stack["bo"], self_stack["ln"],
      cross_stack["w_q"], cross_stack["b_q"], cross_stack["w_kv"],
      cross_stack["b_kv"], cross_stack["aff"], cross_stack["wo"],
      cross_stack["bo"], cross_stack["ln"],
      dec_norm, proj_w, proj_b)


# ----------------------------------------------------------------------------
# Embedding helpers (tiny wrapper-side XLA ops) and forward pass
# ----------------------------------------------------------------------------
def positional_embedding(L, d_model):
    pos = jnp.arange(L, dtype=jnp.float32)[:, None]
    i = jnp.arange(0, d_model, 2, dtype=jnp.float32)[None, :]
    div = jnp.exp(-i * (math.log(10000.0) / d_model))
    pe = jnp.zeros((L, d_model), jnp.float32)
    pe = pe.at[:, 0::2].set(jnp.sin(pos * div))
    pe = pe.at[:, 1::2].set(jnp.cos(pos * div))
    return pe


def _embed_features(x, x_mark):
    """Circular Conv1d(k=3) im2col taps [x[t-1] | x[t] | x[t+1]] + time features."""
    xm1 = jnp.roll(x, 1, axis=1)
    xp1 = jnp.roll(x, -1, axis=1)
    return jnp.concatenate([xm1, x, xp1, x_mark], axis=-1)


def gaformer_forward(fp, x_enc, x_mark_enc, x_dec, x_mark_dec, *, pred_len):
    enc_feats = _embed_features(x_enc, x_mark_enc)
    enc = encoder_forward(enc_feats, fp["enc_pos"], fp["enc_emb_w"],
                          fp["enc_layers"], fp["enc_norm"])
    dec_feats = _embed_features(x_dec, x_mark_dec)
    dec = decoder_forward(dec_feats, fp["dec_pos"], fp["dec_emb_w"], enc,
                          fp["dec_self"], fp["dec_cross"],
                          fp["dec_norm"], fp["proj_w"], fp["proj_b"])
    return dec[:, -pred_len:, :]


# ----------------------------------------------------------------------------
# Parameters: torch-layout init + one-time fusion into lane-aligned, layer-stacked slabs
# ----------------------------------------------------------------------------
def init_params(key, *, enc_in, dec_in, out_size, d_model, uv_size, qk_size,
                e_layers, d_layers, time_feat):
    keys = iter(jax.random.split(key, 512))

    def nrm(shape, scale=0.02):
        return jax.random.normal(next(keys), shape, jnp.float32) * scale

    def gau_p():
        return dict(
            wu=nrm((d_model, uv_size)), bu=jnp.zeros((uv_size,), jnp.float32),
            wv=nrm((d_model, uv_size)), bv=jnp.zeros((uv_size,), jnp.float32),
            wqk=nrm((d_model, qk_size)), bqk=jnp.zeros((qk_size,), jnp.float32),
            gq=1.0 + nrm((qk_size,)), bq=nrm((qk_size,)),
            gk=1.0 + nrm((qk_size,)), bk=nrm((qk_size,)),
            wo=nrm((uv_size, d_model)), bo=jnp.zeros((d_model,), jnp.float32),
        )

    def emb_p(c_in):
        return dict(
            conv_w=nrm((d_model, c_in, 3)),          # torch Conv1d weight (O, C, K)
            time_w=nrm((time_feat, d_model)),        # TimeFeatureEmbedding (no bias)
        )

    enc_layers = [dict(attn=gau_p(),
                       norm_g=jnp.ones((d_model,), jnp.float32),
                       norm_b=jnp.zeros((d_model,), jnp.float32))
                  for _ in range(e_layers)]
    dec_layers = [dict(self=gau_p(), cross=gau_p(),
                       n1_g=jnp.ones((d_model,), jnp.float32),
                       n1_b=jnp.zeros((d_model,), jnp.float32),
                       n2_g=jnp.ones((d_model,), jnp.float32),
                       n2_b=jnp.zeros((d_model,), jnp.float32))
                  for _ in range(d_layers)]

    return dict(
        enc_emb=emb_p(enc_in),
        dec_emb=emb_p(dec_in),
        encoder=dict(layers=enc_layers,
                     norm_g=jnp.ones((d_model,), jnp.float32),
                     norm_b=jnp.zeros((d_model,), jnp.float32)),
        decoder=dict(layers=dec_layers,
                     norm_g=jnp.ones((d_model,), jnp.float32),
                     norm_b=jnp.zeros((d_model,), jnp.float32),
                     proj_w=nrm((d_model, out_size)),
                     proj_b=jnp.zeros((out_size,), jnp.float32)),
    )


def _round_up(n, m=128):
    return ((n + m - 1) // m) * m


def _pad_last(a, target):
    pad = target - a.shape[-1]
    if pad == 0:
        return a
    cfg = [(0, 0)] * (a.ndim - 1) + [(0, pad)]
    return jnp.pad(a, cfg)


def _fuse_gau_self(p, ln_g, ln_b):
    E, S = p["wo"].shape[0], p["wqk"].shape[1]
    Ep, Sp = _round_up(E), _round_up(S)
    scale = 1.0 / math.sqrt(S)
    w_in = jnp.concatenate([_pad_last(p["wu"], Ep), _pad_last(p["wv"], Ep),
                            _pad_last(p["wqk"], Sp)], axis=1)            # (D, 2Ep+Sp)
    b_in = jnp.concatenate([_pad_last(p["bu"], Ep), _pad_last(p["bv"], Ep),
                            _pad_last(p["bqk"], Sp)]).reshape(1, -1)
    aff = jnp.stack([_pad_last(p["gq"] * scale, Sp), _pad_last(p["bq"] * scale, Sp),
                     _pad_last(p["gk"], Sp), _pad_last(p["bk"], Sp)], axis=0)  # (4, Sp)
    wo = jnp.pad(p["wo"], ((0, Ep - E), (0, 0)))                          # (Ep, D)
    return dict(w_in=w_in, b_in=b_in, aff=aff, wo=wo,
                bo=p["bo"].reshape(1, -1), ln=jnp.stack([ln_g, ln_b], axis=0))


def _fuse_gau_cross(p, ln_g, ln_b):
    E, S = p["wo"].shape[0], p["wqk"].shape[1]
    Ep, Sp = _round_up(E), _round_up(S)
    scale = 1.0 / math.sqrt(S)
    w_q = jnp.concatenate([_pad_last(p["wu"], Ep), _pad_last(p["wqk"], Sp)], axis=1)
    b_q = jnp.concatenate([_pad_last(p["bu"], Ep), _pad_last(p["bqk"], Sp)]).reshape(1, -1)
    w_kv = jnp.concatenate([_pad_last(p["wv"], Ep), _pad_last(p["wqk"], Sp)], axis=1)
    b_kv = jnp.concatenate([_pad_last(p["bv"], Ep), _pad_last(p["bqk"], Sp)]).reshape(1, -1)
    aff = jnp.stack([_pad_last(p["gq"] * scale, Sp), _pad_last(p["bq"] * scale, Sp),
                     _pad_last(p["gk"], Sp), _pad_last(p["bk"], Sp)], axis=0)
    wo = jnp.pad(p["wo"], ((0, Ep - E), (0, 0)))
    return dict(w_q=w_q, b_q=b_q, w_kv=w_kv, b_kv=b_kv, aff=aff, wo=wo,
                bo=p["bo"].reshape(1, -1), ln=jnp.stack([ln_g, ln_b], axis=0))


def _fuse_emb(p):
    # feature order matches [x[t-1] | x[t] | x[t+1] | mark]
    w_conv = jnp.concatenate([p["conv_w"][:, :, k].T for k in range(3)], axis=0)  # (3C, D)
    return jnp.concatenate([w_conv, p["time_w"]], axis=0)                         # (3C+F, D)


def _stack_layers(dicts):
    return {k: jnp.stack([d[k] for d in dicts], axis=0) for k in dicts[0]}


def fuse_params(params, *, seq_len, dec_len, d_model):
    enc_layers = [_fuse_gau_self(lp["attn"], lp["norm_g"], lp["norm_b"])
                  for lp in params["encoder"]["layers"]]
    dec_self = [_fuse_gau_self(lp["self"], lp["n1_g"], lp["n1_b"])
                for lp in params["decoder"]["layers"]]
    dec_cross = [_fuse_gau_cross(lp["cross"], lp["n2_g"], lp["n2_b"])
                 for lp in params["decoder"]["layers"]]
    return dict(
        enc_emb_w=_fuse_emb(params["enc_emb"]),
        dec_emb_w=_fuse_emb(params["dec_emb"]),
        enc_pos=positional_embedding(seq_len, d_model),
        dec_pos=positional_embedding(dec_len, d_model),
        enc_layers=_stack_layers(enc_layers),
        enc_norm=jnp.stack([params["encoder"]["norm_g"], params["encoder"]["norm_b"]], 0),
        dec_self=_stack_layers(dec_self),
        dec_cross=_stack_layers(dec_cross),
        dec_norm=jnp.stack([params["decoder"]["norm_g"], params["decoder"]["norm_b"]], 0),
        proj_w=params["decoder"]["proj_w"],
        proj_b=params["decoder"]["proj_b"].reshape(1, -1),
    )


# ----------------------------------------------------------------------------
# Main
# ----------------------------------------------------------------------------
if __name__ == "__main__":
    # Small config consistent with the module's __init__:
    B = 2
    seq_len, label_len, pred_len = 16, 8, 8
    enc_in = dec_in = out_size = 4
    d_model, uv_size, qk_size = 32, 64, 32
    e_layers, d_layers = 2, 1
    time_feat = 4                      # freq='h' time-feature embedding width
    # distil=False, use_conv=False, dropout=0.0 (eval), output_attention=False.
    # TODO(synk): ConvLayer distillation path and Prob/Full-attention decoder branches are
    #             not exercised (config picks distil=False, dec_selfattn=dec_crossattn='gate').

    key = jax.random.PRNGKey(0)
    k_p, k1, k2, k3, k4 = jax.random.split(key, 5)

    params = init_params(k_p, enc_in=enc_in, dec_in=dec_in, out_size=out_size,
                         d_model=d_model, uv_size=uv_size, qk_size=qk_size,
                         e_layers=e_layers, d_layers=d_layers, time_feat=time_feat)
    dec_len = label_len + pred_len
    fused = fuse_params(params, seq_len=seq_len, dec_len=dec_len, d_model=d_model)

    x_enc = jax.random.normal(k1, (B, seq_len, enc_in), jnp.float32)
    x_mark_enc = jax.random.normal(k2, (B, seq_len, time_feat), jnp.float32)
    x_dec = jax.random.normal(k3, (B, dec_len, dec_in), jnp.float32)
    x_mark_dec = jax.random.normal(k4, (B, dec_len, time_feat), jnp.float32)

    fwd = jax.jit(functools.partial(gaformer_forward, pred_len=pred_len))
    out = fwd(fused, x_enc, x_mark_enc, x_dec, x_mark_dec)
    out = jax.block_until_ready(out)

    assert out.shape == (B, pred_len, out_size), out.shape
    assert bool(jnp.all(jnp.isfinite(out)))
    print("KERNEL_OK")
</pallas_src>

<mosaic_0001>
module attributes {stable_mosaic.version = 11 : i64} {
  func.func @_encoder_stack_kernel(%arg0: i32, %arg1: memref<2x16x16xf32, #tpu.memory_space<vmem>>, %arg2: memref<16x32xf32, #tpu.memory_space<vmem>>, %arg3: memref<16x32xf32, #tpu.memory_space<vmem>>, %arg4: memref<1x32x384xf32, #tpu.memory_space<vmem>>, %arg5: memref<1x1x384xf32, #tpu.memory_space<vmem>>, %arg6: memref<1x4x128xf32, #tpu.memory_space<vmem>>, %arg7: memref<1x128x32xf32, #tpu.memory_space<vmem>>, %arg8: memref<1x1x32xf32, #tpu.memory_space<vmem>>, %arg9: memref<1x2x32xf32, #tpu.memory_space<vmem>>, %arg10: memref<2x32xf32, #tpu.memory_space<vmem>>, %arg11: memref<2x16x32xf32, #tpu.memory_space<vmem>>, %arg12: memref<2x16x32xf32, #tpu.memory_space<vmem>>) attributes {dimension_semantics = [#tpu.dimension_semantics<arbitrary>], iteration_bounds = array<i64: 2>, scalar_prefetch = 0 : i64, scratch_operands = 1 : i64, tpu.core_type = #tpu.core_type<tc>, window_params = [{pipeline_mode = #tpu.pipeline_mode<synchronous>, transform_indices = @transform_0, window_bounds = array<i64: 2, 16, 16>}, {pipeline_mode = #tpu.pipeline_mode<synchronous>, transform_indices = @transform_1, window_bounds = array<i64: 16, 32>}, {pipeline_mode = #tpu.pipeline_mode<synchronous>, transform_indices = @transform_2, window_bounds = array<i64: 16, 32>}, {transform_indices = @transform_3, window_bounds = array<i64: 1, 32, 384>}, {transform_indices = @transform_4, window_bounds = array<i64: 1, 1, 384>}, {transform_indices = @transform_5, window_bounds = array<i64: 1, 4, 128>}, {transform_indices = @transform_6, window_bounds = array<i64: 1, 128, 32>}, {transform_indices = @transform_7, window_bounds = array<i64: 1, 1, 32>}, {transform_indices = @transform_8, window_bounds = array<i64: 1, 2, 32>}, {pipeline_mode = #tpu.pipeline_mode<synchronous>, transform_indices = @transform_9, window_bounds = array<i64: 2, 32>}, {pipeline_mode = #tpu.pipeline_mode<synchronous>, transform_indices = @transform_10, window_bounds = array<i64: 2, 16, 32>}]} {
    %c0_i32 = arith.constant 0 : i32
    %0 = arith.cmpi eq, %arg0, %c0_i32 : i32
    %1 = arith.extui %0 : i1 to i32
    %c0_i32_0 = arith.constant 0 : i32
    %2 = arith.cmpi ne, %1, %c0_i32_0 : i32
    scf.if %2 {
      %c0_39 = arith.constant 0 : index
      %c0_40 = arith.constant 0 : index
      %c0_41 = arith.constant 0 : index
      %96 = vector.load %arg1[%c0_39, %c0_40, %c0_41] : memref<2x16x16xf32, #tpu.memory_space<vmem>>, vector<2x16x16xf32>
      %97 = vector.shape_cast %96 : vector<2x16x16xf32> to vector<32x16xf32>
      %c0_42 = arith.constant 0 : index
      %c0_43 = arith.constant 0 : index
      %98 = vector.load %arg3[%c0_42, %c0_43] : memref<16x32xf32, #tpu.memory_space<vmem>>, vector<16x32xf32>
      %cst_44 = arith.constant dense<0.000000e+00> : vector<32x32xf32>
      %99 = tpu.matmul %97, %98, %cst_44 {dimension_numbers = #tpu.dot_dimension_numbers<[1], [0], [0], [1], [0, 0, 1, 1], [], []>} : vector<32x16xf32>, vector<16x32xf32>, vector<32x32xf32> -> vector<32x32xf32>
      %100 = vector.shape_cast %99 : vector<32x32xf32> to vector<2x16x32xf32>
      %c0_45 = arith.constant 0 : index
      %c0_46 = arith.constant 0 : index
      %101 = vector.load %arg2[%c0_45, %c0_46] : memref<16x32xf32, #tpu.memory_space<vmem>>, vector<16x32xf32>
      %102 = vector.shape_cast %101 : vector<16x32xf32> to vector<1x16x32xf32>
      %103 = vector.broadcast %102 : vector<1x16x32xf32> to vector<2x16x32xf32>
      %104 = arith.addf %100, %103 : vector<2x16x32xf32>
      %c0_47 = arith.constant 0 : index
      %c0_48 = arith.constant 0 : index
      %c0_49 = arith.constant 0 : index
      %105 = vector.load %arg12[%c0_47, %c0_48, %c0_49] : memref<2x16x32xf32, #tpu.memory_space<vmem>>, vector<2x16x32xf32>
      tpu.vector_store %arg12[%c0_47, %c0_48, %c0_49], %104 {strides = array<i32>} : memref<2x16x32xf32, #tpu.memory_space<vmem>>, vector<2x16x32xf32>,
    } else {
    }
    %c0 = arith.constant 0 : index
    %c0_1 = arith.constant 0 : index
    %c0_2 = arith.constant 0 : index
    %3 = vector.load %arg12[%c0, %c0_1, %c0_2] : memref<2x16x32xf32, #tpu.memory_space<vmem>>, vector<2x16x32xf32>
    %4 = vector.shape_cast %3 : vector<2x16x32xf32> to vector<32x32xf32>
    %c0_3 = arith.constant 0 : index
    %c0_4 = arith.constant 0 : index
    %c0_5 = arith.constant 0 : index
    %5 = vector.load %arg4[%c0_3, %c0_4, %c0_5] : memref<1x32x384xf32, #tpu.memory_space<vmem>>, vector<1x32x384xf32>
    %6 = vector.shape_cast %5 : vector<1x32x384xf32> to vector<32x384xf32>
    %c0_6 = arith.constant 0 : index
    %c0_7 = arith.constant 0 : index
    %c0_8 = arith.constant 0 : index
    %7 = vector.load %arg5[%c0_6, %c0_7, %c0_8] : memref<1x1x384xf32, #tpu.memory_space<vmem>>, vector<1x1x384xf32>
    %8 = vector.shape_cast %7 : vector<1x1x384xf32> to vector<1x384xf32>
    %c0_9 = arith.constant 0 : index
    %c0_10 = arith.constant 0 : index
    %c0_11 = arith.constant 0 : index
    %9 = vector.load %arg6[%c0_9, %c0_10, %c0_11] : memref<1x4x128xf32, #tpu.memory_space<vmem>>, vector<1x4x128xf32>
    %10 = vector.shape_cast %9 : vector<1x4x128xf32> to vector<4x128xf32>
    %c0_12 = arith.constant 0 : index
    %c0_13 = arith.constant 0 : index
    %c0_14 = arith.constant 0 : index
    %11 = vector.load %arg7[%c0_12, %c0_13, %c0_14] : memref<1x128x32xf32, #tpu.memory_space<vmem>>, vector<1x128x32xf32>
    %12 = vector.shape_cast %11 : vector<1x128x32xf32> to vector<128x32xf32>
    %c0_15 = arith.constant 0 : index
    %c0_16 = arith.constant 0 : index
    %c0_17 = arith.constant 0 : index
    %13 = vector.load %arg8[%c0_15, %c0_16, %c0_17] : memref<1x1x32xf32, #tpu.memory_space<vmem>>, vector<1x1x32xf32>
    %14 = vector.shape_cast %13 : vector<1x1x32xf32> to vector<1x32xf32>
    %c0_18 = arith.constant 0 : index
    %c0_19 = arith.constant 0 : index
    %c0_20 = arith.constant 0 : index
    %15 = vector.load %arg9[%c0_18, %c0_19, %c0_20] : memref<1x2x32xf32, #tpu.memory_space<vmem>>, vector<1x2x32xf32>
    %16 = vector.shape_cast %15 : vector<1x2x32xf32> to vector<2x32xf32>
    %cst = arith.constant dense<0.000000e+00> : vector<32x384xf32>
    %17 = tpu.matmul %4, %6, %cst {dimension_numbers = #tpu.dot_dimension_numbers<[1], [0], [0], [1], [0, 0, 1, 1], [], []>} : vector<32x32xf32>, vector<32x384xf32>, vector<32x384xf32> -> vector<32x384xf32>
    %18 = vector.broadcast %8 : vector<1x384xf32> to vector<32x384xf32>
    %19 = arith.addf %17, %18 : vector<32x384xf32>
    %20 = arith.mulf %19, %19 : vector<32x384xf32>
    %21 = arith.mulf %19, %20 : vector<32x384xf32>
    %cst_21 = arith.constant 4.471500e-02 : f32
    %22 = vector.broadcast %cst_21 : f32 to vector<32x384xf32>
    %23 = arith.mulf %22, %21 : vector<32x384xf32>
    %24 = arith.addf %19, %23 : vector<32x384xf32>
    %cst_22 = arith.constant 0.797884583 : f32
    %25 = vector.broadcast %cst_22 : f32 to vector<32x384xf32>
    %26 = arith.mulf %25, %24 : vector<32x384xf32>
    %27 = math.tanh %26 : vector<32x384xf32>
    %cst_23 = arith.constant 1.000000e+00 : f32
    %28 = vector.broadcast %cst_23 : f32 to vector<32x384xf32>
    %29 = arith.addf %28, %27 : vector<32x384xf32>
    %cst_24 = arith.constant 5.000000e-01 : f32
    %30 = vector.broadcast %cst_24 : f32 to vector<32x384xf32>
    %31 = arith.mulf %30, %29 : vector<32x384xf32>
    %32 = arith.mulf %19, %31 : vector<32x384xf32>
    %33 = vector.extract_strided_slice %32 {offsets = [0, 0], sizes = [32, 128], strides = [1, 1]} : vector<32x384xf32> to vector<32x128xf32>
    %34 = vector.extract_strided_slice %32 {offsets = [0, 128], sizes = [32, 128], strides = [1, 1]} : vector<32x384xf32> to vector<32x128xf32>
    %35 = vector.shape_cast %34 : vector<32x128xf32> to vector<2x16x128xf32>
    %36 = vector.extract_strided_slice %32 {offsets = [0, 256], sizes = [32, 128], strides = [1, 1]} : vector<32x384xf32> to vector<32x128xf32>
    %37 = vector.extract_strided_slice %10 {offsets = [0, 0], sizes = [1, 128], strides = [1, 1]} : vector<4x128xf32> to vector<1x128xf32>
    %38 = vector.broadcast %37 : vector<1x128xf32> to vector<32x128xf32>
    %39 = arith.mulf %36, %38 : vector<32x128xf32>
    %40 = vector.extract_strided_slice %10 {offsets = [1, 0], sizes = [1, 128], strides = [1, 1]} : vector<4x128xf32> to vector<1x128xf32>
    %41 = vector.broadcast %40 : vector<1x128xf32> to vector<32x128xf32>
    %42 = arith.addf %39, %41 : vector<32x128xf32>
    %43 = vector.shape_cast %42 : vector<32x128xf32> to vector<2x16x128xf32>
    %44 = vector.extract_strided_slice %10 {offsets = [2, 0], sizes = [1, 128], strides = [1, 1]} : vector<4x128xf32> to vector<1x128xf32>
    %45 = vector.broadcast %44 : vector<1x128xf32> to vector<32x128xf32>
    %46 = arith.mulf %36, %45 : vector<32x128xf32>
    %47 = vector.extract_strided_slice %10 {offsets = [3, 0], sizes = [1, 128], strides = [1, 1]} : vector<4x128xf32> to vector<1x128xf32>
    %48 = vector.broadcast %47 : vector<1x128xf32> to vector<32x128xf32>
    %49 = arith.addf %46, %48 : vector<32x128xf32>
    %50 = vector.shape_cast %49 : vector<32x128xf32> to vector<2x16x128xf32>
    "tpu.trace_start"() <{level = 10 : i32, message = "bqd,bkd->bqk"}> : () -> ()
    %cst_25 = arith.constant dense<0.000000e+00> : vector<2x16x16xf32>
    %51 = tpu.matmul %43, %50, %cst_25 {dimension_numbers = #tpu.dot_dimension_numbers<[2], [2], [1], [1], [0, 0, 0, 1, 1, 1], [0], [0]>} : vector<2x16x128xf32>, vector<2x16x128xf32>, vector<2x16x16xf32> -> vector<2x16x16xf32>
    "tpu.trace_stop"() : () -> ()
    %cst_26 = arith.constant dense<0xFF800000> : vector<2x16xf32>
    %52 = vector.multi_reduction <maximumf>, %51, %cst_26 [2] : vector<2x16x16xf32> to vector<2x16xf32>
    %53 = vector.shape_cast %52 : vector<2x16xf32> to vector<2x16x1xf32>
    %54 = vector.broadcast %53 : vector<2x16x1xf32> to vector<2x16x16xf32>
    %55 = arith.subf %51, %54 : vector<2x16x16xf32>
    %56 = math.exp %55 : vector<2x16x16xf32>
    %cst_27 = arith.constant dense<0.000000e+00> : vector<2x16xf32>
    %57 = vector.multi_reduction <add>, %56, %cst_27 [2] : vector<2x16x16xf32> to vector<2x16xf32>
    %58 = vector.shape_cast %57 : vector<2x16xf32> to vector<2x16x1xf32>
    %59 = tpu.reciprocal %58 {approx = true} : vector<2x16x1xf32> -> vector<2x16x1xf32>
    "tpu.trace_start"() <{level = 10 : i32, message = "bqk,bkd->bqd"}> : () -> ()
    %cst_28 = arith.constant dense<0.000000e+00> : vector<2x16x128xf32>
    %60 = tpu.matmul %56, %35, %cst_28 {dimension_numbers = #tpu.dot_dimension_numbers<[2], [1], [1], [2], [0, 0, 0, 1, 1, 2], [0], [0]>} : vector<2x16x16xf32>, vector<2x16x128xf32>, vector<2x16x128xf32> -> vector<2x16x128xf32>
    "tpu.trace_stop"() : () -> ()
    %61 = vector.broadcast %59 : vector<2x16x1xf32> to vector<2x16x128xf32>
    %62 = arith.mulf %60, %61 : vector<2x16x128xf32>
    %63 = vector.shape_cast %62 : vector<2x16x128xf32> to vector<32x128xf32>
    %64 = arith.mulf %33, %63 : vector<32x128xf32>
    %cst_29 = arith.constant dense<0.000000e+00> : vector<32x32xf32>
    %65 = tpu.matmul %64, %12, %cst_29 {dimension_numbers = #tpu.dot_dimension_numbers<[1], [0], [0], [1], [0, 0, 1, 1], [], []>} : vector<32x128xf32>, vector<128x32xf32>, vector<32x32xf32> -> vector<32x32xf32>
    %66 = arith.addf %4, %65 : vector<32x32xf32>
    %67 = vector.broadcast %14 : vector<1x32xf32> to vector<32x32xf32>
    %68 = arith.addf %66, %67 : vector<32x32xf32>
    %cst_30 = arith.constant dense<0.000000e+00> : vector<32xf32>
    %69 = vector.multi_reduction <add>, %68, %cst_30 [1] : vector<32x32xf32> to vector<32xf32>
    %70 = vector.shape_cast %69 : vector<32xf32> to vector<32x1xf32>
    %cst_31 = arith.constant 3.200000e+01 : f32
    %71 = vector.broadcast %cst_31 : f32 to vector<32x1xf32>
    %72 = arith.divf %70, %71 : vector<32x1xf32>
    %73 = vector.broadcast %72 : vector<32x1xf32> to vector<32x32xf32>
    %74 = arith.subf %68, %73 : vector<32x32xf32>
    %75 = arith.mulf %74, %74 : vector<32x32xf32>
    %cst_32 = arith.constant dense<0.000000e+00> : vector<32xf32>
    %76 = vector.multi_reduction <add>, %75, %cst_32 [1] : vector<32x32xf32> to vector<32xf32>
    %77 = vector.shape_cast %76 : vector<32xf32> to vector<32x1xf32>
    %cst_33 = arith.constant 3.200000e+01 : f32
    %78 = vector.broadcast %cst_33 : f32 to vector<32x1xf32>
    %79 = arith.divf %77, %78 : vector<32x1xf32>
    %cst_34 = arith.constant 9.99999974E-6 : f32
    %80 = vector.broadcast %cst_34 : f32 to vector<32x1xf32>
    %81 = arith.addf %79, %80 : vector<32x1xf32>
    %82 = math.rsqrt %81 : vector<32x1xf32>
    %83 = vector.broadcast %82 : vector<32x1xf32> to vector<32x32xf32>
    %84 = arith.mulf %74, %83 : vector<32x32xf32>
    %85 = vector.extract_strided_slice %16 {offsets = [0, 0], sizes = [1, 32], strides = [1, 1]} : vector<2x32xf32> to vector<1x32xf32>
    %86 = vector.broadcast %85 : vector<1x32xf32> to vector<32x32xf32>
    %87 = arith.mulf %84, %86 : vector<32x32xf32>
    %88 = vector.extract_strided_slice %16 {offsets = [1, 0], sizes = [1, 32], strides = [1, 1]} : vector<2x32xf32> to vector<1x32xf32>
    %89 = vector.broadcast %88 : vector<1x32xf32> to vector<32x32xf32>
    %90 = arith.addf %87, %89 : vector<32x32xf32>
    %91 = vector.shape_cast %90 : vector<32x32xf32> to vector<2x16x32xf32>
    %c0_35 = arith.constant 0 : index
    %c0_36 = arith.constant 0 : index
    %c0_37 = arith.constant 0 : index
    %92 = vector.load %arg12[%c0_35, %c0_36, %c0_37] : memref<2x16x32xf32, #tpu.memory_space<vmem>>, vector<2x16x32xf32>
    tpu.vector_store %arg12[%c0_35, %c0_36, %c0_37], %91 {strides = array<i32>} : memref<2x16x32xf32, #tpu.memory_space<vmem>>, vector<2x16x32xf32>,
    %c1_i32 = arith.constant 1 : i32
    %93 = arith.cmpi eq, %arg0, %c1_i32 : i32
    %94 = arith.extui %93 : i1 to i32
    %c0_i32_38 = arith.constant 0 : i32
    %95 = arith.cmpi ne, %94, %c0_i32_38 : i32
    scf.if %95 {
      %c0_39 = arith.constant 0 : index
      %c0_40 = arith.constant 0 : index
      %96 = vector.load %arg10[%c0_39, %c0_40] : memref<2x32xf32, #tpu.memory_space<vmem>>, vector<2x32xf32>
      %cst_41 = arith.constant dense<0.000000e+00> : vector<32xf32>
      %97 = vector.multi_reduction <add>, %90, %cst_41 [1] : vector<32x32xf32> to vector<32xf32>
      %98 = vector.shape_cast %97 : vector<32xf32> to vector<32x1xf32>
      %cst_42 = arith.constant 3.200000e+01 : f32
      %99 = vector.broadcast %cst_42 : f32 to vector<32x1xf32>
      %100 = arith.divf %98, %99 : vector<32x1xf32>
      %101 = vector.broadcast %100 : vector<32x1xf32> to vector<32x32xf32>
      %102 = arith.subf %90, %101 : vector<32x32xf32>
      %103 = arith.mulf %102, %102 : vector<32x32xf32>
      %cst_43 = arith.constant dense<0.000000e+00> : vector<32xf32>
      %104 = vector.multi_reduction <add>, %103, %cst_43 [1] : vector<32x32xf32> to vector<32xf32>
      %105 = vector.shape_cast %104 : vector<32xf32> to vector<32x1xf32>
      %cst_44 = arith.constant 3.200000e+01 : f32
      %106 = vector.broadcast %cst_44 : f32 to vector<32x1xf32>
      %107 = arith.divf %105, %106 : vector<32x1xf32>
      %cst_45 = arith.constant 9.99999974E-6 : f32
      %108 = vector.broadcast %cst_45 : f32 to vector<32x1xf32>
      %109 = arith.addf %107, %108 : vector<32x1xf32>
      %110 = math.rsqrt %109 : vector<32x1xf32>
      %111 = vector.broadcast %110 : vector<32x1xf32> to vector<32x32xf32>
      %112 = arith.mulf %102, %111 : vector<32x32xf32>
      %113 = vector.extract_strided_slice %96 {offsets = [0, 0], sizes = [1, 32], strides = [1, 1]} : vector<2x32xf32> to vector<1x32xf32>
      %114 = vector.broadcast %113 : vector<1x32xf32> to vector<32x32xf32>
      %115 = arith.mulf %112, %114 : vector<32x32xf32>
      %116 = vector.extract_strided_slice %96 {offsets = [1, 0], sizes = [1, 32], strides = [1, 1]} : vector<2x32xf32> to vector<1x32xf32>
      %117 = vector.broadcast %116 : vector<1x32xf32> to vector<32x32xf32>
      %118 = arith.addf %115, %117 : vector<32x32xf32>
      %119 = vector.shape_cast %118 : vector<32x32xf32> to vector<2x16x32xf32>
      %c0_46 = arith.constant 0 : index
      %c0_47 = arith.constant 0 : index
      %c0_48 = arith.constant 0 : index
      %120 = vector.load %arg11[%c0_46, %c0_47, %c0_48] : memref<2x16x32xf32, #tpu.memory_space<vmem>>, vector<2x16x32xf32>
      tpu.vector_store %arg11[%c0_46, %c0_47, %c0_48], %119 {strides = array<i32>} : memref<2x16x32xf32, #tpu.memory_space<vmem>>, vector<2x16x32xf32>,
    } else {
    }
    return
  }
  func.func @transform_0(%arg0: i32) -> (i32, i32, i32) {
    %c0_i32 = arith.constant 0 : i32
    %c0_i32_0 = arith.constant 0 : i32
    %c0_i32_1 = arith.constant 0 : i32
    %c0_i32_2 = arith.constant 0 : i32
    return %c0_i32, %c0_i32_0, %c0_i32_1 : i32, i32, i32
  }
  func.func @transform_1(%arg0: i32) -> (i32, i32) {
    %c0_i32 = arith.constant 0 : i32
    %c0_i32_0 = arith.constant 0 : i32
    %c0_i32_1 = arith.constant 0 : i32
    return %c0_i32, %c0_i32_0 : i32, i32
  }
  func.func @transform_2(%arg0: i32) -> (i32, i32) {
    %c0_i32 = arith.constant 0 : i32
    %c0_i32_0 = arith.constant 0 : i32
    %c0_i32_1 = arith.constant 0 : i32
    return %c0_i32, %c0_i32_0 : i32, i32
  }
  func.func @transform_3(%arg0: i32) -> (i32, i32, i32) {
    %c0_i32 = arith.constant 0 : i32
    %c0_i32_0 = arith.constant 0 : i32
    %c0_i32_1 = arith.constant 0 : i32
    return %arg0, %c0_i32, %c0_i32_0 : i32, i32, i32
  }
  func.func @transform_4(%arg0: i32) -> (i32, i32, i32) {
    %c0_i32 = arith.constant 0 : i32
    %c0_i32_0 = arith.constant 0 : i32
    %c0_i32_1 = arith.constant 0 : i32
    return %arg0, %c0_i32, %c0_i32_0 : i32, i32, i32
  }
  func.func @transform_5(%arg0: i32) -> (i32, i32, i32) {
    %c0_i32 = arith.constant 0 : i32
    %c0_i32_0 = arith.constant 0 : i32
    %c0_i32_1 = arith.constant 0 : i32
    return %arg0, %c0_i32, %c0_i32_0 : i32, i32, i32
  }
  func.func @transform_6(%arg0: i32) -> (i32, i32, i32) {
    %c0_i32 = arith.constant 0 : i32
    %c0_i32_0 = arith.constant 0 : i32
    %c0_i32_1 = arith.constant 0 : i32
    return %arg0, %c0_i32, %c0_i32_0 : i32, i32, i32
  }
  func.func @transform_7(%arg0: i32) -> (i32, i32, i32) {
    %c0_i32 = arith.constant 0 : i32
    %c0_i32_0 = arith.constant 0 : i32
    %c0_i32_1 = arith.constant 0 : i32
    return %arg0, %c0_i32, %c0_i32_0 : i32, i32, i32
  }
  func.func @transform_8(%arg0: i32) -> (i32, i32, i32) {
    %c0_i32 = arith.constant 0 : i32
    %c0_i32_0 = arith.constant 0 : i32
    %c0_i32_1 = arith.constant 0 : i32
    return %arg0, %c0_i32, %c0_i32_0 : i32, i32, i32
  }
  func.func @transform_9(%arg0: i32) -> (i32, i32) {
    %c0_i32 = arith.constant 0 : i32
    %c0_i32_0 = arith.constant 0 : i32
    %c0_i32_1 = arith.constant 0 : i32
    return %c0_i32, %c0_i32_0 : i32, i32
  }
  func.func @transform_10(%arg0: i32) -> (i32, i32, i32) {
    %c0_i32 = arith.constant 0 : i32
    %c0_i32_0 = arith.constant 0 : i32
    %c0_i32_1 = arith.constant 0 : i32
    %c0_i32_2 = arith.constant 0 : i32
    return %c0_i32, %c0_i32_0, %c0_i32_1 : i32, i32, i32
  }
}

module attributes {stable_mosaic.version = 11 : i64} {
  func.func @_decoder_stack_kernel(%arg0: i32, %arg1: memref<2x16x16xf32, #tpu.memory_space<vmem>>, %arg2: memref<16x32xf32, #tpu.memory_space<vmem>>, %arg3: memref<16x32xf32, #tpu.memory_space<vmem>>, %arg4: memref<2x16x32xf32, #tpu.memory_space<vmem>>, %arg5: memref<1x32x384xf32, #tpu.memory_space<vmem>>, %arg6: memref<1x1x384xf32, #tpu.memory_space<vmem>>, %arg7: memref<1x4x128xf32, #tpu.memory_space<vmem>>, %arg8: memref<1x128x32xf32, #tpu.memory_space<vmem>>, %arg9: memref<1x1x32xf32, #tpu.memory_space<vmem>>, %arg10: memref<1x2x32xf32, #tpu.memory_space<vmem>>, %arg11: memref<1x32x256xf32, #tpu.memory_space<vmem>>, %arg12: memref<1x1x256xf32, #tpu.memory_space<vmem>>, %arg13: memref<1x32x256xf32, #tpu.memory_space<vmem>>, %arg14: memref<1x1x256xf32, #tpu.memory_space<vmem>>, %arg15: memref<1x4x128xf32, #tpu.memory_space<vmem>>, %arg16: memref<1x128x32xf32, #tpu.memory_space<vmem>>, %arg17: memref<1x1x32xf32, #tpu.memory_space<vmem>>, %arg18: memref<1x2x32xf32, #tpu.memory_space<vmem>>, %arg19: memref<2x32xf32, #tpu.memory_space<vmem>>, %arg20: memref<32x4xf32, #tpu.memory_space<vmem>>, %arg21: memref<1x4xf32, #tpu.memory_space<vmem>>, %arg22: memref<2x16x4xf32, #tpu.memory_space<vmem>>, %arg23: memref<2x16x32xf32, #tpu.memory_space<vmem>>) attributes {dimension_semantics = [#tpu.dimension_semantics<arbitrary>], iteration_bounds = array<i64: 1>, scalar_prefetch = 0 : i64, scratch_operands = 1 : i64, tpu.core_type = #tpu.core_type<tc>, window_params = [{pipeline_mode = #tpu.pipeline_mode<synchronous>, transform_indices = @transform_0, window_bounds = array<i64: 2, 16, 16>}, {pipeline_mode = #tpu.pipeline_mode<synchronous>, transform_indices = @transform_1, window_bounds = array<i64: 16, 32>}, {pipeline_mode = #tpu.pipeline_mode<synchronous>, transform_indices = @transform_2, window_bounds = array<i64: 16, 32>}, {pipeline_mode = #tpu.pipeline_mode<synchronous>, transform_indices = @transform_3, window_bounds = array<i64: 2, 16, 32>}, {transform_indices = @transform_4, window_bounds = array<i64: 1, 32, 384>}, {transform_indices = @transform_5, window_bounds = array<i64: 1, 1, 384>}, {transform_indices = @transform_6, window_bounds = array<i64: 1, 4, 128>}, {transform_indices = @transform_7, window_bounds = array<i64: 1, 128, 32>}, {transform_indices = @transform_8, window_bounds = array<i64: 1, 1, 32>}, {transform_indices = @transform_9, window_bounds = array<i64: 1, 2, 32>}, {transform_indices = @transform_10, window_bounds = array<i64: 1, 32, 256>}, {transform_indices = @transform_11, window_bounds = array<i64: 1, 1, 256>}, {transform_indices = @transform_12, window_bounds = array<i64: 1, 32, 256>}, {transform_indices = @transform_13, window_bounds = array<i64: 1, 1, 256>}, {transform_indices = @transform_14, window_bounds = array<i64: 1, 4, 128>}, {transform_indices = @transform_15, window_bounds = array<i64: 1, 128, 32>}, {transform_indices = @transform_16, window_bounds = array<i64: 1, 1, 32>}, {transform_indices = @transform_17, window_bounds = array<i64: 1, 2, 32>}, {pipeline_mode = #tpu.pipeline_mode<synchronous>, transform_indices = @transform_18, window_bounds = array<i64: 2, 32>}, {pipeline_mode = #tpu.pipeline_mode<synchronous>, transform_indices = @transform_19, window_bounds = array<i64: 32, 4>}, {pipeline_mode = #tpu.pipeline_mode<synchronous>, transform_indices = @transform_20, window_bounds = array<i64: 1, 4>}, {pipeline_mode = #tpu.pipeline_mode<synchronous>, transform_indices = @transform_21, window_bounds = array<i64: 2, 16, 4>}]} {
    %c0_i32 = arith.constant 0 : i32
    %0 = arith.cmpi eq, %arg0, %c0_i32 : i32
    %1 = arith.extui %0 : i1 to i32
    %c0_i32_0 = arith.constant 0 : i32
    %2 = arith.cmpi ne, %1, %c0_i32_0 : i32
    scf.if %2 {
      %c0_88 = arith.constant 0 : index
      %c0_89 = arith.constant 0 : index
      %c0_90 = arith.constant 0 : index
      %210 = vector.load %arg1[%c0_88, %c0_89, %c0_90] : memref<2x16x16xf32, #tpu.memory_space<vmem>>, vector<2x16x16xf32>
      %211 = vector.shape_cast %210 : vector<2x16x16xf32> to vector<32x16xf32>
      %c0_91 = arith.constant 0 : index
      %c0_92 = arith.constant 0 : index
      %212 = vector.load %arg3[%c0_91, %c0_92] : memref<16x32xf32, #tpu.memory_space<vmem>>, vector<16x32xf32>
      %cst_93 = arith.constant dense<0.000000e+00> : vector<32x32xf32>
      %213 = tpu.matmul %211, %212, %cst_93 {dimension_numbers = #tpu.dot_dimension_numbers<[1], [0], [0], [1], [0, 0, 1, 1], [], []>} : vector<32x16xf32>, vector<16x32xf32>, vector<32x32xf32> -> vector<32x32xf32>
      %214 = vector.shape_cast %213 : vector<32x32xf32> to vector<2x16x32xf32>
      %c0_94 = arith.constant 0 : index
      %c0_95 = arith.constant 0 : index
      %215 = vector.load %arg2[%c0_94, %c0_95] : memref<16x32xf32, #tpu.memory_space<vmem>>, vector<16x32xf32>
      %216 = vector.shape_cast %215 : vector<16x32xf32> to vector<1x16x32xf32>
      %217 = vector.broadcast %216 : vector<1x16x32xf32> to vector<2x16x32xf32>
      %218 = arith.addf %214, %217 : vector<2x16x32xf32>
      %c0_96 = arith.constant 0 : index
      %c0_97 = arith.constant 0 : index
      %c0_98 = arith.constant 0 : index
      %219 = vector.load %arg23[%c0_96, %c0_97, %c0_98] : memref<2x16x32xf32, #tpu.memory_space<vmem>>, vector<2x16x32xf32>
      tpu.vector_store %arg23[%c0_96, %c0_97, %c0_98], %218 {strides = array<i32>} : memref<2x16x32xf32, #tpu.memory_space<vmem>>, vector<2x16x32xf32>,
    } else {
    }
    %c0 = arith.constant 0 : index
    %c0_1 = arith.constant 0 : index
    %c0_2 = arith.constant 0 : index
    %3 = vector.load %arg23[%c0, %c0_1, %c0_2] : memref<2x16x32xf32, #tpu.memory_space<vmem>>, vector<2x16x32xf32>
    %4 = vector.shape_cast %3 : vector<2x16x32xf32> to vector<32x32xf32>
    %c0_3 = arith.constant 0 : index
    %c0_4 = arith.constant 0 : index
    %c0_5 = arith.constant 0 : index
    %5 = vector.load %arg5[%c0_3, %c0_4, %c0_5] : memref<1x32x384xf32, #tpu.memory_space<vmem>>, vector<1x32x384xf32>
    %6 = vector.shape_cast %5 : vector<1x32x384xf32> to vector<32x384xf32>
    %c0_6 = arith.constant 0 : index
    %c0_7 = arith.constant 0 : index
    %c0_8 = arith.constant 0 : index
    %7 = vector.load %arg6[%c0_6, %c0_7, %c0_8] : memref<1x1x384xf32, #tpu.memory_space<vmem>>, vector<1x1x384xf32>
    %8 = vector.shape_cast %7 : vector<1x1x384xf32> to vector<1x384xf32>
    %c0_9 = arith.constant 0 : index
    %c0_10 = arith.constant 0 : index
    %c0_11 = arith.constant 0 : index
    %9 = vector.load %arg7[%c0_9, %c0_10, %c0_11] : memref<1x4x128xf32, #tpu.memory_space<vmem>>, vector<1x4x128xf32>
    %10 = vector.shape_cast %9 : vector<1x4x128xf32> to vector<4x128xf32>
    %c0_12 = arith.constant 0 : index
    %c0_13 = arith.constant 0 : index
    %c0_14 = arith.constant 0 : index
    %11 = vector.load %arg8[%c0_12, %c0_13, %c0_14] : memref<1x128x32xf32, #tpu.memory_space<vmem>>, vector<1x128x32xf32>
    %12 = vector.shape_cast %11 : vector<1x128x32xf32> to vector<128x32xf32>
    %c0_15 = arith.constant 0 : index
    %c0_16 = arith.constant 0 : index
    %c0_17 = arith.constant 0 : index
    %13 = vector.load %arg9[%c0_15, %c0_16, %c0_17] : memref<1x1x32xf32, #tpu.memory_space<vmem>>, vector<1x1x32xf32>
    %14 = vector.shape_cast %13 : vector<1x1x32xf32> to vector<1x32xf32>
    %c0_18 = arith.constant 0 : index
    %c0_19 = arith.constant 0 : index
    %c0_20 = arith.constant 0 : index
    %15 = vector.load %arg10[%c0_18, %c0_19, %c0_20] : memref<1x2x32xf32, #tpu.memory_space<vmem>>, vector<1x2x32xf32>
    %16 = vector.shape_cast %15 : vector<1x2x32xf32> to vector<2x32xf32>
    %cst = arith.constant dense<0.000000e+00> : vector<32x384xf32>
    %17 = tpu.matmul %4, %6, %cst {dimension_numbers = #tpu.dot_dimension_numbers<[1], [0], [0], [1], [0, 0, 1, 1], [], []>} : vector<32x32xf32>, vector<32x384xf32>, vector<32x384xf32> -> vector<32x384xf32>
    %18 = vector.broadcast %8 : vector<1x384xf32> to vector<32x384xf32>
    %19 = arith.addf %17, %18 : vector<32x384xf32>
    %20 = arith.mulf %19, %19 : vector<32x384xf32>
    %21 = arith.mulf %19, %20 : vector<32x384xf32>
    %cst_21 = arith.constant 4.471500e-02 : f32
    %22 = vector.broadcast %cst_21 : f32 to vector<32x384xf32>
    %23 = arith.mulf %22, %21 : vector<32x384xf32>
    %24 = arith.addf %19, %23 : vector<32x384xf32>
    %cst_22 = arith.constant 0.797884583 : f32
    %25 = vector.broadcast %cst_22 : f32 to vector<32x384xf32>
    %26 = arith.mulf %25, %24 : vector<32x384xf32>
    %27 = math.tanh %26 : vector<32x384xf32>
    %cst_23 = arith.constant 1.000000e+00 : f32
    %28 = vector.broadcast %cst_23 : f32 to vector<32x384xf32>
    %29 = arith.addf %28, %27 : vector<32x384xf32>
    %cst_24 = arith.constant 5.000000e-01 : f32
    %30 = vector.broadcast %cst_24 : f32 to vector<32x384xf32>
    %31 = arith.mulf %30, %29 : vector<32x384xf32>
    %32 = arith.mulf %19, %31 : vector<32x384xf32>
    %33 = vector.extract_strided_slice %32 {offsets = [0, 0], sizes = [32, 128], strides = [1, 1]} : vector<32x384xf32> to vector<32x128xf32>
    %34 = vector.extract_strided_slice %32 {offsets = [0, 128], sizes = [32, 128], strides = [1, 1]} : vector<32x384xf32> to vector<32x128xf32>
    %35 = vector.shape_cast %34 : vector<32x128xf32> to vector<2x16x128xf32>
    %36 = vector.extract_strided_slice %32 {offsets = [0, 256], sizes = [32, 128], strides = [1, 1]} : vector<32x384xf32> to vector<32x128xf32>
    %37 = vector.extract_strided_slice %10 {offsets = [0, 0], sizes = [1, 128], strides = [1, 1]} : vector<4x128xf32> to vector<1x128xf32>
    %38 = vector.broadcast %37 : vector<1x128xf32> to vector<32x128xf32>
    %39 = arith.mulf %36, %38 : vector<32x128xf32>
    %40 = vector.extract_strided_slice %10 {offsets = [1, 0], sizes = [1, 128], strides = [1, 1]} : vector<4x128xf32> to vector<1x128xf32>
    %41 = vector.broadcast %40 : vector<1x128xf32> to vector<32x128xf32>
    %42 = arith.addf %39, %41 : vector<32x128xf32>
    %43 = vector.shape_cast %42 : vector<32x128xf32> to vector<2x16x128xf32>
    %44 = vector.extract_strided_slice %10 {offsets = [2, 0], sizes = [1, 128], strides = [1, 1]} : vector<4x128xf32> to vector<1x128xf32>
    %45 = vector.broadcast %44 : vector<1x128xf32> to vector<32x128xf32>
    %46 = arith.mulf %36, %45 : vector<32x128xf32>
    %47 = vector.extract_strided_slice %10 {offsets = [3, 0], sizes = [1, 128], strides = [1, 1]} : vector<4x128xf32> to vector<1x128xf32>
    %48 = vector.broadcast %47 : vector<1x128xf32> to vector<32x128xf32>
    %49 = arith.addf %46, %48 : vector<32x128xf32>
    %50 = vector.shape_cast %49 : vector<32x128xf32> to vector<2x16x128xf32>
    "tpu.trace_start"() <{level = 10 : i32, message = "bqd,bkd->bqk"}> : () -> ()
    %cst_25 = arith.constant dense<0.000000e+00> : vector<2x16x16xf32>
    %51 = tpu.matmul %43, %50, %cst_25 {dimension_numbers = #tpu.dot_dimension_numbers<[2], [2], [1], [1], [0, 0, 0, 1, 1, 1], [0], [0]>} : vector<2x16x128xf32>, vector<2x16x128xf32>, vector<2x16x16xf32> -> vector<2x16x16xf32>
    "tpu.trace_stop"() : () -> ()
    %52 = tpu.iota {dimensions = array<i32: 1>} : vector<2x16x16xi32>
    %53 = tpu.iota {dimensions = array<i32: 2>} : vector<2x16x16xi32>
    %54 = arith.cmpi sle, %53, %52 : vector<2x16x16xi32>
    %cst_26 = arith.constant -1.000000e+30 : f32
    %55 = vector.broadcast %cst_26 : f32 to vector<2x16x16xf32>
    %56 = arith.select %54, %51, %55 : vector<2x16x16xi1>, vector<2x16x16xf32>
    %cst_27 = arith.constant dense<0xFF800000> : vector<2x16xf32>
    %57 = vector.multi_reduction <maximumf>, %56, %cst_27 [2] : vector<2x16x16xf32> to vector<2x16xf32>
    %58 = vector.shape_cast %57 : vector<2x16xf32> to vector<2x16x1xf32>
    %59 = vector.broadcast %58 : vector<2x16x1xf32> to vector<2x16x16xf32>
    %60 = arith.subf %56, %59 : vector<2x16x16xf32>
    %61 = math.exp %60 : vector<2x16x16xf32>
    %cst_28 = arith.constant dense<0.000000e+00> : vector<2x16xf32>
    %62 = vector.multi_reduction <add>, %61, %cst_28 [2] : vector<2x16x16xf32> to vector<2x16xf32>
    %63 = vector.shape_cast %62 : vector<2x16xf32> to vector<2x16x1xf32>
    %64 = tpu.reciprocal %63 {approx = true} : vector<2x16x1xf32> -> vector<2x16x1xf32>
    "tpu.trace_start"() <{level = 10 : i32, message = "bqk,bkd->bqd"}> : () -> ()
    %cst_29 = arith.constant dense<0.000000e+00> : vector<2x16x128xf32>
    %65 = tpu.matmul %61, %35, %cst_29 {dimension_numbers = #tpu.dot_dimension_numbers<[2], [1], [1], [2], [0, 0, 0, 1, 1, 2], [0], [0]>} : vector<2x16x16xf32>, vector<2x16x128xf32>, vector<2x16x128xf32> -> vector<2x16x128xf32>
    "tpu.trace_stop"() : () -> ()
    %66 = vector.broadcast %64 : vector<2x16x1xf32> to vector<2x16x128xf32>
    %67 = arith.mulf %65, %66 : vector<2x16x128xf32>
    %68 = vector.shape_cast %67 : vector<2x16x128xf32> to vector<32x128xf32>
    %69 = arith.mulf %33, %68 : vector<32x128xf32>
    %cst_30 = arith.constant dense<0.000000e+00> : vector<32x32xf32>
    %70 = tpu.matmul %69, %12, %cst_30 {dimension_numbers = #tpu.dot_dimension_numbers<[1], [0], [0], [1], [0, 0, 1, 1], [], []>} : vector<32x128xf32>, vector<128x32xf32>, vector<32x32xf32> -> vector<32x32xf32>
    %71 = arith.addf %4, %70 : vector<32x32xf32>
    %72 = vector.broadcast %14 : vector<1x32xf32> to vector<32x32xf32>
    %73 = arith.addf %71, %72 : vector<32x32xf32>
    %cst_31 = arith.constant dense<0.000000e+00> : vector<32xf32>
    %74 = vector.multi_reduction <add>, %73, %cst_31 [1] : vector<32x32xf32> to vector<32xf32>
    %75 = vector.shape_cast %74 : vector<32xf32> to vector<32x1xf32>
    %cst_32 = arith.constant 3.200000e+01 : f32
    %76 = vector.broadcast %cst_32 : f32 to vector<32x1xf32>
    %77 = arith.divf %75, %76 : vector<32x1xf32>
    %78 = vector.broadcast %77 : vector<32x1xf32> to vector<32x32xf32>
    %79 = arith.subf %73, %78 : vector<32x32xf32>
    %80 = arith.mulf %79, %79 : vector<32x32xf32>
    %cst_33 = arith.constant dense<0.000000e+00> : vector<32xf32>
    %81 = vector.multi_reduction <add>, %80, %cst_33 [1] : vector<32x32xf32> to vector<32xf32>
    %82 = vector.shape_cast %81 : vector<32xf32> to vector<32x1xf32>
    %cst_34 = arith.constant 3.200000e+01 : f32
    %83 = vector.broadcast %cst_34 : f32 to vector<32x1xf32>
    %84 = arith.divf %82, %83 : vector<32x1xf32>
    %cst_35 = arith.constant 9.99999974E-6 : f32
    %85 = vector.broadcast %cst_35 : f32 to vector<32x1xf32>
    %86 = arith.addf %84, %85 : vector<32x1xf32>
    %87 = math.rsqrt %86 : vector<32x1xf32>
    %88 = vector.broadcast %87 : vector<32x1xf32> to vector<32x32xf32>
    %89 = arith.mulf %79, %88 : vector<32x32xf32>
    %90 = vector.extract_strided_slice %16 {offsets = [0, 0], sizes = [1, 32], strides = [1, 1]} : vector<2x32xf32> to vector<1x32xf32>
    %91 = vector.broadcast %90 : vector<1x32xf32> to vector<32x32xf32>
    %92 = arith.mulf %89, %91 : vector<32x32xf32>
    %93 = vector.extract_strided_slice %16 {offsets = [1, 0], sizes = [1, 32], strides = [1, 1]} : vector<2x32xf32> to vector<1x32xf32>
    %94 = vector.broadcast %93 : vector<1x32xf32> to vector<32x32xf32>
    %95 = arith.addf %92, %94 : vector<32x32xf32>
    %c0_36 = arith.constant 0 : index
    %c0_37 = arith.constant 0 : index
    %c0_38 = arith.constant 0 : index
    %96 = vector.load %arg4[%c0_36, %c0_37, %c0_38] : memref<2x16x32xf32, #tpu.memory_space<vmem>>, vector<2x16x32xf32>
    %97 = vector.shape_cast %96 : vector<2x16x32xf32> to vector<32x32xf32>
    %c0_39 = arith.constant 0 : index
    %c0_40 = arith.constant 0 : index
    %c0_41 = arith.constant 0 : index
    %98 = vector.load %arg11[%c0_39, %c0_40, %c0_41] : memref<1x32x256xf32, #tpu.memory_space<vmem>>, vector<1x32x256xf32>
    %99 = vector.shape_cast %98 : vector<1x32x256xf32> to vector<32x256xf32>
    %c0_42 = arith.constant 0 : index
    %c0_43 = arith.constant 0 : index
    %c0_44 = arith.constant 0 : index
    %100 = vector.load %arg12[%c0_42, %c0_43, %c0_44] : memref<1x1x256xf32, #tpu.memory_space<vmem>>, vector<1x1x256xf32>
    %101 = vector.shape_cast %100 : vector<1x1x256xf32> to vector<1x256xf32>
    %c0_45 = arith.constant 0 : index
    %c0_46 = arith.constant 0 : index
    %c0_47 = arith.constant 0 : index
    %102 = vector.load %arg13[%c0_45, %c0_46, %c0_47] : memref<1x32x256xf32, #tpu.memory_space<vmem>>, vector<1x32x256xf32>
    %103 = vector.shape_cast %102 : vector<1x32x256xf32> to vector<32x256xf32>
    %c0_48 = arith.constant 0 : index
    %c0_49 = arith.constant 0 : index
    %c0_50 = arith.constant 0 : index
    %104 = vector.load %arg14[%c0_48, %c0_49, %c0_50] : memref<1x1x256xf32, #tpu.memory_space<vmem>>, vector<1x1x256xf32>
    %105 = vector.shape_cast %104 : vector<1x1x256xf32> to vector<1x256xf32>
    %c0_51 = arith.constant 0 : index
    %c0_52 = arith.constant 0 : index
    %c0_53 = arith.constant 0 : index
    %106 = vector.load %arg15[%c0_51, %c0_52, %c0_53] : memref<1x4x128xf32, #tpu.memory_space<vmem>>, vector<1x4x128xf32>
    %107 = vector.shape_cast %106 : vector<1x4x128xf32> to vector<4x128xf32>
    %c0_54 = arith.constant 0 : index
    %c0_55 = arith.constant 0 : index
    %c0_56 = arith.constant 0 : index
    %108 = vector.load %arg16[%c0_54, %c0_55, %c0_56] : memref<1x128x32xf32, #tpu.memory_space<vmem>>, vector<1x128x32xf32>
    %109 = vector.shape_cast %108 : vector<1x128x32xf32> to vector<128x32xf32>
    %c0_57 = arith.constant 0 : index
    %c0_58 = arith.constant 0 : index
    %c0_59 = arith.constant 0 : index
    %110 = vector.load %arg17[%c0_57, %c0_58, %c0_59] : memref<1x1x32xf32, #tpu.memory_space<vmem>>, vector<1x1x32xf32>
    %111 = vector.shape_cast %110 : vector<1x1x32xf32> to vector<1x32xf32>
    %c0_60 = arith.constant 0 : index
    %c0_61 = arith.constant 0 : index
    %c0_62 = arith.constant 0 : index
    %112 = vector.load %arg18[%c0_60, %c0_61, %c0_62] : memref<1x2x32xf32, #tpu.memory_space<vmem>>, vector<1x2x32xf32>
    %113 = vector.shape_cast %112 : vector<1x2x32xf32> to vector<2x32xf32>
    %cst_63 = arith.constant dense<0.000000e+00> : vector<32x256xf32>
    %114 = tpu.matmul %95, %99, %cst_63 {dimension_numbers = #tpu.dot_dimension_numbers<[1], [0], [0], [1], [0, 0, 1, 1], [], []>} : vector<32x32xf32>, vector<32x256xf32>, vector<32x256xf32> -> vector<32x256xf32>
    %115 = vector.broadcast %101 : vector<1x256xf32> to vector<32x256xf32>
    %116 = arith.addf %114, %115 : vector<32x256xf32>
    %117 = arith.mulf %116, %116 : vector<32x256xf32>
    %118 = arith.mulf %116, %117 : vector<32x256xf32>
    %cst_64 = arith.constant 4.471500e-02 : f32
    %119 = vector.broadcast %cst_64 : f32 to vector<32x256xf32>
    %120 = arith.mulf %119, %118 : vector<32x256xf32>
    %121 = arith.addf %116, %120 : vector<32x256xf32>
    %cst_65 = arith.constant 0.797884583 : f32
    %122 = vector.broadcast %cst_65 : f32 to vector<32x256xf32>
    %123 = arith.mulf %122, %121 : vector<32x256xf32>
    %124 = math.tanh %123 : vector<32x256xf32>
    %cst_66 = arith.constant 1.000000e+00 : f32
    %125 = vector.broadcast %cst_66 : f32 to vector<32x256xf32>
    %126 = arith.addf %125, %124 : vector<32x256xf32>
    %cst_67 = arith.constant 5.000000e-01 : f32
    %127 = vector.broadcast %cst_67 : f32 to vector<32x256xf32>
    %128 = arith.mulf %127, %126 : vector<32x256xf32>
    %129 = arith.mulf %116, %128 : vector<32x256xf32>
    %cst_68 = arith.constant dense<0.000000e+00> : vector<32x256xf32>
    %130 = tpu.matmul %97, %103, %cst_68 {dimension_numbers = #tpu.dot_dimension_numbers<[1], [0], [0], [1], [0, 0, 1, 1], [], []>} : vector<32x32xf32>, vector<32x256xf32>, vector<32x256xf32> -> vector<32x256xf32>
    %131 = vector.broadcast %105 : vector<1x256xf32> to vector<32x256xf32>
    %132 = arith.addf %130, %131 : vector<32x256xf32>
    %133 = arith.mulf %132, %132 : vector<32x256xf32>
    %134 = arith.mulf %132, %133 : vector<32x256xf32>
    %cst_69 = arith.constant 4.471500e-02 : f32
    %135 = vector.broadcast %cst_69 : f32 to vector<32x256xf32>
    %136 = arith.mulf %135, %134 : vector<32x256xf32>
    %137 = arith.addf %132, %136 : vector<32x256xf32>
    %cst_70 = arith.constant 0.797884583 : f32
    %138 = vector.broadcast %cst_70 : f32 to vector<32x256xf32>
    %139 = arith.mulf %138, %137 : vector<32x256xf32>
    %140 = math.tanh %139 : vector<32x256xf32>
    %cst_71 = arith.constant 1.000000e+00 : f32
    %141 = vector.broadcast %cst_71 : f32 to vector<32x256xf32>
    %142 = arith.addf %141, %140 : vector<32x256xf32>
    %cst_72 = arith.constant 5.000000e-01 : f32
    %143 = vector.broadcast %cst_72 : f32 to vector<32x256xf32>
    %144 = arith.mulf %143, %142 : vector<32x256xf32>
    %145 = arith.mulf %132, %144 : vector<32x256xf32>
    %146 = vector.extract_strided_slice %129 {offsets = [0, 0], sizes = [32, 128], strides = [1, 1]} : vector<32x256xf32> to vector<32x128xf32>
    %147 = vector.extract_strided_slice %129 {offsets = [0, 128], sizes = [32, 128], strides = [1, 1]} : vector<32x256xf32> to vector<32x128xf32>
    %148 = vector.extract_strided_slice %145 {offsets = [0, 0], sizes = [32, 128], strides = [1, 1]} : vector<32x256xf32> to vector<32x128xf32>
    %149 = vector.shape_cast %148 : vector<32x128xf32> to vector<2x16x128xf32>
    %150 = vector.extract_strided_slice %145 {offsets = [0, 128], sizes = [32, 128], strides = [1, 1]} : vector<32x256xf32> to vector<32x128xf32>
    %151 = vector.extract_strided_slice %107 {offsets = [0, 0], sizes = [1, 128], strides = [1, 1]} : vector<4x128xf32> to vector<1x128xf32>
    %152 = vector.broadcast %151 : vector<1x128xf32> to vector<32x128xf32>
    %153 = arith.mulf %147, %152 : vector<32x128xf32>
    %154 = vector.extract_strided_slice %107 {offsets = [1, 0], sizes = [1, 128], strides = [1, 1]} : vector<4x128xf32> to vector<1x128xf32>
    %155 = vector.broadcast %154 : vector<1x128xf32> to vector<32x128xf32>
    %156 = arith.addf %153, %155 : vector<32x128xf32>
    %157 = vector.shape_cast %156 : vector<32x128xf32> to vector<2x16x128xf32>
    %158 = vector.extract_strided_slice %107 {offsets = [2, 0], sizes = [1, 128], strides = [1, 1]} : vector<4x128xf32> to vector<1x128xf32>
    %159 = vector.broadcast %158 : vector<1x128xf32> to vector<32x128xf32>
    %160 = arith.mulf %150, %159 : vector<32x128xf32>
    %161 = vector.extract_strided_slice %107 {offsets = [3, 0], sizes = [1, 128], strides = [1, 1]} : vector<4x128xf32> to vector<1x128xf32>
    %162 = vector.broadcast %161 : vector<1x128xf32> to vector<32x128xf32>
    %163 = arith.addf %160, %162 : vector<32x128xf32>
    %164 = vector.shape_cast %163 : vector<32x128xf32> to vector<2x16x128xf32>
    "tpu.trace_start"() <{level = 10 : i32, message = "bqd,bkd->bqk"}> : () -> ()
    %cst_73 = arith.constant dense<0.000000e+00> : vector<2x16x16xf32>
    %165 = tpu.matmul %157, %164, %cst_73 {dimension_numbers = #tpu.dot_dimension_numbers<[2], [2], [1], [1], [0, 0, 0, 1, 1, 1], [0], [0]>} : vector<2x16x128xf32>, vector<2x16x128xf32>, vector<2x16x16xf32> -> vector<2x16x16xf32>
    "tpu.trace_stop"() : () -> ()
    %cst_74 = arith.constant dense<0xFF800000> : vector<2x16xf32>
    %166 = vector.multi_reduction <maximumf>, %165, %cst_74 [2] : vector<2x16x16xf32> to vector<2x16xf32>
    %167 = vector.shape_cast %166 : vector<2x16xf32> to vector<2x16x1xf32>
    %168 = vector.broadcast %167 : vector<2x16x1xf32> to vector<2x16x16xf32>
    %169 = arith.subf %165, %168 : vector<2x16x16xf32>
    %170 = math.exp %169 : vector<2x16x16xf32>
    %cst_75 = arith.constant dense<0.000000e+00> : vector<2x16xf32>
    %171 = vector.multi_reduction <add>, %170, %cst_75 [2] : vector<2x16x16xf32> to vector<2x16xf32>
    %172 = vector.shape_cast %171 : vector<2x16xf32> to vector<2x16x1xf32>
    %173 = tpu.reciprocal %172 {approx = true} : vector<2x16x1xf32> -> vector<2x16x1xf32>
    "tpu.trace_start"() <{level = 10 : i32, message = "bqk,bkd->bqd"}> : () -> ()
    %cst_76 = arith.constant dense<0.000000e+00> : vector<2x16x128xf32>
    %174 = tpu.matmul %170, %149, %cst_76 {dimension_numbers = #tpu.dot_dimension_numbers<[2], [1], [1], [2], [0, 0, 0, 1, 1, 2], [0], [0]>} : vector<2x16x16xf32>, vector<2x16x128xf32>, vector<2x16x128xf32> -> vector<2x16x128xf32>
    "tpu.trace_stop"() : () -> ()
    %175 = vector.broadcast %173 : vector<2x16x1xf32> to vector<2x16x128xf32>
    %176 = arith.mulf %174, %175 : vector<2x16x128xf32>
    %177 = vector.shape_cast %176 : vector<2x16x128xf32> to vector<32x128xf32>
    %178 = arith.mulf %146, %177 : vector<32x128xf32>
    %cst_77 = arith.constant dense<0.000000e+00> : vector<32x32xf32>
    %179 = tpu.matmul %178, %109, %cst_77 {dimension_numbers = #tpu.dot_dimension_numbers<[1], [0], [0], [1], [0, 0, 1, 1], [], []>} : vector<32x128xf32>, vector<128x32xf32>, vector<32x32xf32> -> vector<32x32xf32>
    %180 = arith.addf %95, %179 : vector<32x32xf32>
    %181 = vector.broadcast %111 : vector<1x32xf32> to vector<32x32xf32>
    %182 = arith.addf %180, %181 : vector<32x32xf32>
    %cst_78 = arith.constant dense<0.000000e+00> : vector<32xf32>
    %183 = vector.multi_reduction <add>, %182, %cst_78 [1] : vector<32x32xf32> to vector<32xf32>
    %184 = vector.shape_cast %183 : vector<32xf32> to vector<32x1xf32>
    %cst_79 = arith.constant 3.200000e+01 : f32
    %185 = vector.broadcast %cst_79 : f32 to vector<32x1xf32>
    %186 = arith.divf %184, %185 : vector<32x1xf32>
    %187 = vector.broadcast %186 : vector<32x1xf32> to vector<32x32xf32>
    %188 = arith.subf %182, %187 : vector<32x32xf32>
    %189 = arith.mulf %188, %188 : vector<32x32xf32>
    %cst_80 = arith.constant dense<0.000000e+00> : vector<32xf32>
    %190 = vector.multi_reduction <add>, %189, %cst_80 [1] : vector<32x32xf32> to vector<32xf32>
    %191 = vector.shape_cast %190 : vector<32xf32> to vector<32x1xf32>
    %cst_81 = arith.constant 3.200000e+01 : f32
    %192 = vector.broadcast %cst_81 : f32 to vector<32x1xf32>
    %193 = arith.divf %191, %192 : vector<32x1xf32>
    %cst_82 = arith.constant 9.99999974E-6 : f32
    %194 = vector.broadcast %cst_82 : f32 to vector<32x1xf32>
    %195 = arith.addf %193, %194 : vector<32x1xf32>
    %196 = math.rsqrt %195 : vector<32x1xf32>
    %197 = vector.broadcast %196 : vector<32x1xf32> to vector<32x32xf32>
    %198 = arith.mulf %188, %197 : vector<32x32xf32>
    %199 = vector.extract_strided_slice %113 {offsets = [0, 0], sizes = [1, 32], strides = [1, 1]} : vector<2x32xf32> to vector<1x32xf32>
    %200 = vector.broadcast %199 : vector<1x32xf32> to vector<32x32xf32>
    %201 = arith.mulf %198, %200 : vector<32x32xf32>
    %202 = vector.extract_strided_slice %113 {offsets = [1, 0], sizes = [1, 32], strides = [1, 1]} : vector<2x32xf32> to vector<1x32xf32>
    %203 = vector.broadcast %202 : vector<1x32xf32> to vector<32x32xf32>
    %204 = arith.addf %201, %203 : vector<32x32xf32>
    %205 = vector.shape_cast %204 : vector<32x32xf32> to vector<2x16x32xf32>
    %c0_83 = arith.constant 0 : index
    %c0_84 = arith.constant 0 : index
    %c0_85 = arith.constant 0 : index
    %206 = vector.load %arg23[%c0_83, %c0_84, %c0_85] : memref<2x16x32xf32, #tpu.memory_space<vmem>>, vector<2x16x32xf32>
    tpu.vector_store %arg23[%c0_83, %c0_84, %c0_85], %205 {strides = array<i32>} : memref<2x16x32xf32, #tpu.memory_space<vmem>>, vector<2x16x32xf32>,
    %c0_i32_86 = arith.constant 0 : i32
    %207 = arith.cmpi eq, %arg0, %c0_i32_86 : i32
    %208 = arith.extui %207 : i1 to i32
    %c0_i32_87 = arith.constant 0 : i32
    %209 = arith.cmpi ne, %208, %c0_i32_87 : i32
    scf.if %209 {
      %c0_88 = arith.constant 0 : index
      %c0_89 = arith.constant 0 : index
      %210 = vector.load %arg19[%c0_88, %c0_89] : memref<2x32xf32, #tpu.memory_space<vmem>>, vector<2x32xf32>
      %cst_90 = arith.constant dense<0.000000e+00> : vector<32xf32>
      %211 = vector.multi_reduction <add>, %204, %cst_90 [1] : vector<32x32xf32> to vector<32xf32>
      %212 = vector.shape_cast %211 : vector<32xf32> to vector<32x1xf32>
      %cst_91 = arith.constant 3.200000e+01 : f32
      %213 = vector.broadcast %cst_91 : f32 to vector<32x1xf32>
      %214 = arith.divf %212, %213 : vector<32x1xf32>
      %215 = vector.broadcast %214 : vector<32x1xf32> to vector<32x32xf32>
      %216 = arith.subf %204, %215 : vector<32x32xf32>
      %217 = arith.mulf %216, %216 : vector<32x32xf32>
      %cst_92 = arith.constant dense<0.000000e+00> : vector<32xf32>
      %218 = vector.multi_reduction <add>, %217, %cst_92 [1] : vector<32x32xf32> to vector<32xf32>
      %219 = vector.shape_cast %218 : vector<32xf32> to vector<32x1xf32>
      %cst_93 = arith.constant 3.200000e+01 : f32
      %220 = vector.broadcast %cst_93 : f32 to vector<32x1xf32>
      %221 = arith.divf %219, %220 : vector<32x1xf32>
      %cst_94 = arith.constant 9.99999974E-6 : f32
      %222 = vector.broadcast %cst_94 : f32 to vector<32x1xf32>
      %223 = arith.addf %221, %222 : vector<32x1xf32>
      %224 = math.rsqrt %223 : vector<32x1xf32>
      %225 = vector.broadcast %224 : vector<32x1xf32> to vector<32x32xf32>
      %226 = arith.mulf %216, %225 : vector<32x32xf32>
      %227 = vector.extract_strided_slice %210 {offsets = [0, 0], sizes = [1, 32], strides = [1, 1]} : vector<2x32xf32> to vector<1x32xf32>
      %228 = vector.broadcast %227 : vector<1x32xf32> to vector<32x32xf32>
      %229 = arith.mulf %226, %228 : vector<32x32xf32>
      %230 = vector.extract_strided_slice %210 {offsets = [1, 0], sizes = [1, 32], strides = [1, 1]} : vector<2x32xf32> to vector<1x32xf32>
      %231 = vector.broadcast %230 : vector<1x32xf32> to vector<32x32xf32>
      %232 = arith.addf %229, %231 : vector<32x32xf32>
      %c0_95 = arith.constant 0 : index
      %c0_96 = arith.constant 0 : index
      %233 = vector.load %arg20[%c0_95, %c0_96] : memref<32x4xf32, #tpu.memory_space<vmem>>, vector<32x4xf32>
      %cst_97 = arith.constant dense<0.000000e+00> : vector<32x4xf32>
      %234 = tpu.matmul %232, %233, %cst_97 {dimension_numbers = #tpu.dot_dimension_numbers<[1], [0], [0], [1], [0, 0, 1, 1], [], []>} : vector<32x32xf32>, vector<32x4xf32>, vector<32x4xf32> -> vector<32x4xf32>
      %c0_98 = arith.constant 0 : index
      %c0_99 = arith.constant 0 : index
      %235 = vector.load %arg21[%c0_98, %c0_99] : memref<1x4xf32, #tpu.memory_space<vmem>>, vector<1x4xf32>
      %236 = vector.broadcast %235 : vector<1x4xf32> to vector<32x4xf32>
      %237 = arith.addf %234, %236 : vector<32x4xf32>
      %238 = vector.shape_cast %237 : vector<32x4xf32> to vector<2x16x4xf32>
      %c0_100 = arith.constant 0 : index
      %c0_101 = arith.constant 0 : index
      %c0_102 = arith.constant 0 : index
      %239 = vector.load %arg22[%c0_100, %c0_101, %c0_102] : memref<2x16x4xf32, #tpu.memory_space<vmem>>, vector<2x16x4xf32>
      tpu.vector_store %arg22[%c0_100, %c0_101, %c0_102], %238 {strides = array<i32>} : memref<2x16x4xf32, #tpu.memory_space<vmem>>, vector<2x16x4xf32>,
    } else {
    }
    return
  }
  func.func @transform_0(%arg0: i32) -> (i32, i32, i32) {
    %c0_i32 = arith.constant 0 : i32
    %c0_i32_0 = arith.constant 0 : i32
    %c0_i32_1 = arith.constant 0 : i32
    %c0_i32_2 = arith.constant 0 : i32
    return %c0_i32, %c0_i32_0, %c0_i32_1 : i32, i32, i32
  }
  func.func @transform_1(%arg0: i32) -> (i32, i32) {
    %c0_i32 = arith.constant 0 : i32
    %c0_i32_0 = arith.constant 0 : i32
    %c0_i32_1 = arith.constant 0 : i32
    return %c0_i32, %c0_i32_0 : i32, i32
  }
  func.func @transform_2(%arg0: i32) -> (i32, i32) {
    %c0_i32 = arith.constant 0 : i32
    %c0_i32_0 = arith.constant 0 : i32
    %c0_i32_1 = arith.constant 0 : i32
    return %c0_i32, %c0_i32_0 : i32, i32
  }
  func.func @transform_3(%arg0: i32) -> (i32, i32, i32) {
    %c0_i32 = arith.constant 0 : i32
    %c0_i32_0 = arith.constant 0 : i32
    %c0_i32_1 = arith.constant 0 : i32
    %c0_i32_2 = arith.constant 0 : i32
    return %c0_i32, %c0_i32_0, %c0_i32_1 : i32, i32, i32
  }
  func.func @transform_4(%arg0: i32) -> (i32, i32, i32) {
    %c0_i32 = arith.constant 0 : i32
    %c0_i32_0 = arith.constant 0 : i32
    %c0_i32_1 = arith.constant 0 : i32
    return %arg0, %c0_i32, %c0_i32_0 : i32, i32, i32
  }
  func.func @transform_5(%arg0: i32) -> (i32, i32, i32) {
    %c0_i32 = arith.constant 0 : i32
    %c0_i32_0 = arith.constant 0 : i32
    %c0_i32_1 = arith.constant 0 : i32
    return %arg0, %c0_i32, %c0_i32_0 : i32, i32, i32
  }
  func.func @transform_6(%arg0: i32) -> (i32, i32, i32) {
    %c0_i32 = arith.constant 0 : i32
    %c0_i32_0 = arith.constant 0 : i32
    %c0_i32_1 = arith.constant 0 : i32
    return %arg0, %c0_i32, %c0_i32_0 : i32, i32, i32
  }
  func.func @transform_7(%arg0: i32) -> (i32, i32, i32) {
    %c0_i32 = arith.constant 0 : i32
    %c0_i32_0 = arith.constant 0 : i32
    %c0_i32_1 = arith.constant 0 : i32
    return %arg0, %c0_i32, %c0_i32_0 : i32, i32, i32
  }
  func.func @transform_8(%arg0: i32) -> (i32, i32, i32) {
    %c0_i32 = arith.constant 0 : i32
    %c0_i32_0 = arith.constant 0 : i32
    %c0_i32_1 = arith.constant 0 : i32
    return %arg0, %c0_i32, %c0_i32_0 : i32, i32, i32
  }
  func.func @transform_9(%arg0: i32) -> (i32, i32, i32) {
    %c0_i32 = arith.constant 0 : i32
    %c0_i32_0 = arith.constant 0 : i32
    %c0_i32_1 = arith.constant 0 : i32
    return %arg0, %c0_i32, %c0_i32_0 : i32, i32, i32
  }
  func.func @transform_10(%arg0: i32) -> (i32, i32, i32) {
    %c0_i32 = arith.constant 0 : i32
    %c0_i32_0 = arith.constant 0 : i32
    %c0_i32_1 = arith.constant 0 : i32
    return %arg0, %c0_i32, %c0_i32_0 : i32, i32, i32
  }
  func.func @transform_11(%arg0: i32) -> (i32, i32, i32) {
    %c0_i32 = arith.constant 0 : i32
    %c0_i32_0 = arith.constant 0 : i32
    %c0_i32_1 = arith.constant 0 : i32
    return %arg0, %c0_i32, %c0_i32_0 : i32, i32, i32
  }
  func.func @transform_12(%arg0: i32) -> (i32, i32, i32) {
    %c0_i32 = arith.constant 0 : i32
    %c0_i32_0 = arith.constant 0 : i32
    %c0_i32_1 = arith.constant 0 : i32
    return %arg0, %c0_i32, %c0_i32_0 : i32, i32, i32
  }
  func.func @transform_13(%arg0: i32) -> (i32, i32, i32) {
    %c0_i32 = arith.constant 0 : i32
    %c0_i32_0 = arith.constant 0 : i32
    %c0_i32_1 = arith.constant 0 : i32
    return %arg0, %c0_i32, %c0_i32_0 : i32, i32, i32
  }
  func.func @transform_14(%arg0: i32) -> (i32, i32, i32) {
    %c0_i32 = arith.constant 0 : i32
    %c0_i32_0 = arith.constant 0 : i32
    %c0_i32_1 = arith.constant 0 : i32
    return %arg0, %c0_i32, %c0_i32_0 : i32, i32, i32
  }
  func.func @transform_15(%arg0: i32) -> (i32, i32, i32) {
    %c0_i32 = arith.constant 0 : i32
    %c0_i32_0 = arith.constant 0 : i32
    %c0_i32_1 = arith.constant 0 : i32
    return %arg0, %c0_i32, %c0_i32_0 : i32, i32, i32
  }
  func.func @transform_16(%arg0: i32) -> (i32, i32, i32) {
    %c0_i32 = arith.constant 0 : i32
    %c0_i32_0 = arith.constant 0 : i32
    %c0_i32_1 = arith.constant 0 : i32
    return %arg0, %c0_i32, %c0_i32_0 : i32, i32, i32
  }
  func.func @transform_17(%arg0: i32) -> (i32, i32, i32) {
    %c0_i32 = arith.constant 0 : i32
    %c0_i32_0 = arith.constant 0 : i32
    %c0_i32_1 = arith.constant 0 : i32
    return %arg0, %c0_i32, %c0_i32_0 : i32, i32, i32
  }
  func.func @transform_18(%arg0: i32) -> (i32, i32) {
    %c0_i32 = arith.constant 0 : i32
    %c0_i32_0 = arith.constant 0 : i32
    %c0_i32_1 = arith.constant 0 : i32
    return %c0_i32, %c0_i32_0 : i32, i32
  }
  func.func @transform_19(%arg0: i32) -> (i32, i32) {
    %c0_i32 = arith.constant 0 : i32
    %c0_i32_0 = arith.constant 0 : i32
    %c0_i32_1 = arith.constant 0 : i32
    return %c0_i32, %c0_i32_0 : i32, i32
  }
  func.func @transform_20(%arg0: i32) -> (i32, i32) {
    %c0_i32 = arith.constant 0 : i32
    %c0_i32_0 = arith.constant 0 : i32
    %c0_i32_1 = arith.constant 0 : i32
    return %c0_i32, %c0_i32_0 : i32, i32
  }
  func.func @transform_21(%arg0: i32) -> (i32, i32, i32) {
    %c0_i32 = arith.constant 0 : i32
    %c0_i32_0 = arith.constant 0 : i32
    %c0_i32_1 = arith.constant 0 : i32
    %c0_i32_2 = arith.constant 0 : i32
    return %c0_i32, %c0_i32_0, %c0_i32_1 : i32, i32, i32
  }
}

</mosaic_0001>

<bundles_post_ra>
// kernel: gaformer_forward.2
= control target key start
LH: loop header
LB: loop body
LE: loop exit
PB: predicated region body
PF: predicated region fallthrough
CT: control target
= control target key end

     0   :  { %s1995_s13 = smov 0   ;;  %s2286_s0 = inlined_call_operand.vmem [shape: f32[2,16,16], index: 0, kind: input, shape index: {}]   ;;  %s2287_s1 = inlined_call_operand.vmem [shape: f32[16,32], index: 1, kind: input, shape index: {}]   ;;  %s2288_s2 = inlined_call_operand.vmem [shape: f32[16,32], index: 2, kind: input, shape index: {}]   ;;  %s2289_s3 = inlined_call_operand.vmem [shape: f32[2,32,384], index: 3, kind: input, shape index: {}]   ;;  %s2290_s4 = inlined_call_operand.vmem [shape: f32[2,1,384], index: 4, kind: input, shape index: {}]   ;;  %s2291_s5 = inlined_call_operand.vmem [shape: f32[2,4,128], index: 5, kind: input, shape index: {}]   ;;  %s2292_s6 = inlined_call_operand.vmem [shape: f32[2,128,32], index: 6, kind: input, shape index: {}]   ;;  %s2293_s7 = inlined_call_operand.vmem [shape: f32[2,1,32], index: 7, kind: input, shape index: {}]   ;;  %s2294_s8 = inlined_call_operand.vmem [shape: f32[2,2,32], index: 8, kind: input, shape index: {}]   ;;  %s2295_s9 = inlined_call_operand.vmem [shape: f32[2,32], index: 9, kind: input, shape index: {}]   ;;  %s2296_s10 = inlined_call_operand.vmem [shape: f32[2,16,32], index: 10, kind: output, shape index: {}]  }
   0x1   :  { %2297 = sst [smem:[#allocation3_spill]] %s2291_s5 }
   0x2 LB: > { %s2001_s14 = sadd.s32 4294967295, %s1937_s13   ;;  %p1626_p0 = scmp.ge.s32.totalorder %s1937_s13, 1  ;;  %s1937_s13 = sphi %s1995_s13, %s20_s13  }
   0x3   : > { %p352_p1 = scmp.lt.s32.totalorder %s1937_s13, 3 }
   0x5   : > { %p353_p2 = pnand %p1626_p0, %p352_p1 }
   0x6   : > { %p405_p3 = scmp.lt.s32.totalorder (!%p353_p2), %s2001_s14, 1  ;;  %s2298_s5 = sld [smem:[#allocation3_spill]] (!%p353_p2) }
   0x7   : > { %356 = sbr.rel (%p353_p2) target bundleno = 1967 (0x7af), region = 60  ;;  %p1632_p4 = scmp.ne.s32.totalorder (!%p353_p2), %s2001_s14, 0 }
   0xe   : > { %s2007_s15 = scalar_select %p405_p3, %s2001_s14, 1 }
   0xf   : > { %433 = sbr.rel (%p1632_p4) target bundleno = 238 (0xee), region = 64  ;;  %v438_v0 = vld [vmem:[%s2288_s2] sm:$0xff] (!%p1632_p4)  ;;  %v439_v1 = vld [vmem:[%s2288_s2 + $0x8] sm:$0xff] (!%p1632_p4)  ;;  %vm440_vm0 = vcmask (!%p1632_p4), 130048   ;;  %v436_v4 = vld [vmem:[%s2286_s0 + $0x10] sm:$0xff] (!%p1632_p4)  ;;  %vm544_vm1 = vcmask (!%p1632_p4), 261120  }
  0x10   : > { %s1864_s16 = smul.u32 96, %s2007_s15  ;;  %s1628_s17 = sshll.u32 %s2007_s15, 2  ;;  %v434_v2 = vld [vmem:[%s2286_s0] sm:$0xff] (!%p1632_p4)  ;;  %v1794_v3 = vpack.c.bf16 (!%p1632_p4), %v439_v1, %v438_v0  ;;  %1711 = vmatprep.mubr.msk.f32.mxu1 (!%p1632_p4), %vm440_vm0, %v436_v4  ;;  %v435_v5 = vld [vmem:[%s2286_s0 + $0x8] sm:$0xff] (!%p1632_p4)  ;;  %v437_v6 = vld [vmem:[%s2286_s0 + $0x18] sm:$0xff] (!%p1632_p4) }
  0x11   : > { %s1865_s18 = smul.u32 3, %s2007_s15  ;;  %s2015_s21 = scalar_lea.vmem %s2298_s5, %s1628_s17  ;;  %1708 = vmatprep.mubr.msk.f32.mxu0 (!%p1632_p4), %vm440_vm0, %v434_v2  ;;  %v539_v7 = vld [vmem:[%s2287_s1 + $0x8] sm:$0xff] (!%p1632_p4)  ;;  %v538_v8 = vld [vmem:[%s2287_s1] sm:$0xff] (!%p1632_p4) }
  0x12   : > { %s2020_s24 = scalar_lea.vmem %s2289_s3, %s1864_s16  ;;  %s1653_s25 = sshll.u32 %s2007_s15, 7  ;;  %1795 = vmatprep.subr.bf16.mxu0 (!%p1632_p4), %v1794_v3  ;;  %1862 = vmatprep.subr.bf16.mxu1 (!%p1632_p4), %v1794_v3 }
  0x13   : > { %s2026_s28 = scalar_lea.vmem %s2290_s4, %s1865_s18  ;;  %s2031_s11 = scalar_lea.vmem %s2292_s6, %s1653_s25  ;;  %1797 = vmatpush3.bf16.msra.mxu0 (!%p1632_p4), %v1794_v3  ;;  %1863 = vmatpush3.bf16.msra.mxu1 (!%p1632_p4), %v1794_v3 }
  0x14   : > { %s425_s17 = scalar_lea.vmem %s2293_s7, %s2007_s15  ;;  %s1631_s20 = sshll.u32 %s2007_s15, 1 }
  0x15   : > { %s2041_s16 = scalar_lea.vmem %s2294_s8, %s1631_s20 }
  0x16   : > { %1709 = vmatmul.mubr.msk.f32.vlgmr.msra.gmra.mrb[0].mxu0 %vm440_vm0, %v435_v5  ;;  %1712 = vmatmul.mubr.msk.f32.vlgmr.msra.gmra.mrb[0].mxu1 %vm440_vm0, %v437_v6 }
  0xe9   : > { %v1710_v9 = vpop.f32.mrb[0].mxu0  ;;  %v1713_v10 = vpop.f32.mrb[0].mxu1 }
  0xea   : > { %v541_v11 = vadd.f32 %v1710_v9, %v539_v7  ;;  %v543_v12 = vadd.f32 %v1713_v10, %v539_v7  ;;  %v519_v13 = vpop.f32.mrb[1].mxu0  ;;  %v529_v14 = vpop.f32.mrb[1].mxu1 }
  0xeb   : > { %v540_v15 = vadd.f32 %v538_v8, %v519_v13  ;;  %v542_v16 = vadd.f32 %v538_v8, %v529_v14 }
  0xec   : > { %546 = vst.msk [vmem:[#allocation2 + $0x8] sm:$0xff] %vm544_vm1, %v541_v11  ;;  %548 = vst.msk [vmem:[#allocation2 + $0x18] sm:$0xff] %vm544_vm1, %v543_v12 }
  0xed   : > { %545 = vst.msk [vmem:[#allocation2] sm:$0xff] %vm544_vm1, %v540_v15  ;;  %547 = vst.msk [vmem:[#allocation2 + $0x10] sm:$0xff] %vm544_vm1, %v542_v16 }
  0xee PF: > { %v554_v17 = vld [vmem:[%s2020_s24 + $0x8] sm:$0xff]  ;;  %v557_v18 = vld [vmem:[%s2020_s24 + $0x20] sm:$0xff]  ;;  %v556_v21 = vld [vmem:[%s2020_s24 + $0x18] sm:$0xff]  ;;  %v1939_v24 = vmov 0.0   ;;  %vm601_vm2 = vcmask 261120   ;;  %v586_v40 = vlaneseq  ;;  %vm1078_vm3 = vcmask 130048  }
  0xef   : > { %v553_v19 = vld [vmem:[%s2020_s24] sm:$0xff]  ;;  %v1798_v20 = vpack.c.bf16 %v557_v18, %v554_v17  ;;  %v560_v22 = vld [vmem:[%s2020_s24 + $0x38] sm:$0xff]  ;;  %v563_v23 = vld [vmem:[%s2020_s24 + $0x50] sm:$0xff]  ;;  %678 = vmatprep.mubr.f32.mxu1 %v1939_v24  ;;  %p1650_p5 = scmp.ne.s32.totalorder %s2001_s14, 1 }
  0xf0   : > { %v1800_v25 = vpack.c.bf16 %v556_v21, %v553_v19  ;;  %v1802_v26 = vpack.c.bf16 %v563_v23, %v560_v22  ;;  %v559_v27 = vld [vmem:[%s2020_s24 + $0x30] sm:$0xff]  ;;  %v562_v28 = vld [vmem:[%s2020_s24 + $0x48] sm:$0xff]  ;;  %v561_v33 = vld [vmem:[%s2020_s24 + $0x40] sm:$0xff]  ;;  %v2104_v41 = vshrl.u32 %v586_v40, 7 }
  0xf1   : > { %1799 = vmatprep.subr.bf16.mxu1 %v1798_v20  ;;  %v555_v29 = vld [vmem:[%s2020_s24 + $0x10] sm:$0xff]  ;;  %v558_v30 = vld [vmem:[%s2020_s24 + $0x28] sm:$0xff]  ;;  %v1804_v31 = vpack.c.bf16 %v562_v28, %v559_v27  ;;  %v564_v34 = vld [vmem:[%s2020_s24 + $0x58] sm:$0xff] }
  0xf2   : > { %1801 = vmatpush1.bf16.msra.mxu1 %v1800_v25  ;;  %v1806_v32 = vpack.c.bf16 %v558_v30, %v555_v29  ;;  %v1810_v36 = vpack.c.bf16 %v564_v34, %v561_v33  ;;  %v2107_v42 = vsub.s32 1, %v2104_v41  ;;  %v2110_v43 = vld [vmem:[%s2026_s28] sm:$0x7]  ;;  %v596_v57 = vsub.s32 2, %v2104_v41 }
  0xf3   : > { %1803 = vmatprep.subr.bf16.mxu1 %v1802_v26  ;;  %v2084_v37 = vld [vmem:[#allocation2 + $0x8] sm:$0xff]  ;;  %v2092_v39 = vld [vmem:[#allocation2 + $0x18] sm:$0xff] }
  0xf4   : > { %v2080_v35 = vld [vmem:[#allocation2] sm:$0xff]  ;;  %v2088_v38 = vld [vmem:[#allocation2 + $0x10] sm:$0xff]  ;;  %v593_v44 = vrot.slane %v2110_v43, %v2107_v42  ;;  %v597_v2 = vrot.slane %v2110_v43, %v596_v57 }
  0xf6   : > { %1805 = vmatpush1.bf16.msra.mxu1 %v1804_v31 }
  0xf7   : > { %1807 = vmatprep.subr.bf16.mxu1 %v1806_v32 }
  0xf9   : > { %1637 = vmatmul.mubr.msk.f32.vlgmr.msra.gmra.mrb[0].mxu1 %vm601_vm2, %v2080_v35 }
  0xfa   : > { %1809 = vmatpush3.bf16.msra.mxu1 %v1806_v32  ;;  %684 = vmatprep.mubr.f32.mxu1 %v1939_v24 }
  0xfb   : > { %1811 = vmatprep.subr.bf16.mxu1 %v1810_v36 }
  0xfd   : > { %1638 = vmatmul.mubr.msk.f32.gmra.mrb[2].mxu1 %vm601_vm2, %v2084_v37 }
  0xfe   : > { %690 = vmatprep.mubr.f32.mxu1 %v1939_v24  ;;  %1813 = vmatpush3.bf16.msra.mxu1 %v1810_v36 }
 0x101   : > { %1639 = vmatmul.mubr.msk.f32.gmra.mrb[4].mxu1 %vm601_vm2, %v2088_v38 }
 0x102   : > { %696 = vmatprep.mubr.f32.mxu1 %v1939_v24 }
 0x105   : > { %1640 = vmatmul.mubr.msk.f32.gmra.mrb[6].mxu1 %vm601_vm2, %v2092_v39 }
 0x106   : > { %1722 = vmatprep.mubr.msk.f32.mxu1 %vm601_vm2, %v2080_v35 }
 0x109   : > { %1723 = vmatmul.mubr.msk.f32.vlgmr.msra.gmra.mrb[8].mxu1 %vm601_vm2, %v2084_v37 }
 0x10a   : > { %1725 = vmatprep.mubr.msk.f32.mxu1 %vm601_vm2, %v2088_v38 }
 0x10d   : > { %1726 = vmatmul.mubr.msk.f32.gmra.mrb[10].mxu1 %vm601_vm2, %v2092_v39 }
 0x1cc   : > { %v2114_v45 = vpop.f32.mrb[0].mxu1 }
 0x1cd   : > { %v682_v46 = vpop.f32.mrb[1].mxu1 }
 0x1ce   : > { %v2116_v47 = vadd.f32 %v682_v46, %v593_v44 }
 0x1d0   : > { %v789_v48 = vmul.f32 %v2116_v47, %v2116_v47  ;;  %v2120_v49 = vpop.f32.mrb[2].mxu1 }
 0x1d1   : > { %v688_v50 = vpop.f32.mrb[3].mxu1 }
 0x1d2   : > { %v801_v51 = vmul.f32 %v789_v48, %v2116_v47  ;;  %v2123_v52 = vadd.f32 %v688_v50, %v593_v44 }
 0x1d4   : > { %v813_v53 = vmul.f32 0.044715, %v801_v51  ;;  %v792_v54 = vmul.f32 %v2123_v52, %v2123_v52  ;;  %v2127_v55 = vpop.f32.mrb[4].mxu1 }
 0x1d5   : > { %v694_v56 = vpop.f32.mrb[5].mxu1 }
 0x1d6   : > { %v825_v58 = vadd.f32 %v813_v53, %v2116_v47  ;;  %v804_v59 = vmul.f32 %v792_v54, %v2123_v52  ;;  %v2132_v60 = vadd.f32 %v694_v56, %v593_v44 }
 0x1d8   : > { %v837_v61 = vmul.f32 0.7978846, %v825_v58  ;;  %v816_v62 = vmul.f32 0.044715, %v804_v59  ;;  %v795_v63 = vmul.f32 %v2132_v60, %v2132_v60  ;;  %v2136_v0 = vpop.f32.mrb[6].mxu1 }
 0x1d9   : > { %v700_v1 = vpop.f32.mrb[7].mxu1 }
 0x1da   : > { %1875 = vtanh.f32 %v837_v61  ;;  %v828_v3 = vadd.f32 %v816_v62, %v2123_v52  ;;  %v807_v4 = vmul.f32 %v795_v63, %v2132_v60  ;;  %v2143_v5 = vadd.f32 %v700_v1, %v593_v44 }
 0x1dc   : > { %v840_v6 = vmul.f32 0.7978846, %v828_v3  ;;  %v819_v7 = vmul.f32 0.044715, %v807_v4  ;;  %v798_v8 = vmul.f32 %v2143_v5, %v2143_v5  ;;  %v1724_v9 = vpop.f32.mrb[8].mxu1 }
 0x1dd   : > { %v2147_v10 = vadd.f32 %v1724_v9, %v597_v2  ;;  %v769_v11 = vpop.f32.mrb[9].mxu1 }
 0x1de   : > { %1877 = vtanh.f32 %v840_v6  ;;  %v831_v12 = vadd.f32 %v819_v7, %v2132_v60  ;;  %v810_v13 = vmul.f32 %v798_v8, %v2143_v5  ;;  %v2151_v14 = vadd.f32 %v769_v11, %v597_v2  ;;  %v566_v11 = vld [vmem:[%s2015_s21] sm:$0xf] }
 0x1df   : > { %v793_v15 = vmul.f32 %v2147_v10, %v2147_v10 }
 0x1e0   : > { %v843_v16 = vmul.f32 0.7978846, %v831_v12  ;;  %v822_v17 = vmul.f32 0.044715, %v810_v13  ;;  %v790_v18 = vmul.f32 %v2151_v14, %v2151_v14  ;;  %v1727_v19 = vpop.f32.mrb[10].mxu1 }
 0x1e1   : > { %v805_v20 = vmul.f32 %v793_v15, %v2147_v10  ;;  %v2158_v21 = vadd.f32 %v1727_v19, %v597_v2  ;;  %v779_v22 = vpop.f32.mrb[11].mxu1 }
 0x1e2   : > { %1879 = vtanh.f32 %v843_v16  ;;  %v834_v23 = vadd.f32 %v822_v17, %v2143_v5  ;;  %v802_v24 = vmul.f32 %v790_v18, %v2151_v14  ;;  %v2162_v25 = vadd.f32 %v779_v22, %v597_v2 }
 0x1e3   : > { %v817_v26 = vmul.f32 0.044715, %v805_v20  ;;  %v799_v27 = vmul.f32 %v2158_v21, %v2158_v21  ;;  %v922_v16 = vsub.s32 3, %v2104_v41  ;;  %v2179_v17 = vsub.s32 0, %v2104_v41 }
 0x1e4   : > { %v1876_v28 = vpop.eup %1875  ;;  %v846_v29 = vmul.f32 0.7978846, %v834_v23  ;;  %v814_v30 = vmul.f32 0.044715, %v802_v24  ;;  %v796_v31 = vmul.f32 %v2162_v25, %v2162_v25  ;;  %v915_v20 = vrot.slane %v566_v11, %v596_v57 }
 0x1e5   : > { %v829_v32 = vadd.f32 %v817_v26, %v2147_v10  ;;  %v811_v33 = vmul.f32 %v799_v27, %v2158_v21  ;;  %v861_v34 = vadd.f32 1.0, %v1876_v28  ;;  %v899_v23 = vrot.slane %v566_v11, %v2179_v17 }
 0x1e6   : > { %1881 = vtanh.f32 %v846_v29  ;;  %v826_v36 = vadd.f32 %v814_v30, %v2151_v14  ;;  %v808_v40 = vmul.f32 %v796_v31, %v2162_v25  ;;  %v923_v29 = vrot.slane %v566_v11, %v922_v16 }
 0x1e7   : > { %v841_v44 = vmul.f32 0.7978846, %v829_v32  ;;  %v823_v46 = vmul.f32 0.044715, %v811_v33  ;;  %v873_v56 = vmul.f32 0.5, %v861_v34 }
 0x1e8   : > { %v1878_v48 = vpop.eup %1877  ;;  %v838_v50 = vmul.f32 0.7978846, %v826_v36  ;;  %v820_v51 = vmul.f32 0.044715, %v808_v40 }
 0x1e9   : > { %1883 = vtanh.f32 %v841_v44  ;;  %v835_v53 = vadd.f32 %v823_v46, %v2158_v21  ;;  %v864_v54 = vadd.f32 1.0, %v1878_v48  ;;  %v885_v1 = vmul.f32 %v873_v56, %v2116_v47 }
 0x1ea   : > { %1885 = vtanh.f32 %v838_v50  ;;  %v832_v58 = vadd.f32 %v820_v51, %v2162_v25 }
 0x1eb   : > { %v847_v59 = vmul.f32 0.7978846, %v835_v53  ;;  %v876_v61 = vmul.f32 0.5, %v864_v54 }
 0x1ec   : > { %v1880_v62 = vpop.eup %1879  ;;  %v844_v63 = vmul.f32 0.7978846, %v832_v58 }
 0x1ed   : > { %1887 = vtanh.f32 %v847_v59  ;;  %v888_v2 = vmul.f32 %v876_v61, %v2123_v52  ;;  %v867_v3 = vadd.f32 1.0, %v1880_v62 }
 0x1ee   : > { %1889 = vtanh.f32 %v844_v63 }
 0x1ef   : > { %v1822_v4 = vpack.c.bf16 %v888_v2, %v885_v1  ;;  %v879_v8 = vmul.f32 0.5, %v867_v3 }
 0x1f0   : > { %v1882_v6 = vpop.eup %1881 }
 0x1f1   : > { %v870_v7 = vadd.f32 1.0, %v1882_v6  ;;  %v891_v47 = vmul.f32 %v879_v8, %v2132_v60  ;;  %v907_v60 = vrot.slane %v566_v11, %v2107_v42 }
 0x1f3   : > { %v1884_v9 = vpop.eup %1883  ;;  %v882_v12 = vmul.f32 0.5, %v870_v7 }
 0x1f4   : > { %v1886_v13 = vpop.eup %1885  ;;  %v865_v15 = vadd.f32 1.0, %v1884_v9 }
 0x1f5   : > { %v862_v18 = vadd.f32 1.0, %v1886_v13  ;;  %v894_v52 = vmul.f32 %v882_v12, %v2143_v5 }
 0x1f6   : > { %v877_v19 = vmul.f32 0.5, %v865_v15 }
 0x1f7   : > { %v1888_v22 = vpop.eup %1887  ;;  %v874_v24 = vmul.f32 0.5, %v862_v18  ;;  %v2186_v26 = vpack.c.bf16 %v894_v52, %v891_v47 }
 0x1f8   : > { %v1890_v27 = vpop.eup %1889  ;;  %v889_v28 = vmul.f32 %v877_v19, %v2147_v10  ;;  %v871_v30 = vadd.f32 1.0, %v1888_v22 }
 0x1f9   : > { %v886_v31 = vmul.f32 %v874_v24, %v2151_v14  ;;  %v868_v5 = vadd.f32 1.0, %v1890_v27 }
 0x1fa   : > { %v917_v32 = vmul.f32 %v915_v20, %v889_v28  ;;  %v883_v33 = vmul.f32 0.5, %v871_v30  ;;  %v901_v58 = vmul.f32 %v899_v23, %v889_v28 }
 0x1fb   : > { %v900_v41 = vmul.f32 %v899_v23, %v886_v31  ;;  %v916_v57 = vmul.f32 %v915_v20, %v886_v31  ;;  %v880_v34 = vmul.f32 0.5, %v868_v5  ;;  %v568_v5 = vld [vmem:[%s2031_s11 + $0x8] sm:$0xff] }
 0x1fc   : > { %v925_v36 = vadd.f32 %v923_v29, %v917_v32  ;;  %v895_v40 = vmul.f32 %v883_v33, %v2158_v21  ;;  %v909_v21 = vadd.f32 %v907_v60, %v901_v58  ;;  %v569_v32 = vld [vmem:[%s2031_s11 + $0x10] sm:$0xff] }
 0x1fd   : > { %v908_v44 = vadd.f32 %v907_v60, %v900_v41  ;;  %v924_v46 = vadd.f32 %v923_v29, %v916_v57  ;;  %v892_v48 = vmul.f32 %v880_v34, %v2162_v25  ;;  %v570_v41 = vld [vmem:[%s2031_s11 + $0x18] sm:$0xff]  ;;  %v572_v34 = vld [vmem:[%s2031_s11 + $0x28] sm:$0xff] }
 0x1fe   : > { %v919_v10 = vmul.f32 %v915_v20, %v895_v40  ;;  %v903_v61 = vmul.f32 %v899_v23, %v895_v40  ;;  %v1834_v57 = vpack.c.bf16 %v570_v41, %v569_v32  ;;  %v573_v40 = vld [vmem:[%s2031_s11 + $0x30] sm:$0xff] }
 0x1ff   : > { %1732 = vmatprep.mubr.f32.mxu1 %v908_v44  ;;  %v1814_v50 = vpack.c.bf16 %v925_v36, %v924_v46  ;;  %v902_v51 = vmul.f32 %v899_v23, %v892_v48  ;;  %v918_v14 = vmul.f32 %v915_v20, %v892_v48  ;;  %v574_v44 = vld [vmem:[%s2031_s11 + $0x38] sm:$0xff]  ;;  %v575_v48 = vld [vmem:[%s2031_s11 + $0x40] sm:$0xff] }
 0x200   : > { %v927_v53 = vadd.f32 %v923_v29, %v919_v10  ;;  %v911_v25 = vadd.f32 %v907_v60, %v903_v61  ;;  %v1842_v46 = vpack.c.bf16 %v574_v44, %v573_v40  ;;  %v576_v10 = vld [vmem:[%s2031_s11 + $0x48] sm:$0xff] }
 0x201   : > { %1815 = vmatprep.subr.bf16.mxu1 %v1814_v50  ;;  %v910_v54 = vadd.f32 %v907_v60, %v902_v51  ;;  %v926_v56 = vadd.f32 %v923_v29, %v918_v14  ;;  %v567_v60 = vld [vmem:[%s2031_s11] sm:$0xff]  ;;  %v577_v51 = vld [vmem:[%s2031_s11 + $0x50] sm:$0xff]  ;;  %v578_v14 = vld [vmem:[%s2031_s11 + $0x58] sm:$0xff] }
 0x202   : > { %1817 = vmatpush3.bf16.xpose.msra.mxu1 %v1814_v50  ;;  %v1830_v33 = vpack.c.bf16 %v568_v5, %v567_v60  ;;  %v1846_v50 = vpack.c.bf16 %v576_v10, %v575_v48 }
 0x203   : > { %1739 = vmatprep.mubr.f32.mxu0 %v910_v54  ;;  %1823 = vmatprep.subr.bf16.mxu1 %v1822_v4  ;;  %v1818_v59 = vpack.c.bf16 %v927_v53, %v926_v56  ;;  %v1850_v53 = vpack.c.bf16 %v578_v14, %v577_v51  ;;  %v579_v54 = vld [vmem:[%s2031_s11 + $0x60] sm:$0xff]  ;;  %v580_v56 = vld [vmem:[%s2031_s11 + $0x68] sm:$0xff] }
 0x204   : > { %v1854_v58 = vpack.c.bf16 %v580_v56, %v579_v54 }
 0x205   : > { %1819 = vmatprep.subr.bf16.mxu0 %v1818_v59 }
 0x206   : > { %1821 = vmatpush3.bf16.xpose.msra.mxu0 %v1818_v59  ;;  %v581_v59 = vld [vmem:[%s2031_s11 + $0x70] sm:$0xff] }
 0x207   : > { %1831 = vmatprep.subr.bf16.mxu0 %v1830_v33 }
 0x209   : > { %1733 = vmatmul.mubr.f32.vlgmr.msra.gmra.mrb[12].mxu1 %v909_v21  ;;  %v582_v21 = vld [vmem:[%s2031_s11 + $0x78] sm:$0xff] }
 0x20a   : > { %1825 = vmatpush3.bf16.msra.mxu1 %v1822_v4  ;;  %v1858_v61 = vpack.c.bf16 %v582_v21, %v581_v59 }
 0x20b   : > { %1827 = vmatprep.subr.bf16.mxu1 %v2186_v26 }
 0x20d   : > { %1740 = vmatmul.mubr.f32.vlgmr.msra.gmra.mrb[0].mxu0 %v911_v25  ;;  %v589_v25 = vrot.slane %v2110_v43, %v2179_v17 }
 0x20e   : > { %1833 = vmatpush3.bf16.msra.mxu0 %v1830_v33 }
 0x20f   : > { %1835 = vmatprep.subr.bf16.mxu0 %v1834_v57 }
 0x212   : > { %1837 = vmatpush3.bf16.msra.mxu0 %v1834_v57 }
 0x2dc   : > { %v1734_v62 = vpop.f32.mrb[12].mxu1 }
 0x2dd   : > { %v994_v63 = vpop.f32.mrb[13].mxu1  ;;  %v1082_v7 = vsel %vm1078_vm3, %v1734_v62, -inf }
 0x2de   : > { %v1079_v1 = vsel %vm1078_vm3, %v994_v63, -inf }
 0x2df   : > { %1080 = vmax.xlane.f32.xlu0 %v1079_v1 }
 0x2e0   : > { %v1741_v2 = vpop.f32.mrb[0].mxu0 }
 0x2e1   : > { %v1069_v3 = vpop.f32.mrb[1].mxu0  ;;  %v1088_v4 = vsel %vm1078_vm3, %v1741_v2, -inf }
 0x2e2   : > { %v1085_v6 = vsel %vm1078_vm3, %v1069_v3, -inf }
 0x2e3   : > { %1086 = vmax.xlane.f32.xlu1 %v1085_v6  ;;  %1083 = vmax.xlane.f32.xlu0 %v1082_v7  ;;  %v693_v6 = vadd.f32 %v2127_v55, %v589_v25 }
 0x2e7   : > { %1089 = vmax.xlane.f32.xlu1 %v1088_v4 }
 0x36c   : > { %v1081_v8 = vpop.xlane.xlu0 %1080 }
 0x36d   : > { %v1091_v9 = vsub.f32 %v994_v63, %v1081_v8  ;;  %v681_v63 = vadd.f32 %v2114_v45, %v589_v25 }
 0x36f   : > { %v1095_v11 = vmul.f32 1.442695, %v1091_v9  ;;  %v794_v9 = vmul.f32 %v693_v6, %v693_v6 }
 0x370   : > { %v1087_v12 = vpop.xlane.xlu1 %1086  ;;  %v1084_v13 = vpop.xlane.xlu0 %1083 }
 0x371   : > { %1891 = vpow2.f32 %v1095_v11  ;;  %v1093_v15 = vsub.f32 %v1069_v3, %v1087_v12  ;;  %v1092_v16 = vsub.f32 %v1734_v62, %v1084_v13  ;;  %v687_v62 = vadd.f32 %v2120_v49, %v589_v25 }
 0x372   : > { %v788_v3 = vmul.f32 %v681_v63, %v681_v63 }
 0x373   : > { %v1099_v18 = vmul.f32 1.442695, %v1093_v15  ;;  %v1097_v47 = vmul.f32 1.442695, %v1092_v16  ;;  %v791_v1 = vmul.f32 %v687_v62, %v687_v62  ;;  %v806_v15 = vmul.f32 %v794_v9, %v693_v6 }
 0x374   : > { %v1090_v52 = vpop.xlane.xlu1 %1089  ;;  %v800_v8 = vmul.f32 %v788_v3, %v681_v63  ;;  %v1649_v3 = vld [vmem:[%s425_s17] ss:$0 sm:$0xff] }
 0x375   : > { %1893 = vpow2.f32 %v1099_v18  ;;  %v1094_v19 = vsub.f32 %v1741_v2, %v1090_v52  ;;  %v699_v2 = vadd.f32 %v2136_v0, %v589_v25  ;;  %v803_v7 = vmul.f32 %v791_v1, %v687_v62 }
 0x376   : > { %1895 = vpow2.f32 %v1097_v47  ;;  %v812_v13 = vmul.f32 0.044715, %v800_v8  ;;  %v818_v49 = vmul.f32 0.044715, %v806_v15 }
 0x377   : > { %v1101_v20 = vmul.f32 1.442695, %v1094_v19  ;;  %v797_v4 = vmul.f32 %v699_v2, %v699_v2  ;;  %v815_v11 = vmul.f32 0.044715, %v803_v7 }
 0x378   : > { %v824_v18 = vadd.f32 %v812_v13, %v681_v63  ;;  %v830_v19 = vadd.f32 %v818_v49, %v693_v6 }
 0x379   : > { %1897 = vpow2.f32 %v1101_v20  ;;  %v809_v12 = vmul.f32 %v797_v4, %v699_v2  ;;  %v827_v16 = vadd.f32 %v815_v11, %v687_v62 }
 0x37a   : > { %v836_v52 = vmul.f32 0.7978846, %v824_v18  ;;  %v842_v55 = vmul.f32 0.7978846, %v830_v19 }
 0x37b   : > { %v1892_v22 = vpop.eup %1891  ;;  %v821_v43 = vmul.f32 0.044715, %v809_v12  ;;  %v839_v47 = vmul.f32 0.7978846, %v827_v16 }
 0x37c   : > { %1746 = vmatprep.mubr.msk.f32.mxu1 %vm1078_vm3, %v1892_v22  ;;  %v1103_v23 = vsel %vm1078_vm3, %v1892_v22, 0.0 }
 0x37d   : > { %1104 = vadd.xlane.f32.xlu0 %v1103_v23  ;;  %v833_v45 = vadd.f32 %v821_v43, %v699_v2  ;;  %1899 = vtanh.f32 %v839_v47 }
 0x37e   : > { %1901 = vtanh.f32 %v836_v52 }
 0x37f   : > { %v1894_v24 = vpop.eup %1893  ;;  %v845_v0 = vmul.f32 0.7978846, %v833_v45 }
 0x380   : > { %v1896_v27 = vpop.eup %1895  ;;  %v1109_v28 = vsel %vm1078_vm3, %v1894_v24, 0.0 }
 0x381   : > { %1747 = vmatmul.mubr.msk.f32.vlgmr.msra.gmra.mrb[14].mxu1 %vm1078_vm3, %v1896_v27  ;;  %1110 = vadd.xlane.f32.xlu0 %v1109_v28  ;;  %v1106_v29 = vsel %vm1078_vm3, %v1896_v27, 0.0  ;;  %1903 = vtanh.f32 %v845_v0 }
 0x382   : > { %1829 = vmatpush3.bf16.msra.mxu1 %v2186_v26  ;;  %1107 = vadd.xlane.f32.xlu1 %v1106_v29  ;;  %v571_v26 = vld [vmem:[%s2031_s11 + $0x20] sm:$0xff]  ;;  %1905 = vtanh.f32 %v842_v55 }
 0x383   : > { %v1898_v30 = vpop.eup %1897  ;;  %1753 = vmatprep.mubr.msk.f32.mxu1 %vm1078_vm3, %v1894_v24  ;;  %v1838_v36 = vpack.c.bf16 %v572_v34, %v571_v26 }
 0x384   : > { %v1112_v31 = vsel %vm1078_vm3, %v1898_v30, 0.0 }
 0x385   : > { %1754 = vmatmul.mubr.msk.f32.vlgmr.msra.gmra.mrb[16].mxu1 %vm1078_vm3, %v1898_v30  ;;  %1839 = vmatprep.subr.bf16.mxu0 %v1838_v36 }
 0x386   : > { %1113 = vadd.xlane.f32.xlu1 %v1112_v31  ;;  %1841 = vmatpush3.bf16.msra.mxu0 %v1838_v36 }
 0x387   : > { %1843 = vmatprep.subr.bf16.mxu0 %v1842_v46  ;;  %v1900_v23 = vpop.eup %1899 }
 0x388   : > { %v1902_v24 = vpop.eup %1901  ;;  %v863_v29 = vadd.f32 1.0, %v1900_v23 }
 0x389   : > { %v860_v31 = vadd.f32 1.0, %v1902_v24 }
 0x38a   : > { %1845 = vmatpush3.bf16.msra.mxu0 %v1842_v46  ;;  %v875_v5 = vmul.f32 0.5, %v863_v29 }
 0x38b   : > { %1847 = vmatprep.subr.bf16.mxu0 %v1846_v50  ;;  %v1904_v30 = vpop.eup %1903  ;;  %v872_v33 = vmul.f32 0.5, %v860_v31 }
 0x38c   : > { %v1906_v60 = vpop.eup %1905  ;;  %v869_v32 = vadd.f32 1.0, %v1904_v30  ;;  %v887_v36 = vmul.f32 %v875_v5, %v687_v62 }
 0x38d   : > { %v866_v41 = vadd.f32 1.0, %v1906_v60  ;;  %v884_v48 = vmul.f32 %v872_v33, %v681_v63 }
 0x38e   : > { %1849 = vmatpush3.bf16.msra.mxu0 %v1846_v50  ;;  %v881_v46 = vmul.f32 0.5, %v869_v32 }
 0x38f   : > { %1851 = vmatprep.subr.bf16.mxu0 %v1850_v53  ;;  %v878_v50 = vmul.f32 0.5, %v866_v41 }
 0x392   : > { %1853 = vmatpush3.bf16.msra.mxu0 %v1850_v53 }
 0x393   : > { %1855 = vmatprep.subr.bf16.mxu0 %v1854_v58 }
 0x396   : > { %1857 = vmatpush3.bf16.msra.mxu0 %v1854_v58  ;;  %v893_v58 = vmul.f32 %v881_v46, %v699_v2 }
 0x397   : > { %1859 = vmatprep.subr.bf16.mxu0 %v1858_v61 }
 0x39a   : > { %1861 = vmatpush3.bf16.msra.mxu0 %v1858_v61  ;;  %v890_v61 = vmul.f32 %v878_v50, %v693_v6  ;;  %v584_v50 = vld [vmem:[%s2041_s16] sm:$0x3] }
 0x40a   : > { %v1105_v22 = vpop.xlane.xlu0 %1104 }
 0x40e   : > { %v1111_v28 = vpop.xlane.xlu0 %1110 }
 0x40f   : > { %v1108_v20 = vpop.xlane.xlu1 %1107 }
 0x410   : > { %1907 = vrcp.f32 %v1108_v20 }
 0x411   : > { %1909 = vrcp.f32 %v1105_v22 }
 0x413   : > { %v1114_v27 = vpop.xlane.xlu1 %1113 }
 0x414   : > { %1911 = vrcp.f32 %v1114_v27 }
 0x415   : > { %1913 = vrcp.f32 %v1111_v28 }
 0x41a   : > { %v1908_v57 = vpop.eup %1907 }
 0x41b   : > { %v1910_v34 = vpop.eup %1909 }
 0x41e   : > { %v1912_v14 = vpop.eup %1911 }
 0x41f   : > { %v1914_v56 = vpop.eup %1913 }
 0x454   : > { %v1748_v26 = vpop.f32.mrb[14].mxu1 }
 0x455   : > { %v1282_v40 = vmul.f32 %v1908_v57, %v1748_v26  ;;  %v1191_v44 = vpop.f32.mrb[15].mxu1 }
 0x456   : > { %v1281_v10 = vmul.f32 %v1910_v34, %v1191_v44 }
 0x457   : > { %v1286_v51 = vmul.f32 %v1282_v40, %v887_v36 }
 0x458   : > { %v1285_v53 = vmul.f32 %v1281_v10, %v884_v48  ;;  %v1755_v54 = vpop.f32.mrb[16].mxu1 }
 0x459   : > { %v1284_v59 = vmul.f32 %v1912_v14, %v1755_v54  ;;  %v1272_v21 = vpop.f32.mrb[17].mxu1  ;;  %v1452_v54 = vrot.slane %v584_v50, %v2107_v42 }
 0x45a   : > { %v1283_v25 = vmul.f32 %v1914_v56, %v1272_v21  ;;  %1788 = vmatprep.mubr.f32.mxu0 %v1285_v53 }
 0x45b   : > { %v1288_v1 = vmul.f32 %v1284_v59, %v893_v58  ;;  %1789 = vmatmul.mubr.f32.vlgmr.msra.gmra.mrb[2].mxu0 %v1286_v51  ;;  %v1444_v51 = vrot.slane %v584_v50, %v2179_v17 }
 0x45c   : > { %v1287_v62 = vmul.f32 %v1283_v25, %v890_v61 }
 0x45e   : > { %1791 = vmatprep.mubr.f32.mxu0 %v1287_v62 }
 0x45f   : > { %1792 = vmatmul.mubr.f32.gmra.mrb[4].mxu0 %v1288_v1 }
 0x52e   : > { %v1790_v63 = vpop.f32.mrb[2].mxu0 }
 0x52f   : > { %v1375_v7 = vadd.f32 %v1790_v63, %v2084_v37  ;;  %v1355_v4 = vpop.f32.mrb[3].mxu0 }
 0x530   : > { %v1374_v2 = vadd.f32 %v1355_v4, %v2080_v35 }
 0x531   : > { %v1385_v8 = vadd.f32 %v1649_v3, %v1375_v7 }
 0x532   : > { %v1793_v6 = vpop.f32.mrb[4].mxu0  ;;  %v1384_v9 = vadd.f32 %v1649_v3, %v1374_v2 }
 0x533   : > { %v1377_v11 = vadd.f32 %v1793_v6, %v2092_v39  ;;  %v1365_v12 = vpop.f32.mrb[5].mxu0  ;;  %v1391_v13 = vsel %vm601_vm2, %v1385_v8, 0.0 }
 0x534   : > { %v1376_v15 = vadd.f32 %v1365_v12, %v2088_v38  ;;  %1392 = vadd.xlane.f32.xlu1 %v1391_v13  ;;  %v1388_v16 = vsel %vm601_vm2, %v1384_v9, 0.0 }
 0x535   : > { %1389 = vadd.xlane.f32.xlu0 %v1388_v16  ;;  %v1387_v43 = vadd.f32 %v1649_v3, %v1377_v11 }
 0x536   : > { %v1386_v18 = vadd.f32 %v1649_v3, %v1376_v15 }
 0x537   : > { %v1397_v37 = vsel %vm601_vm2, %v1387_v43, 0.0 }
 0x538   : > { %1398 = vadd.xlane.f32.xlu1 %v1397_v37  ;;  %v1394_v35 = vsel %vm601_vm2, %v1386_v18, 0.0 }
 0x539   : > { %1395 = vadd.xlane.f32.xlu0 %v1394_v35 }
 0x5c1   : > { %v1393_v49 = vpop.xlane.xlu1 %1392 }
 0x5c2   : > { %v1402_v47 = vmul.f32 0.03125, %v1393_v49  ;;  %v1390_v39 = vpop.xlane.xlu0 %1389 }
 0x5c3   : > { %v1401_v45 = vmul.f32 0.03125, %v1390_v39 }
 0x5c4   : > { %v1406_v52 = vsub.f32 %v1385_v8, %v1402_v47 }
 0x5c5   : > { %v1405_v19 = vsub.f32 %v1384_v9, %v1401_v45  ;;  %v1399_v0 = vpop.xlane.xlu1 %1398 }
 0x5c6   : > { %v1404_v38 = vmul.f32 0.03125, %v1399_v0  ;;  %v1396_v55 = vpop.xlane.xlu0 %1395  ;;  %v1410_v20 = vmul.f32 %v1406_v52, %v1406_v52 }
 0x5c7   : > { %v1403_v22 = vmul.f32 0.03125, %v1396_v55  ;;  %v1409_v23 = vmul.f32 %v1405_v19, %v1405_v19 }
 0x5c8   : > { %v1408_v24 = vsub.f32 %v1387_v43, %v1404_v38  ;;  %v1416_v27 = vsel %vm601_vm2, %v1410_v20, 0.0 }
 0x5c9   : > { %v1407_v28 = vsub.f32 %v1386_v18, %v1403_v22  ;;  %1417 = vadd.xlane.f32.xlu1 %v1416_v27  ;;  %v1413_v29 = vsel %vm601_vm2, %v1409_v23, 0.0 }
 0x5ca   : > { %1414 = vadd.xlane.f32.xlu0 %v1413_v29  ;;  %v1412_v30 = vmul.f32 %v1408_v24, %v1408_v24 }
 0x5cb   : > { %v1411_v31 = vmul.f32 %v1407_v28, %v1407_v28 }
 0x5cc   : > { %v1422_v60 = vsel %vm601_vm2, %v1412_v30, 0.0 }
 0x5cd   : > { %1423 = vadd.xlane.f32.xlu1 %v1422_v60  ;;  %v1419_v5 = vsel %vm601_vm2, %v1411_v31, 0.0 }
 0x5ce   : > { %1420 = vadd.xlane.f32.xlu0 %v1419_v5 }
 0x656   : > { %v1418_v32 = vpop.xlane.xlu1 %1417 }
 0x657   : > { %v1426_v33 = vmul.f32 0.03125, %v1418_v32  ;;  %v1415_v41 = vpop.xlane.xlu0 %1414 }
 0x658   : > { %v1425_v57 = vmul.f32 0.03125, %v1415_v41 }
 0x659   : > { %v1430_v26 = vadd.f32 1e-05, %v1426_v33 }
 0x65a   : > { %v1429_v34 = vadd.f32 1e-05, %v1425_v57  ;;  %v1424_v36 = vpop.xlane.xlu1 %1423 }
 0x65b   : > { %1915 = vrsqrt.f32 %v1430_v26  ;;  %v1428_v40 = vmul.f32 0.03125, %v1424_v36  ;;  %v1421_v44 = vpop.xlane.xlu0 %1420  ;;  %v1465_v26 = vld [vmem:[%s2295_s9] sm:$0x3] (!%p1650_p5) }
 0x65c   : > { %1917 = vrsqrt.f32 %v1429_v34  ;;  %v1427_v46 = vmul.f32 0.03125, %v1421_v44  ;;  %v1521_v36 = vrot.slane (!%p1650_p5), %v1465_v26, %v2179_v17 }
 0x65d   : > { %v1432_v48 = vadd.f32 1e-05, %v1428_v40 }
 0x65e   : > { %v1431_v10 = vadd.f32 1e-05, %v1427_v46  ;;  %v1529_v46 = vrot.slane (!%p1650_p5), %v1465_v26, %v2107_v42 }
 0x65f   : > { %1919 = vrsqrt.f32 %v1432_v48 }
 0x660   : > { %1921 = vrsqrt.f32 %v1431_v10 }
 0x665   : > { %v1916_v14 = vpop.eup %1915 }
 0x666   : > { %v1918_v53 = vpop.eup %1917  ;;  %v1438_v56 = vmul.f32 %v1916_v14, %v1406_v52 }
 0x667   : > { %v1437_v58 = vmul.f32 %v1918_v53, %v1405_v19 }
 0x668   : > { %v1446_v59 = vmul.f32 %v1444_v51, %v1438_v56 }
 0x669   : > { %v1920_v21 = vpop.eup %1919  ;;  %v1445_v61 = vmul.f32 %v1444_v51, %v1437_v58 }
 0x66a   : > { %v1922_v25 = vpop.eup %1921  ;;  %v1454_v1 = vadd.f32 %v1452_v54, %v1446_v59  ;;  %v1440_v62 = vmul.f32 %v1920_v21, %v1408_v24 }
 0x66b   : > { %v1453_v63 = vadd.f32 %v1452_v54, %v1445_v61  ;;  %v1439_v3 = vmul.f32 %v1922_v25, %v1407_v28  ;;  %1464 = sbr.rel (%p1650_p5) target bundleno = 1967 (0x7af), region = 68 }
 0x66c   : > { %1458 = vst.msk [vmem:[#allocation2 + $0x8] sm:$0xff] %vm601_vm2, %v1454_v1  ;;  %v1448_v7 = vmul.f32 %v1444_v51, %v1440_v62  ;;  %v1469_v11 = vsel (!%p1650_p5), %vm601_vm2, %v1454_v1, 0.0 }
 0x66d   : > { %1457 = vst.msk [vmem:[#allocation2] sm:$0xff] %vm601_vm2, %v1453_v63  ;;  %v1447_v4 = vmul.f32 %v1444_v51, %v1439_v3  ;;  %v1466_v6 = vsel (!%p1650_p5), %vm601_vm2, %v1453_v63, 0.0 }
 0x66e   : > { %v1456_v2 = vadd.f32 %v1452_v54, %v1448_v7  ;;  %1467 = vadd.xlane.f32.xlu0 (!%p1650_p5), %v1466_v6 }
 0x66f   : > { %v1455_v8 = vadd.f32 %v1452_v54, %v1447_v4 }
 0x670   : > { %1460 = vst.msk [vmem:[#allocation2 + $0x18] sm:$0xff] %vm601_vm2, %v1456_v2  ;;  %v1475_v12 = vsel (!%p1650_p5), %vm601_vm2, %v1456_v2, 0.0 }
 0x671   : > { %1459 = vst.msk [vmem:[#allocation2 + $0x10] sm:$0xff] %vm601_vm2, %v1455_v8  ;;  %v1472_v9 = vsel (!%p1650_p5), %vm601_vm2, %v1455_v8, 0.0 }
 0x672   : > { %1473 = vadd.xlane.f32.xlu1 %v1472_v9  ;;  %1470 = vadd.xlane.f32.xlu0 %v1469_v11 }
 0x676   : > { %1476 = vadd.xlane.f32.xlu1 %v1475_v12 }
 0x6fb   : > { %v1468_v13 = vpop.xlane.xlu0 %1467 }
 0x6fc   : > { %v1478_v16 = vmul.f32 0.03125, %v1468_v13 }
 0x6fe   : > { %v1482_v18 = vsub.f32 %v1453_v63, %v1478_v16 }
 0x6ff   : > { %v1474_v15 = vpop.xlane.xlu1 %1473  ;;  %v1471_v35 = vpop.xlane.xlu0 %1470 }
 0x700   : > { %v1480_v43 = vmul.f32 0.03125, %v1474_v15  ;;  %v1479_v47 = vmul.f32 0.03125, %v1471_v35  ;;  %v1486_v45 = vmul.f32 %v1482_v18, %v1482_v18 }
 0x702   : > { %v1484_v37 = vsub.f32 %v1455_v8, %v1480_v43  ;;  %v1483_v19 = vsub.f32 %v1454_v1, %v1479_v47  ;;  %v1490_v38 = vsel %vm601_vm2, %v1486_v45, 0.0 }
 0x703   : > { %v1477_v49 = vpop.xlane.xlu1 %1476  ;;  %1491 = vadd.xlane.f32.xlu0 %v1490_v38 }
 0x704   : > { %v1481_v39 = vmul.f32 0.03125, %v1477_v49  ;;  %v1488_v52 = vmul.f32 %v1484_v37, %v1484_v37  ;;  %v1487_v20 = vmul.f32 %v1483_v19, %v1483_v19 }
 0x706   : > { %v1485_v0 = vsub.f32 %v1456_v2, %v1481_v39  ;;  %v1496_v55 = vsel %vm601_vm2, %v1488_v52, 0.0  ;;  %v1493_v23 = vsel %vm601_vm2, %v1487_v20, 0.0 }
 0x707   : > { %1497 = vadd.xlane.f32.xlu0 %v1496_v55  ;;  %1494 = vadd.xlane.f32.xlu1 %v1493_v23 }
 0x708   : > { %v1489_v22 = vmul.f32 %v1485_v0, %v1485_v0 }
 0x70a   : > { %v1499_v24 = vsel %vm601_vm2, %v1489_v22, 0.0 }
 0x70b   : > { %1500 = vadd.xlane.f32.xlu1 %v1499_v24 }
 0x790   : > { %v1492_v27 = vpop.xlane.xlu0 %1491 }
 0x791   : > { %v1502_v28 = vmul.f32 0.03125, %v1492_v27 }
 0x793   : > { %v1506_v29 = vadd.f32 1e-05, %v1502_v28 }
 0x794   : > { %v1495_v30 = vpop.xlane.xlu1 %1494  ;;  %v1498_v31 = vpop.xlane.xlu0 %1497 }
 0x795   : > { %1923 = vrsqrt.f32 %v1506_v29  ;;  %v1503_v60 = vmul.f32 0.03125, %v1495_v30  ;;  %v1504_v5 = vmul.f32 0.03125, %v1498_v31 }
 0x797   : > { %v1507_v32 = vadd.f32 1e-05, %v1503_v60  ;;  %v1508_v33 = vadd.f32 1e-05, %v1504_v5 }
 0x798   : > { %v1501_v41 = vpop.xlane.xlu1 %1500 }
 0x799   : > { %1925 = vrsqrt.f32 %v1507_v32  ;;  %v1505_v57 = vmul.f32 0.03125, %v1501_v41 }
 0x79a   : > { %1927 = vrsqrt.f32 %v1508_v33 }
 0x79b   : > { %v1509_v34 = vadd.f32 1e-05, %v1505_v57 }
 0x79d   : > { %1929 = vrsqrt.f32 %v1509_v34 }
 0x79f   : > { %v1924_v40 = vpop.eup %1923 }
 0x7a0   : > { %v1514_v44 = vmul.f32 %v1924_v40, %v1482_v18 }
 0x7a2   : > { %v1522_v48 = vmul.f32 %v1521_v36, %v1514_v44 }
 0x7a3   : > { %v1926_v10 = vpop.eup %1925 }
 0x7a4   : > { %v1928_v50 = vpop.eup %1927  ;;  %v1530_v51 = vadd.f32 %v1529_v46, %v1522_v48  ;;  %v1515_v14 = vmul.f32 %v1926_v10, %v1483_v19 }
 0x7a5   : > { %v1516_v53 = vmul.f32 %v1928_v50, %v1484_v37 }
 0x7a6   : > { %1534 = vst.msk [vmem:[%s2296_s10] sm:$0xff] %vm601_vm2, %v1530_v51  ;;  %v1523_v54 = vmul.f32 %v1521_v36, %v1515_v14 }
 0x7a7   : > { %v1930_v56 = vpop.eup %1929  ;;  %v1524_v58 = vmul.f32 %v1521_v36, %v1516_v53 }
 0x7a8   : > { %v1531_v59 = vadd.f32 %v1529_v46, %v1523_v54  ;;  %v1517_v17 = vmul.f32 %v1930_v56, %v1485_v0 }
 0x7a9   : > { %v1532_v21 = vadd.f32 %v1529_v46, %v1524_v58 }
 0x7aa   : > { %1535 = vst.msk [vmem:[%s2296_s10 + $0x8] sm:$0xff] %vm601_vm2, %v1531_v59  ;;  %v1525_v42 = vmul.f32 %v1521_v36, %v1517_v17 }
 0x7ab   : > { %1536 = vst.msk [vmem:[%s2296_s10 + $0x10] sm:$0xff] %vm601_vm2, %v1532_v21 }
 0x7ac   : > { %v1533_v61 = vadd.f32 %v1529_v46, %v1525_v42 }
 0x7ae   : > { %1537 = vst.msk [vmem:[%s2296_s10 + $0x18] sm:$0xff] %vm601_vm2, %v1533_v61 }
 0x7af PF: > { %s20_s13 = sadd.s32 1, %s1937_s13  }
 0x7b0   : > { %p17_p6 = scmp.ge.s32.totalorder %s20_s13, 4  }
 0x7b2   :  { %19 = sbr.rel (!%p17_p6) target bundleno = 2 (0x2), region = 109 }

// kernel: gaformer_forward.3
= control target key start
LH: loop header
LB: loop body
LE: loop exit
PB: predicated region body
PF: predicated region fallthrough
CT: control target
= control target key end

     0   :  { %vm78_vm0 = vcmask 130048   ;;  %v2819_v25 = vmov 0.0   ;;  %vm182_vm1 = vcmask 261120   ;;  %v224_v40 = vlaneseq  ;;  %s3576_s2 = inlined_call_operand.vmem [shape: f32[16,32], index: 2, kind: input, shape index: {}]   ;;  %s3577_s0 = inlined_call_operand.vmem [shape: f32[2,16,16], index: 0, kind: input, shape index: {}]   ;;  %s3578_s4 = inlined_call_operand.vmem [shape: f32[1,32,384], index: 4, kind: input, shape index: {}]   ;;  %s3579_s1 = inlined_call_operand.vmem [shape: f32[16,32], index: 1, kind: input, shape index: {}]   ;;  %s3580_s5 = inlined_call_operand.vmem [shape: f32[1,1,384], index: 5, kind: input, shape index: {}]   ;;  %s3581_s6 = inlined_call_operand.vmem [shape: f32[1,4,128], index: 6, kind: input, shape index: {}]   ;;  %s3582_s7 = inlined_call_operand.vmem [shape: f32[1,128,32], index: 7, kind: input, shape index: {}]   ;;  %s3583_s8 = inlined_call_operand.vmem [shape: f32[1,1,32], index: 8, kind: input, shape index: {}]   ;;  %s3584_s10 = inlined_call_operand.vmem [shape: f32[1,32,256], index: 10, kind: input, shape index: {}]   ;;  %s3585_s12 = inlined_call_operand.vmem [shape: f32[1,32,256], index: 12, kind: input, shape index: {}]   ;;  %s3586_s9 = inlined_call_operand.vmem [shape: f32[1,2,32], index: 9, kind: input, shape index: {}]   ;;  %s3587_s3 = inlined_call_operand.vmem [shape: f32[2,16,32], index: 3, kind: input, shape index: {}]   ;;  %s3588_s11 = inlined_call_operand.vmem [shape: f32[1,1,256], index: 11, kind: input, shape index: {}]   ;;  %s3589_s13 = inlined_call_operand.vmem [shape: f32[1,1,256], index: 13, kind: input, shape index: {}]   ;;  %s3590_s14 = inlined_call_operand.vmem [shape: f32[1,4,128], index: 14, kind: input, shape index: {}]   ;;  %s3591_s15 = inlined_call_operand.vmem [shape: f32[1,128,32], index: 15, kind: input, shape index: {}]   ;;  %s3592_s16 = inlined_call_operand.vmem [shape: f32[1,1,32], index: 16, kind: input, shape index: {}]   ;;  %s3593_s17 = inlined_call_operand.vmem [shape: f32[1,2,32], index: 17, kind: input, shape index: {}]   ;;  %s3594_s19 = inlined_call_operand.vmem [shape: f32[32,4], index: 19, kind: input, shape index: {}]   ;;  %s3595_s18 = inlined_call_operand.vmem [shape: f32[2,32], index: 18, kind: input, shape index: {}]   ;;  %s3596_s20 = inlined_call_operand.vmem [shape: f32[1,4], index: 20, kind: input, shape index: {}]   ;;  %s3597_s21 = inlined_call_operand.vmem [shape: f32[2,16,4], index: 21, kind: output, shape index: {}]  }
   0x1   :  { %3602 = sst [smem:[#allocation3_spill]] %s3576_s2  ;;  %316 = vmatprep.mubr.f32.mxu1 %v2819_v25  ;;  %vm2258_vm4 = vcmask 31744  }
   0x2   :  { %3603 = sst [smem:[#allocation4_spill]] %s3577_s0  ;;  %s3608_s26 = sld [smem:[#allocation3_spill]]  ;;  %v3027_v41 = vshrl.u32 %v224_v40, 7 }
   0x3   :  { %3604 = sst [smem:[#allocation5_spill]] %s3578_s4  ;;  %s3609_s2 = sld [smem:[#allocation4_spill]] }
   0x4   :  { %3605 = sst [smem:[#allocation6_spill]] %s3579_s1  ;;  %s3610_s25 = sld [smem:[#allocation5_spill]]  ;;  %v3030_v42 = vsub.s32 1, %v3027_v41  ;;  %v3033_v43 = vsub.s32 2, %v3027_v41 }
   0x5   :  { %3606 = sst [smem:[#allocation7_spill]] %s3580_s5  ;;  %s3611_s23 = sld [smem:[#allocation6_spill]] }
   0x6   :  { %3607 = sst [smem:[#allocation8_spill]] %s3581_s6 }
   0x7   :  { %s3613_s28 = sld [smem:[#allocation8_spill]] }
   0x8   :  { %v76_v0 = vld [vmem:[%s3608_s26] sm:$0xff]  ;;  %v77_v1 = vld [vmem:[%s3608_s26 + $0x8] sm:$0xff]  ;;  %s3612_s26 = sld [smem:[#allocation7_spill]] }
   0x9   :  { %v72_v2 = vld [vmem:[%s3609_s2] sm:$0xff]  ;;  %v2566_v3 = vpack.c.bf16 %v77_v1, %v76_v0  ;;  %v73_v4 = vld [vmem:[%s3609_s2 + $0x8] sm:$0xff]  ;;  %v74_v5 = vld [vmem:[%s3609_s2 + $0x10] sm:$0xff] }
   0xa   :  { %2400 = vmatprep.mubr.msk.f32.mxu0 %vm78_vm0, %v72_v2  ;;  %v75_v6 = vld [vmem:[%s3609_s2 + $0x18] sm:$0xff]  ;;  %v192_v7 = vld [vmem:[%s3610_s25 + $0x8] sm:$0xff]  ;;  %v195_v8 = vld [vmem:[%s3610_s25 + $0x20] sm:$0xff] }
   0xb   :  { %2567 = vmatprep.subr.bf16.mxu0 %v2566_v3  ;;  %v2570_v9 = vpack.c.bf16 %v195_v8, %v192_v7  ;;  %v191_v10 = vld [vmem:[%s3610_s25] sm:$0xff]  ;;  %v194_v11 = vld [vmem:[%s3610_s25 + $0x18] sm:$0xff]  ;;  %v193_v12 = vld [vmem:[%s3610_s25 + $0x10] sm:$0xff] }
   0xc   :  { %2569 = vmatpush3.bf16.msra.mxu0 %v2566_v3  ;;  %v2572_v13 = vpack.c.bf16 %v194_v11, %v191_v10  ;;  %v196_v14 = vld [vmem:[%s3610_s25 + $0x28] sm:$0xff]  ;;  %v198_v16 = vld [vmem:[%s3610_s25 + $0x38] sm:$0xff]  ;;  %v201_v17 = vld [vmem:[%s3610_s25 + $0x50] sm:$0xff] }
   0xd   :  { %2571 = vmatprep.subr.bf16.mxu1 %v2570_v9  ;;  %v2578_v15 = vpack.c.bf16 %v196_v14, %v193_v12  ;;  %v2574_v18 = vpack.c.bf16 %v201_v17, %v198_v16  ;;  %v197_v19 = vld [vmem:[%s3610_s25 + $0x30] sm:$0xff]  ;;  %v200_v20 = vld [vmem:[%s3610_s25 + $0x48] sm:$0xff]  ;;  %v199_v21 = vld [vmem:[%s3610_s25 + $0x40] sm:$0xff] }
   0xe   :  { %2573 = vmatpush1.bf16.msra.mxu1 %v2572_v13  ;;  %v2576_v22 = vpack.c.bf16 %v200_v20, %v197_v19  ;;  %v202_v23 = vld [vmem:[%s3610_s25 + $0x58] sm:$0xff]  ;;  %v177_v26 = vld [vmem:[%s3611_s23 + $0x8] sm:$0xff]  ;;  %v176_v27 = vld [vmem:[%s3611_s23] sm:$0xff] }
   0xf   :  { %2401 = vmatmul.mubr.msk.f32.vlgmr.msra.gmra.mrb[0].mxu0 %vm78_vm0, %v73_v4  ;;  %2579 = vmatprep.subr.bf16.mxu0 %v2578_v15  ;;  %v2582_v24 = vpack.c.bf16 %v202_v23, %v199_v21  ;;  %v3038_v44 = vld [vmem:[%s3612_s26] sm:$0x7] }
  0x10   :  { %2403 = vmatprep.mubr.msk.f32.mxu0 %vm78_vm0, %v74_v5  ;;  %2581 = vmatpush3.bf16.msra.mxu0 %v2578_v15  ;;  %v231_v45 = vrot.slane %v3038_v44, %v3030_v42  ;;  %v235_v46 = vrot.slane %v3038_v44, %v3033_v43 }
  0x11   :  { %2575 = vmatprep.subr.bf16.mxu1 %v2574_v18  ;;  %2583 = vmatprep.subr.bf16.mxu0 %v2582_v24 }
  0x12   :  { %2577 = vmatpush1.bf16.msra.mxu1 %v2576_v22 }
  0x13   :  { %2404 = vmatmul.mubr.msk.f32.gmra.mrb[2].mxu0 %vm78_vm0, %v75_v6 }
  0x14   :  { %2585 = vmatpush3.bf16.msra.mxu0 %v2582_v24 }
  0xe2   :  { %v2402_v28 = vpop.f32.mrb[0].mxu0 }
  0xe3   :  { %v179_v29 = vadd.f32 %v2402_v28, %v177_v26  ;;  %v157_v30 = vpop.f32.mrb[1].mxu0 }
  0xe4   :  { %v178_v31 = vadd.f32 %v176_v27, %v157_v30 }
  0xe5   :  { %184 = vst.msk [vmem:[#allocation2 + $0x8] sm:$0xff] %vm182_vm1, %v179_v29 }
  0xe6   :  { %183 = vst.msk [vmem:[#allocation2] sm:$0xff] %vm182_vm1, %v178_v31  ;;  %v2405_v32 = vpop.f32.mrb[2].mxu0 }
  0xe7   :  { %v181_v33 = vadd.f32 %v2405_v32, %v177_v26  ;;  %v167_v34 = vpop.f32.mrb[3].mxu0 }
  0xe8   :  { %v180_v35 = vadd.f32 %v176_v27, %v167_v34 }
  0xe9   :  { %186 = vst.msk [vmem:[#allocation2 + $0x18] sm:$0xff] %vm182_vm1, %v181_v33 }
  0xea   :  { %185 = vst.msk [vmem:[#allocation2 + $0x10] sm:$0xff] %vm182_vm1, %v180_v35 }
  0xec   :  { %v3005_v37 = vld [vmem:[#allocation2 + $0x8] sm:$0xff] }
  0xed   :  { %v2999_v36 = vld [vmem:[#allocation2] sm:$0xff] }
  0xee   :  { %2271 = vmatmul.mubr.msk.f32.vlgmr.msra.gmra.mrb[0].mxu1 %vm182_vm1, %v2999_v36  ;;  %2414 = vmatprep.mubr.msk.f32.mxu0 %vm182_vm1, %v2999_v36 }
  0xef   :  { %2415 = vmatmul.mubr.msk.f32.vlgmr.msra.gmra.mrb[4].mxu0 %vm182_vm1, %v3005_v37  ;;  %322 = vmatprep.mubr.f32.mxu1 %v2819_v25 }
  0xf0   :  { %v3010_v38 = vld [vmem:[#allocation2 + $0x18] sm:$0xff] }
  0xf1   :  { %v3012_v39 = vld [vmem:[#allocation2 + $0x10] sm:$0xff] }
  0xf2   :  { %2272 = vmatmul.mubr.msk.f32.gmra.mrb[2].mxu1 %vm182_vm1, %v3005_v37  ;;  %2417 = vmatprep.mubr.msk.f32.mxu0 %vm182_vm1, %v3012_v39 }
  0xf3   :  { %2418 = vmatmul.mubr.msk.f32.gmra.mrb[6].mxu0 %vm182_vm1, %v3010_v38  ;;  %328 = vmatprep.mubr.f32.mxu1 %v2819_v25 }
  0xf6   :  { %2273 = vmatmul.mubr.msk.f32.gmra.mrb[4].mxu1 %vm182_vm1, %v3012_v39 }
  0xf7   :  { %334 = vmatprep.mubr.f32.mxu1 %v2819_v25 }
  0xfa   :  { %2274 = vmatmul.mubr.msk.f32.gmra.mrb[6].mxu1 %vm182_vm1, %v3010_v38 }
 0x1c1   :  { %v3044_v47 = vpop.f32.mrb[0].mxu1 }
 0x1c2   :  { %v320_v48 = vpop.f32.mrb[1].mxu1  ;;  %v2416_v49 = vpop.f32.mrb[4].mxu0 }
 0x1c3   :  { %v3046_v50 = vadd.f32 %v320_v48, %v231_v45  ;;  %v3048_v51 = vadd.f32 %v2416_v49, %v235_v46  ;;  %v407_v52 = vpop.f32.mrb[5].mxu0 }
 0x1c4   :  { %v3050_v53 = vadd.f32 %v407_v52, %v235_v46 }
 0x1c5   :  { %v427_v54 = vmul.f32 %v3046_v50, %v3046_v50  ;;  %v431_v55 = vmul.f32 %v3048_v51, %v3048_v51  ;;  %v3056_v56 = vpop.f32.mrb[2].mxu1 }
 0x1c6   :  { %v428_v57 = vmul.f32 %v3050_v53, %v3050_v53  ;;  %v326_v58 = vpop.f32.mrb[3].mxu1  ;;  %v2419_v59 = vpop.f32.mrb[6].mxu0 }
 0x1c7   :  { %v439_v60 = vmul.f32 %v427_v54, %v3046_v50  ;;  %v443_v61 = vmul.f32 %v431_v55, %v3048_v51  ;;  %v3062_v62 = vadd.f32 %v326_v58, %v231_v45  ;;  %v3064_v63 = vadd.f32 %v2419_v59, %v235_v46  ;;  %v417_v0 = vpop.f32.mrb[7].mxu0 }
 0x1c8   :  { %v440_v1 = vmul.f32 %v428_v57, %v3050_v53  ;;  %v3067_v2 = vadd.f32 %v417_v0, %v235_v46 }
 0x1c9   :  { %v451_v3 = vmul.f32 0.044715, %v439_v60  ;;  %v455_v4 = vmul.f32 0.044715, %v443_v61  ;;  %v430_v5 = vmul.f32 %v3062_v62, %v3062_v62  ;;  %v437_v6 = vmul.f32 %v3064_v63, %v3064_v63  ;;  %v3073_v7 = vpop.f32.mrb[4].mxu1 }
 0x1ca   :  { %v452_v8 = vmul.f32 0.044715, %v440_v1  ;;  %v434_v9 = vmul.f32 %v3067_v2, %v3067_v2  ;;  %v332_v10 = vpop.f32.mrb[5].mxu1  ;;  %v560_v1 = vsub.s32 3, %v3027_v41 }
 0x1cb   :  { %v463_v11 = vadd.f32 %v451_v3, %v3046_v50  ;;  %v467_v12 = vadd.f32 %v455_v4, %v3048_v51  ;;  %v442_v13 = vmul.f32 %v430_v5, %v3062_v62  ;;  %v449_v14 = vmul.f32 %v437_v6, %v3064_v63 }
 0x1cc   :  { %v464_v15 = vadd.f32 %v452_v8, %v3050_v53  ;;  %v446_v16 = vmul.f32 %v434_v9, %v3067_v2  ;;  %v3087_v28 = vadd.f32 %v332_v10, %v231_v45  ;;  %v3105_v3 = vsub.s32 0, %v3027_v41 }
 0x1cd   :  { %v475_v17 = vmul.f32 0.7978846, %v463_v11  ;;  %v479_v18 = vmul.f32 0.7978846, %v467_v12  ;;  %v454_v19 = vmul.f32 0.044715, %v442_v13 }
 0x1ce   :  { %v476_v20 = vmul.f32 0.7978846, %v464_v15  ;;  %v461_v21 = vmul.f32 0.044715, %v449_v14  ;;  %v3083_v22 = vpop.f32.mrb[6].mxu1  ;;  %v433_v32 = vmul.f32 %v3087_v28, %v3087_v28 }
 0x1cf   :  { %2707 = vtanh.f32 %v475_v17  ;;  %v466_v23 = vadd.f32 %v454_v19, %v3062_v62  ;;  %v458_v24 = vmul.f32 0.044715, %v446_v16  ;;  %v338_v26 = vpop.f32.mrb[7].mxu1 }
 0x1d0   :  { %2709 = vtanh.f32 %v479_v18  ;;  %v473_v27 = vadd.f32 %v461_v21, %v3064_v63  ;;  %v3092_v34 = vadd.f32 %v338_v26, %v231_v45  ;;  %v445_v35 = vmul.f32 %v433_v32, %v3087_v28  ;;  %v204_v45 = vld [vmem:[%s3613_s28] sm:$0xf] }
 0x1d1   :  { %2711 = vtanh.f32 %v476_v20  ;;  %v478_v29 = vmul.f32 0.7978846, %v466_v23  ;;  %v470_v30 = vadd.f32 %v458_v24, %v3067_v2  ;;  %v553_v9 = vrot.slane %v204_v45, %v3033_v43 }
 0x1d2   :  { %v485_v31 = vmul.f32 0.7978846, %v473_v27  ;;  %v436_v46 = vmul.f32 %v3092_v34, %v3092_v34  ;;  %v457_v48 = vmul.f32 0.044715, %v445_v35  ;;  %v537_v12 = vrot.slane %v204_v45, %v3105_v3 }
 0x1d3   :  { %2713 = vtanh.f32 %v478_v29  ;;  %v482_v33 = vmul.f32 0.7978846, %v470_v30  ;;  %v561_v18 = vrot.slane %v204_v45, %v560_v1  ;;  %v545_v21 = vrot.slane %v204_v45, %v3030_v42 }
 0x1d4   :  { %2715 = vtanh.f32 %v485_v31  ;;  %v448_v49 = vmul.f32 %v436_v46, %v3092_v34  ;;  %v469_v52 = vadd.f32 %v457_v48, %v3087_v28 }
 0x1d5   :  { %2717 = vtanh.f32 %v482_v33 }
 0x1d6   :  { %v460_v55 = vmul.f32 0.044715, %v448_v49  ;;  %v481_v58 = vmul.f32 0.7978846, %v469_v52 }
 0x1d8   :  { %v472_v0 = vadd.f32 %v460_v55, %v3092_v34  ;;  %2719 = vtanh.f32 %v481_v58 }
 0x1d9   :  { %v2708_v54 = vpop.eup %2707 }
 0x1da   :  { %v2710_v57 = vpop.eup %2709  ;;  %v499_v59 = vadd.f32 1.0, %v2708_v54  ;;  %v484_v8 = vmul.f32 0.7978846, %v472_v0 }
 0x1db   :  { %v2712_v60 = vpop.eup %2711  ;;  %v503_v61 = vadd.f32 1.0, %v2710_v57 }
 0x1dc   :  { %v500_v4 = vadd.f32 1.0, %v2712_v60  ;;  %v511_v10 = vmul.f32 0.5, %v499_v59  ;;  %2721 = vtanh.f32 %v484_v8 }
 0x1dd   :  { %v2714_v5 = vpop.eup %2713  ;;  %v515_v6 = vmul.f32 0.5, %v503_v61 }
 0x1de   :  { %v2716_v11 = vpop.eup %2715  ;;  %v512_v13 = vmul.f32 0.5, %v500_v4  ;;  %v502_v14 = vadd.f32 1.0, %v2714_v5  ;;  %v523_v27 = vmul.f32 %v511_v10, %v3046_v50 }
 0x1df   :  { %v2718_v15 = vpop.eup %2717  ;;  %v527_v16 = vmul.f32 %v515_v6, %v3048_v51  ;;  %v509_v17 = vadd.f32 1.0, %v2716_v11  ;;  %v720_v11 = vand.u32 127, %v224_v40 }
 0x1e0   :  { %v506_v19 = vadd.f32 1.0, %v2718_v15  ;;  %v524_v20 = vmul.f32 %v512_v13, %v3050_v53  ;;  %v514_v23 = vmul.f32 0.5, %v502_v14  ;;  %v718_v13 = vadd.s32 8, %v3027_v41 }
 0x1e1   :  { %v521_v24 = vmul.f32 0.5, %v509_v17  ;;  %v555_v26 = vmul.f32 %v553_v9, %v527_v16  ;;  %vm721_vm2 = vcmp.le.s32.totalorder %v720_v11, %v3027_v41 }
 0x1e2   :  { %v518_v29 = vmul.f32 0.5, %v506_v19  ;;  %v538_v30 = vmul.f32 %v537_v12, %v524_v20  ;;  %v554_v31 = vmul.f32 %v553_v9, %v524_v20  ;;  %v526_v51 = vmul.f32 %v514_v23, %v3062_v62  ;;  %v2720_v52 = vpop.eup %2719 }
 0x1e3   :  { %v533_v32 = vmul.f32 %v521_v24, %v3064_v63  ;;  %v563_v33 = vadd.f32 %v561_v18, %v555_v26  ;;  %v505_v50 = vadd.f32 1.0, %v2720_v52  ;;  %v539_v62 = vmul.f32 %v537_v12, %v527_v16 }
 0x1e4   :  { %v530_v35 = vmul.f32 %v518_v29, %v3067_v2  ;;  %v546_v46 = vadd.f32 %v545_v21, %v538_v30  ;;  %v562_v48 = vadd.f32 %v561_v18, %v554_v31  ;;  %v2594_v53 = vpack.c.bf16 %v526_v51, %v523_v27 }
 0x1e5   :  { %v557_v49 = vmul.f32 %v553_v9, %v533_v32  ;;  %v517_v60 = vmul.f32 0.5, %v505_v50  ;;  %v547_v0 = vadd.f32 %v545_v21, %v539_v62  ;;  %vm722_vm3 = vcmp.le.s32.totalorder %v720_v11, %v718_v13  ;;  %v207_v62 = vld [vmem:[%s3582_s7 + $0x10] sm:$0xff]  ;;  %v216_v13 = vld [vmem:[%s3582_s7 + $0x58] sm:$0xff] }
 0x1e6   :  { %2424 = vmatprep.mubr.f32.mxu0 %v546_v46  ;;  %v2586_v54 = vpack.c.bf16 %v563_v33, %v562_v48  ;;  %v556_v55 = vmul.f32 %v553_v9, %v530_v35  ;;  %v2722_v58 = vpop.eup %2721  ;;  %v540_v61 = vmul.f32 %v537_v12, %v530_v35  ;;  %v541_v9 = vmul.f32 %v537_v12, %v533_v32  ;;  %v215_v11 = vld [vmem:[%s3582_s7 + $0x50] sm:$0xff] }
 0x1e7   :  { %v565_v57 = vadd.f32 %v561_v18, %v557_v49  ;;  %v508_v63 = vadd.f32 1.0, %v2722_v58  ;;  %v529_v4 = vmul.f32 %v517_v60, %v3087_v28  ;;  %v206_v58 = vld [vmem:[%s3582_s7 + $0x8] sm:$0xff] }
 0x1e8   :  { %2587 = vmatprep.subr.bf16.mxu0 %v2586_v54  ;;  %v564_v45 = vadd.f32 %v561_v18, %v556_v55  ;;  %v548_v6 = vadd.f32 %v545_v21, %v540_v61  ;;  %v549_v10 = vadd.f32 %v545_v21, %v541_v9  ;;  %v209_v61 = vld [vmem:[%s3582_s7 + $0x20] sm:$0xff]  ;;  %v214_v9 = vld [vmem:[%s3582_s7 + $0x48] sm:$0xff] }
 0x1e9   :  { %2589 = vmatpush3.bf16.xpose.msra.mxu0 %v2586_v54  ;;  %v520_v2 = vmul.f32 0.5, %v508_v63  ;;  %v208_v63 = vld [vmem:[%s3582_s7 + $0x18] sm:$0xff] }
 0x1ea   :  { %v2590_v59 = vpack.c.bf16 %v565_v57, %v564_v45  ;;  %v205_v45 = vld [vmem:[%s3582_s7] sm:$0xff]  ;;  %v2606_v60 = vpack.c.bf16 %v208_v63, %v207_v62 }
 0x1eb   :  { %v532_v5 = vmul.f32 %v520_v2, %v3092_v34  ;;  %v210_v2 = vld [vmem:[%s3582_s7 + $0x28] sm:$0xff] }
 0x1ec   :  { %2591 = vmatprep.subr.bf16.mxu0 %v2590_v59 }
 0x1ed   :  { %v2598_v8 = vpack.c.bf16 %v532_v5, %v529_v4  ;;  %v211_v4 = vld [vmem:[%s3582_s7 + $0x30] sm:$0xff]  ;;  %v212_v5 = vld [vmem:[%s3582_s7 + $0x38] sm:$0xff] }
 0x1f0   :  { %2425 = vmatmul.mubr.f32.vlgmr.msra.gmra.mrb[8].mxu0 %v547_v0  ;;  %v2610_v0 = vpack.c.bf16 %v210_v2, %v209_v61 }
 0x1f1   :  { %2593 = vmatpush3.bf16.xpose.msra.mxu0 %v2590_v59  ;;  %2431 = vmatprep.mubr.f32.mxu0 %v548_v6  ;;  %v2602_v59 = vpack.c.bf16 %v206_v58, %v205_v45  ;;  %v2614_v6 = vpack.c.bf16 %v212_v5, %v211_v4 }
 0x1f2   :  { %2595 = vmatprep.subr.bf16.mxu0 %v2594_v53 }
 0x1f3   :  { %2603 = vmatprep.subr.bf16.mxu1 %v2602_v59 }
 0x1f4   :  { %2605 = vmatpush3.bf16.msra.mxu1 %v2602_v59 }
 0x1f5   :  { %2607 = vmatprep.subr.bf16.mxu1 %v2606_v60 }
 0x1f8   :  { %2432 = vmatmul.mubr.f32.vlgmr.msra.gmra.mrb[10].mxu0 %v549_v10  ;;  %2609 = vmatpush3.bf16.msra.mxu1 %v2606_v60 }
 0x1f9   :  { %2597 = vmatpush3.bf16.msra.mxu0 %v2594_v53  ;;  %2611 = vmatprep.subr.bf16.mxu1 %v2610_v0 }
 0x1fa   :  { %2599 = vmatprep.subr.bf16.mxu0 %v2598_v8 }
 0x1fc   :  { %2613 = vmatpush3.bf16.msra.mxu1 %v2610_v0 }
 0x1fd   :  { %2615 = vmatprep.subr.bf16.mxu1 %v2614_v6 }
 0x200   :  { %2617 = vmatpush3.bf16.msra.mxu1 %v2614_v6 }
 0x2c3   :  { %v2426_v28 = vpop.f32.mrb[8].mxu0 }
 0x2c4   :  { %v632_v34 = vpop.f32.mrb[9].mxu0  ;;  %v724_v16 = vsel %vm722_vm3, %v2426_v28, -1e+30  ;;  %v2622_v28 = vpack.c.bf16 %v216_v13, %v215_v11 }
 0x2c5   :  { %v723_v14 = vsel %vm721_vm2, %v632_v34, -1e+30  ;;  %v731_v12 = vsel %vm78_vm0, %v724_v16, -inf  ;;  %v217_v34 = vld [vmem:[%s3582_s7 + $0x60] sm:$0xff] }
 0x2c6   :  { %v728_v15 = vsel %vm78_vm0, %v723_v14, -inf }
 0x2c7   :  { %729 = vmax.xlane.f32.xlu0 %v728_v15 }
 0x2cb   :  { %732 = vmax.xlane.f32.xlu0 %v731_v12  ;;  %v2433_v17 = vpop.f32.mrb[10].mxu0  ;;  %v220_v12 = vld [vmem:[%s3582_s7 + $0x78] sm:$0xff] }
 0x2cc   :  { %v707_v18 = vpop.f32.mrb[11].mxu0  ;;  %v726_v20 = vsel %vm722_vm3, %v2433_v17, -1e+30 }
 0x2cd   :  { %v725_v19 = vsel %vm721_vm2, %v707_v18, -1e+30  ;;  %v737_v21 = vsel %vm78_vm0, %v726_v20, -inf  ;;  %v227_v18 = vrot.slane %v3038_v44, %v3105_v3 }
 0x2ce   :  { %v734_v40 = vsel %vm78_vm0, %v725_v19, -inf }
 0x2cf   :  { %735 = vmax.xlane.f32.xlu1 %v734_v40  ;;  %v319_v40 = vadd.f32 %v3044_v47, %v227_v18 }
 0x2d3   :  { %738 = vmax.xlane.f32.xlu1 %v737_v21  ;;  %v426_v21 = vmul.f32 %v319_v40, %v319_v40 }
 0x354   :  { %v730_v23 = vpop.xlane.xlu0 %729 }
 0x355   :  { %v740_v24 = vsub.f32 %v723_v14, %v730_v23  ;;  %v218_v14 = vld [vmem:[%s3582_s7 + $0x68] sm:$0xff] }
 0x356   :  { %v2626_v15 = vpack.c.bf16 %v218_v14, %v217_v34 }
 0x357   :  { %v744_v26 = vmul.f32 1.442695, %v740_v24  ;;  %v337_v24 = vadd.f32 %v3083_v22, %v227_v18 }
 0x358   :  { %v733_v27 = vpop.xlane.xlu0 %732 }
 0x359   :  { %2723 = vpow2.f32 %v744_v26  ;;  %v741_v29 = vsub.f32 %v724_v16, %v733_v27  ;;  %v219_v16 = vld [vmem:[%s3582_s7 + $0x70] sm:$0xff]  ;;  %v438_v26 = vmul.f32 %v426_v21, %v319_v40  ;;  %v331_v27 = vadd.f32 %v3073_v7, %v227_v18 }
 0x35a   :  { %v2630_v17 = vpack.c.bf16 %v220_v12, %v219_v16 }
 0x35b   :  { %v746_v30 = vmul.f32 1.442695, %v741_v29 }
 0x35c   :  { %v736_v31 = vpop.xlane.xlu1 %735 }
 0x35d   :  { %2725 = vpow2.f32 %v746_v30  ;;  %v742_v51 = vsub.f32 %v725_v19, %v736_v31  ;;  %v325_v19 = vadd.f32 %v3056_v56, %v227_v18  ;;  %v435_v30 = vmul.f32 %v337_v24, %v337_v24 }
 0x35e   :  { %v450_v31 = vmul.f32 0.044715, %v438_v26 }
 0x35f   :  { %v748_v32 = vmul.f32 1.442695, %v742_v51  ;;  %v432_v51 = vmul.f32 %v331_v27, %v331_v27 }
 0x360   :  { %v739_v33 = vpop.xlane.xlu1 %738 }
 0x361   :  { %2727 = vpow2.f32 %v748_v32  ;;  %v743_v35 = vsub.f32 %v726_v20, %v739_v33  ;;  %v429_v20 = vmul.f32 %v325_v19, %v325_v19  ;;  %v447_v33 = vmul.f32 %v435_v30, %v337_v24  ;;  %v2283_v30 = vld [vmem:[%s3583_s8] ss:$0 sm:$0xff] }
 0x362   :  { %v444_v44 = vmul.f32 %v432_v51, %v331_v27 }
 0x363   :  { %v2724_v46 = vpop.eup %2723  ;;  %v750_v48 = vmul.f32 1.442695, %v743_v35  ;;  %v441_v23 = vmul.f32 %v429_v20, %v325_v19  ;;  %v462_v35 = vadd.f32 %v450_v31, %v319_v40  ;;  %v459_v56 = vmul.f32 0.044715, %v447_v33 }
 0x364   :  { %2438 = vmatprep.mubr.msk.f32.mxu0 %vm78_vm0, %v2724_v46  ;;  %v752_v53 = vsel %vm78_vm0, %v2724_v46, 0.0  ;;  %v456_v47 = vmul.f32 0.044715, %v444_v44 }
 0x365   :  { %2729 = vpow2.f32 %v750_v48  ;;  %753 = vadd.xlane.f32.xlu0 %v752_v53  ;;  %v453_v29 = vmul.f32 0.044715, %v441_v23  ;;  %v474_v48 = vmul.f32 0.7978846, %v462_v35  ;;  %v471_v53 = vadd.f32 %v459_v56, %v337_v24 }
 0x367   :  { %v2726_v49 = vpop.eup %2725  ;;  %v465_v32 = vadd.f32 %v453_v29, %v325_v19  ;;  %v483_v22 = vmul.f32 0.7978846, %v471_v53 }
 0x368   :  { %2439 = vmatmul.mubr.msk.f32.vlgmr.msra.gmra.mrb[12].mxu0 %vm78_vm0, %v2726_v49  ;;  %v755_v52 = vsel %vm78_vm0, %v2726_v49, 0.0  ;;  %v468_v49 = vadd.f32 %v456_v47, %v331_v27 }
 0x369   :  { %2601 = vmatpush3.bf16.msra.mxu0 %v2598_v8  ;;  %756 = vadd.xlane.f32.xlu1 %v755_v52  ;;  %v213_v8 = vld [vmem:[%s3582_s7 + $0x40] sm:$0xff]  ;;  %v477_v46 = vmul.f32 0.7978846, %v465_v32 }
 0x36a   :  { %v2618_v10 = vpack.c.bf16 %v214_v9, %v213_v8  ;;  %v480_v52 = vmul.f32 0.7978846, %v468_v49 }
 0x36b   :  { %v2728_v54 = vpop.eup %2727  ;;  %2731 = vtanh.f32 %v477_v46 }
 0x36c   :  { %2445 = vmatprep.mubr.msk.f32.mxu0 %vm78_vm0, %v2728_v54  ;;  %v758_v55 = vsel %vm78_vm0, %v2728_v54, 0.0  ;;  %2619 = vmatprep.subr.bf16.mxu1 %v2618_v10  ;;  %2733 = vtanh.f32 %v474_v48 }
 0x36d   :  { %759 = vadd.xlane.f32.xlu0 %v758_v55  ;;  %2621 = vmatpush3.bf16.msra.mxu1 %v2618_v10  ;;  %2735 = vtanh.f32 %v483_v22 }
 0x36e   :  { %2623 = vmatprep.subr.bf16.mxu1 %v2622_v28  ;;  %2737 = vtanh.f32 %v480_v52 }
 0x36f   :  { %v2730_v57 = vpop.eup %2729 }
 0x370   :  { %2446 = vmatmul.mubr.msk.f32.vlgmr.msra.gmra.mrb[14].mxu0 %vm78_vm0, %v2730_v57  ;;  %v761_v50 = vsel %vm78_vm0, %v2730_v57, 0.0 }
 0x371   :  { %762 = vadd.xlane.f32.xlu1 %v761_v50  ;;  %1234 = vmatprep.mubr.f32.mxu0 %v2819_v25 }
 0x372   :  { %2625 = vmatpush3.bf16.msra.mxu1 %v2622_v28 }
 0x373   :  { %2627 = vmatprep.subr.bf16.mxu1 %v2626_v15 }
 0x375   :  { %v2732_v55 = vpop.eup %2731 }
 0x376   :  { %2629 = vmatpush3.bf16.msra.mxu1 %v2626_v15  ;;  %v2734_v57 = vpop.eup %2733  ;;  %v501_v50 = vadd.f32 1.0, %v2732_v55 }
 0x377   :  { %2631 = vmatprep.subr.bf16.mxu1 %v2630_v17  ;;  %v498_v45 = vadd.f32 1.0, %v2734_v57  ;;  %v2736_v63 = vpop.eup %2735 }
 0x378   :  { %v513_v59 = vmul.f32 0.5, %v501_v50  ;;  %v2738_v61 = vpop.eup %2737  ;;  %v507_v9 = vadd.f32 1.0, %v2736_v63 }
 0x379   :  { %v510_v60 = vmul.f32 0.5, %v498_v45  ;;  %v504_v13 = vadd.f32 1.0, %v2738_v61 }
 0x37a   :  { %2633 = vmatpush3.bf16.msra.mxu1 %v2630_v17  ;;  %v525_v5 = vmul.f32 %v513_v59, %v325_v19  ;;  %v519_v14 = vmul.f32 0.5, %v507_v9  ;;  %v1110_v9 = vld [vmem:[%s3584_s10] sm:$0xff] }
 0x37b   :  { %v522_v10 = vmul.f32 %v510_v60, %v319_v40  ;;  %v516_v15 = vmul.f32 0.5, %v504_v13 }
 0x37c   :  { %v531_v18 = vmul.f32 %v519_v14, %v337_v24  ;;  %v1116_v14 = vld [vmem:[%s3584_s10 + $0x30] sm:$0xff] }
 0x37d   :  { %v528_v23 = vmul.f32 %v516_v15, %v331_v27 }
 0x3f2   :  { %v754_v7 = vpop.xlane.xlu0 %753 }
 0x3f6   :  { %v757_v54 = vpop.xlane.xlu1 %756 }
 0x3f7   :  { %2739 = vrcp.f32 %v757_v54 }
 0x3f8   :  { %2741 = vrcp.f32 %v754_v7 }
 0x3fa   :  { %v760_v62 = vpop.xlane.xlu0 %759 }
 0x3fe   :  { %v763_v58 = vpop.xlane.xlu1 %762 }
 0x3ff   :  { %2743 = vrcp.f32 %v763_v58 }
 0x400   :  { %2745 = vrcp.f32 %v760_v62 }
 0x401   :  { %v2740_v2 = vpop.eup %2739 }
 0x402   :  { %v2742_v4 = vpop.eup %2741 }
 0x409   :  { %v2744_v16 = vpop.eup %2743 }
 0x40a   :  { %v2746_v17 = vpop.eup %2745 }
 0x43b   :  { %v2440_v0 = vpop.f32.mrb[12].mxu0 }
 0x43c   :  { %v931_v6 = vmul.f32 %v2740_v2, %v2440_v0  ;;  %v840_v8 = vpop.f32.mrb[13].mxu0 }
 0x43d   :  { %v930_v11 = vmul.f32 %v2742_v4, %v840_v8 }
 0x43e   :  { %v935_v28 = vmul.f32 %v931_v6, %v525_v5  ;;  %v1111_v5 = vld [vmem:[%s3584_s10 + $0x8] sm:$0xff]  ;;  %v1113_v6 = vld [vmem:[%s3584_s10 + $0x18] sm:$0xff] }
 0x43f   :  { %v934_v34 = vmul.f32 %v930_v11, %v522_v10  ;;  %v2634_v8 = vpack.c.bf16 %v1113_v6, %v1111_v5  ;;  %v1112_v10 = vld [vmem:[%s3584_s10 + $0x10] sm:$0xff]  ;;  %v1115_v11 = vld [vmem:[%s3584_s10 + $0x28] sm:$0xff]  ;;  %v1109_v5 = vld [vmem:[%s3587_s3 + $0x18] sm:$0xff] }
 0x440   :  { %v2636_v13 = vpack.c.bf16 %v1112_v10, %v1110_v9  ;;  %v3315_v6 = vld [vmem:[%s3588_s11] sm:$0x3] }
 0x441   :  { %2480 = vmatprep.mubr.f32.mxu1 %v934_v34  ;;  %v1114_v34 = vld [vmem:[%s3584_s10 + $0x20] sm:$0xff]  ;;  %2635 = vmatprep.subr.bf16.mxu0 %v2634_v8  ;;  %v1155_v8 = vrot.slane %v3315_v6, %v3030_v42 }
 0x442   :  { %2481 = vmatmul.mubr.f32.vlgmr.msra.gmra.mrb[8].mxu1 %v935_v28  ;;  %v1117_v28 = vld [vmem:[%s3584_s10 + $0x38] sm:$0xff]  ;;  %2637 = vmatpush1.bf16.msra.mxu0 %v2636_v13 }
 0x443   :  { %v2447_v12 = vpop.f32.mrb[14].mxu0  ;;  %v2638_v15 = vpack.c.bf16 %v1117_v28, %v1115_v11 }
 0x444   :  { %v933_v20 = vmul.f32 %v2744_v16, %v2447_v12  ;;  %v921_v21 = vpop.f32.mrb[15].mxu0  ;;  %v2640_v16 = vpack.c.bf16 %v1116_v14, %v1114_v34  ;;  %v1120_v12 = vld [vmem:[%s3585_s12 + $0x8] sm:$0xff] }
 0x445   :  { %v932_v19 = vmul.f32 %v2746_v17, %v921_v21  ;;  %2639 = vmatprep.subr.bf16.mxu0 %v2638_v15  ;;  %v1122_v17 = vld [vmem:[%s3585_s12 + $0x18] sm:$0xff] }
 0x446   :  { %v937_v26 = vmul.f32 %v933_v20, %v531_v18  ;;  %2641 = vmatpush1.bf16.msra.mxu0 %v2640_v16  ;;  %v2642_v18 = vpack.c.bf16 %v1122_v17, %v1120_v12 }
 0x447   :  { %v936_v29 = vmul.f32 %v932_v19, %v528_v23 }
 0x448   :  { %2643 = vmatprep.subr.bf16.mxu0 %v2642_v18 }
 0x449   :  { %2483 = vmatprep.mubr.f32.mxu1 %v936_v29 }
 0x44a   :  { %2484 = vmatmul.mubr.f32.gmra.mrb[10].mxu1 %v937_v26 }
 0x515   :  { %v2482_v40 = vpop.f32.mrb[8].mxu1 }
 0x516   :  { %v1024_v31 = vadd.f32 %v2482_v40, %v3005_v37  ;;  %v1004_v51 = vpop.f32.mrb[9].mxu1 }
 0x517   :  { %v1023_v32 = vadd.f32 %v1004_v51, %v2999_v36 }
 0x518   :  { %v1034_v33 = vadd.f32 %v2283_v30, %v1024_v31 }
 0x519   :  { %v1033_v24 = vadd.f32 %v2283_v30, %v1023_v32 }
 0x51a   :  { %v1040_v35 = vsel %vm182_vm1, %v1034_v33, 0.0 }
 0x51b   :  { %1041 = vadd.xlane.f32.xlu1 %v1040_v35  ;;  %v1037_v27 = vsel %vm182_vm1, %v1033_v24, 0.0 }
 0x51c   :  { %1038 = vadd.xlane.f32.xlu0 %v1037_v27 }
 0x51d   :  { %v2485_v44 = vpop.f32.mrb[10].mxu1 }
 0x51e   :  { %v1026_v46 = vadd.f32 %v2485_v44, %v3010_v38  ;;  %v1014_v56 = vpop.f32.mrb[11].mxu1 }
 0x51f   :  { %v1025_v48 = vadd.f32 %v1014_v56, %v3012_v39 }
 0x520   :  { %v1036_v47 = vadd.f32 %v2283_v30, %v1026_v46 }
 0x521   :  { %v1035_v53 = vadd.f32 %v2283_v30, %v1025_v48 }
 0x522   :  { %v1046_v37 = vsel %vm182_vm1, %v1036_v47, 0.0 }
 0x523   :  { %1047 = vadd.xlane.f32.xlu1 %v1046_v37  ;;  %v1043_v36 = vsel %vm182_vm1, %v1035_v53, 0.0  ;;  %v1124_v37 = vld [vmem:[%s3585_s12 + $0x28] sm:$0xff] }
 0x524   :  { %1044 = vadd.xlane.f32.xlu0 %v1043_v36  ;;  %v1126_v36 = vld [vmem:[%s3585_s12 + $0x38] sm:$0xff] }
 0x5a8   :  { %v1042_v49 = vpop.xlane.xlu1 %1041 }
 0x5a9   :  { %v1051_v22 = vmul.f32 0.03125, %v1042_v49  ;;  %v1039_v52 = vpop.xlane.xlu0 %1038 }
 0x5aa   :  { %v1050_v54 = vmul.f32 0.03125, %v1039_v52 }
 0x5ab   :  { %v3201_v7 = vsub.f32 %v1034_v33, %v1051_v22 }
 0x5ac   :  { %v1054_v55 = vsub.f32 %v1033_v24, %v1050_v54  ;;  %v222_v24 = vld [vmem:[%s3586_s9] sm:$0x3] }
 0x5ad   :  { %v1059_v38 = vmul.f32 %v3201_v7, %v3201_v7  ;;  %v1093_v27 = vrot.slane %v222_v24, %v3105_v3  ;;  %v1101_v56 = vrot.slane %v222_v24, %v3030_v42 }
 0x5ae   :  { %v1058_v57 = vmul.f32 %v1054_v55, %v1054_v55 }
 0x5af   :  { %v1065_v39 = vsel %vm182_vm1, %v1059_v38, 0.0  ;;  %v1125_v38 = vld [vmem:[%s3585_s12 + $0x30] sm:$0xff] }
 0x5b0   :  { %1066 = vadd.xlane.f32.xlu1 %v1065_v39  ;;  %v1048_v50 = vpop.xlane.xlu1 %1047  ;;  %v1062_v45 = vsel %vm182_vm1, %v1058_v57, 0.0 }
 0x5b1   :  { %v1053_v58 = vmul.f32 0.03125, %v1048_v50  ;;  %1063 = vadd.xlane.f32.xlu0 %v1062_v45  ;;  %v1045_v62 = vpop.xlane.xlu0 %1044 }
 0x5b2   :  { %v1052_v59 = vmul.f32 0.03125, %v1045_v62 }
 0x5b3   :  { %v3207_v63 = vsub.f32 %v1036_v47, %v1053_v58  ;;  %v1119_v47 = vld [vmem:[%s3585_s12] sm:$0xff] }
 0x5b4   :  { %v3209_v60 = vsub.f32 %v1035_v53, %v1052_v59  ;;  %v1121_v53 = vld [vmem:[%s3585_s12 + $0x10] sm:$0xff] }
 0x5b5   :  { %v1061_v61 = vmul.f32 %v3207_v63, %v3207_v63  ;;  %v2644_v22 = vpack.c.bf16 %v1121_v53, %v1119_v47 }
 0x5b6   :  { %v1060_v2 = vmul.f32 %v3209_v60, %v3209_v60 }
 0x5b7   :  { %v1071_v0 = vsel %vm182_vm1, %v1061_v61, 0.0 }
 0x5b8   :  { %1072 = vadd.xlane.f32.xlu1 %v1071_v0  ;;  %v1068_v4 = vsel %vm182_vm1, %v1060_v2, 0.0 }
 0x5b9   :  { %1069 = vadd.xlane.f32.xlu0 %v1068_v4  ;;  %v1108_v4 = vld [vmem:[%s3587_s3 + $0x10] sm:$0xff] }
 0x63d   :  { %v1067_v20 = vpop.xlane.xlu1 %1066 }
 0x63e   :  { %v1075_v21 = vmul.f32 0.03125, %v1067_v20  ;;  %v1064_v23 = vpop.xlane.xlu0 %1063  ;;  %v1127_v20 = vld [vmem:[%s3589_s13] sm:$0x3] }
 0x63f   :  { %v1074_v19 = vmul.f32 0.03125, %v1064_v23 }
 0x640   :  { %v1079_v26 = vadd.f32 1e-05, %v1075_v21 }
 0x641   :  { %v1078_v29 = vadd.f32 1e-05, %v1074_v19 }
 0x642   :  { %2747 = vrsqrt.f32 %v1079_v26 }
 0x643   :  { %2749 = vrsqrt.f32 %v1078_v29 }
 0x645   :  { %v1073_v40 = vpop.xlane.xlu1 %1072 }
 0x646   :  { %v1077_v30 = vmul.f32 0.03125, %v1073_v40  ;;  %v1070_v31 = vpop.xlane.xlu0 %1069  ;;  %v1335_v40 = vrot.slane %v1127_v20, %v3105_v3 }
 0x647   :  { %v1076_v51 = vmul.f32 0.03125, %v1070_v31  ;;  %v1339_v31 = vrot.slane %v1127_v20, %v3030_v42 }
 0x648   :  { %v1081_v32 = vadd.f32 1e-05, %v1077_v30 }
 0x649   :  { %v1080_v33 = vadd.f32 1e-05, %v1076_v51 }
 0x64a   :  { %2751 = vrsqrt.f32 %v1081_v32 }
 0x64b   :  { %2753 = vrsqrt.f32 %v1080_v33 }
 0x64c   :  { %v2748_v35 = vpop.eup %2747 }
 0x64d   :  { %v2750_v44 = vpop.eup %2749  ;;  %v1087_v48 = vmul.f32 %v2748_v35, %v3201_v7  ;;  %v2646_v7 = vpack.c.bf16 %v1126_v36, %v1124_v37  ;;  %v3362_v36 = vld [vmem:[%s3590_s14] sm:$0xf] }
 0x64e   :  { %v1086_v46 = vmul.f32 %v2750_v44, %v1054_v55  ;;  %v1123_v55 = vld [vmem:[%s3585_s12 + $0x20] sm:$0xff] }
 0x64f   :  { %v1095_v54 = vmul.f32 %v1093_v27, %v1087_v48  ;;  %v2648_v50 = vpack.c.bf16 %v1125_v38, %v1123_v55 }
 0x650   :  { %v1094_v49 = vmul.f32 %v1093_v27, %v1086_v46 }
 0x651   :  { %v3276_v45 = vadd.f32 %v1101_v56, %v1095_v54 }
 0x652   :  { %v3265_v52 = vadd.f32 %v1101_v56, %v1094_v49 }
 0x654   :  { %v2752_v57 = vpop.eup %2751  ;;  %2284 = vmatmul.mubr.msk.f32.vlgmr.msra.gmra.mrb[16].mxu0 %vm182_vm1, %v3265_v52 }
 0x655   :  { %v2754_v39 = vpop.eup %2753  ;;  %1240 = vmatprep.mubr.f32.mxu0 %v2819_v25  ;;  %2645 = vmatpush1.bf16.msra.mxu0 %v2644_v22  ;;  %v1089_v62 = vmul.f32 %v2752_v57, %v3207_v63  ;;  %v1106_v63 = vld [vmem:[%s3587_s3] sm:$0xff] }
 0x656   :  { %v1088_v58 = vmul.f32 %v2754_v39, %v3209_v60  ;;  %2647 = vmatprep.subr.bf16.mxu0 %v2646_v7  ;;  %v1107_v60 = vld [vmem:[%s3587_s3 + $0x8] sm:$0xff] }
 0x657   :  { %v1097_v2 = vmul.f32 %v1093_v27, %v1089_v62 }
 0x658   :  { %2285 = vmatmul.mubr.msk.f32.gmra.mrb[18].mxu0 %vm182_vm1, %v3276_v45  ;;  %v1096_v59 = vmul.f32 %v1093_v27, %v1088_v58  ;;  %v3377_v58 = vrot.slane %v3362_v36, %v3105_v3 }
 0x659   :  { %1246 = vmatprep.mubr.f32.mxu0 %v2819_v25  ;;  %2649 = vmatpush1.bf16.msra.mxu0 %v2648_v50  ;;  %v3288_v0 = vadd.f32 %v1101_v56, %v1097_v2 }
 0x65a   :  { %v3283_v61 = vadd.f32 %v1101_v56, %v1096_v59 }
 0x65c   :  { %2286 = vmatmul.mubr.msk.f32.gmra.mrb[20].mxu0 %vm182_vm1, %v3283_v61 }
 0x65d   :  { %1252 = vmatprep.mubr.f32.mxu0 %v2819_v25 }
 0x660   :  { %2287 = vmatmul.mubr.msk.f32.gmra.mrb[22].mxu0 %vm182_vm1, %v3288_v0 }
 0x661   :  { %1418 = vmatprep.mubr.f32.mxu0 %v2819_v25 }
 0x664   :  { %2288 = vmatmul.mubr.msk.f32.vlgmr.msra.gmra.mrb[24].mxu0 %vm182_vm1, %v1106_v63 }
 0x665   :  { %1424 = vmatprep.mubr.f32.mxu0 %v2819_v25 }
 0x668   :  { %2289 = vmatmul.mubr.msk.f32.gmra.mrb[26].mxu0 %vm182_vm1, %v1107_v60 }
 0x669   :  { %1430 = vmatprep.mubr.f32.mxu0 %v2819_v25 }
 0x66c   :  { %2290 = vmatmul.mubr.msk.f32.gmra.mrb[28].mxu0 %vm182_vm1, %v1108_v4 }
 0x66d   :  { %1436 = vmatprep.mubr.f32.mxu0 %v2819_v25 }
 0x670   :  { %2291 = vmatmul.mubr.msk.f32.gmra.mrb[30].mxu0 %vm182_vm1, %v1109_v5 }
 0x727   :  { %v3319_v9 = vpop.f32.mrb[16].mxu0 }
 0x728   :  { %v1238_v10 = vpop.f32.mrb[17].mxu0 }
 0x729   :  { %v3321_v11 = vadd.f32 %v1238_v10, %v1155_v8 }
 0x72b   :  { %v1260_v25 = vmul.f32 %v3321_v11, %v3321_v11  ;;  %v3325_v13 = vpop.f32.mrb[18].mxu0 }
 0x72c   :  { %v1244_v28 = vpop.f32.mrb[19].mxu0 }
 0x72d   :  { %v1268_v34 = vmul.f32 %v1260_v25, %v3321_v11  ;;  %v3328_v14 = vadd.f32 %v1244_v28, %v1155_v8 }
 0x72f   :  { %v1276_v15 = vmul.f32 0.044715, %v1268_v34  ;;  %v3330_v16 = vpop.f32.mrb[20].mxu0  ;;  %v1262_v21 = vmul.f32 %v3328_v14, %v3328_v14 }
 0x730   :  { %v1250_v12 = vpop.f32.mrb[21].mxu0 }
 0x731   :  { %v1284_v17 = vadd.f32 %v1276_v15, %v3321_v11  ;;  %v3333_v18 = vadd.f32 %v1250_v12, %v1155_v8  ;;  %v1270_v51 = vmul.f32 %v1262_v21, %v3328_v14  ;;  %v3392_v15 = vrot.slane %v3362_v36, %v3030_v42 }
 0x733   :  { %v1292_v23 = vmul.f32 0.7978846, %v1284_v17  ;;  %v1264_v19 = vmul.f32 %v3333_v18, %v3333_v18  ;;  %v3342_v26 = vpop.f32.mrb[22].mxu0  ;;  %v1278_v56 = vmul.f32 0.044715, %v1270_v51 }
 0x734   :  { %v1256_v29 = vpop.f32.mrb[23].mxu0 }
 0x735   :  { %v1272_v30 = vmul.f32 %v1264_v19, %v3333_v18  ;;  %2755 = vtanh.f32 %v1292_v23  ;;  %v3348_v24 = vadd.f32 %v1256_v29, %v1155_v8  ;;  %v1286_v57 = vadd.f32 %v1278_v56, %v3328_v14 }
 0x737   :  { %v1280_v32 = vmul.f32 0.044715, %v1272_v30  ;;  %v1420_v33 = vpop.f32.mrb[24].mxu0  ;;  %v1266_v49 = vmul.f32 %v3348_v24, %v3348_v24  ;;  %v1294_v12 = vmul.f32 0.7978846, %v1286_v57 }
 0x738   :  { %v3350_v35 = vadd.f32 %v1420_v33, %v1335_v40  ;;  %v1422_v27 = vpop.f32.mrb[25].mxu0 }
 0x739   :  { %v1288_v44 = vadd.f32 %v1280_v32, %v3333_v18  ;;  %v3353_v46 = vadd.f32 %v1422_v27, %v1339_v31  ;;  %v1274_v60 = vmul.f32 %v1266_v49, %v3348_v24 }
 0x73a   :  { %v1443_v48 = vmul.f32 %v3350_v35, %v3350_v35 }
 0x73b   :  { %v1296_v47 = vmul.f32 0.7978846, %v1288_v44  ;;  %v1444_v53 = vmul.f32 %v3353_v46, %v3353_v46  ;;  %v1426_v37 = vpop.f32.mrb[26].mxu0  ;;  %v1282_v32 = vmul.f32 0.044715, %v1274_v60 }
 0x73c   :  { %v1451_v22 = vmul.f32 %v1443_v48, %v3350_v35  ;;  %v3367_v54 = vadd.f32 %v1426_v37, %v1335_v40  ;;  %v1428_v7 = vpop.f32.mrb[27].mxu0 }
 0x73d   :  { %2757 = vtanh.f32 %v1296_v47  ;;  %v1452_v55 = vmul.f32 %v1444_v53, %v3353_v46  ;;  %v3370_v38 = vadd.f32 %v1428_v7, %v1339_v31 }
 0x73e   :  { %v1459_v39 = vmul.f32 0.044715, %v1451_v22  ;;  %v1445_v50 = vmul.f32 %v3367_v54, %v3367_v54 }
 0x73f   :  { %v1460_v62 = vmul.f32 0.044715, %v1452_v55  ;;  %v1446_v59 = vmul.f32 %v3370_v38, %v3370_v38  ;;  %v1432_v2 = vpop.f32.mrb[28].mxu0  ;;  %v2756_v63 = vpop.eup %2755 }
 0x740   :  { %v1467_v4 = vadd.f32 %v1459_v39, %v3350_v35  ;;  %v1453_v5 = vmul.f32 %v1445_v50, %v3367_v54  ;;  %v3384_v8 = vadd.f32 %v1432_v2, %v1335_v40  ;;  %v1434_v10 = vpop.f32.mrb[29].mxu0  ;;  %v1308_v51 = vadd.f32 1.0, %v2756_v63 }
 0x741   :  { %v1468_v25 = vadd.f32 %v1460_v62, %v3353_v46  ;;  %v1454_v28 = vmul.f32 %v1446_v59, %v3370_v38  ;;  %v3388_v34 = vadd.f32 %v1434_v10, %v1339_v31  ;;  %v1290_v50 = vadd.f32 %v1282_v32, %v3348_v24 }
 0x742   :  { %v1475_v17 = vmul.f32 0.7978846, %v1467_v4  ;;  %v1461_v20 = vmul.f32 0.044715, %v1453_v5  ;;  %v1447_v21 = vmul.f32 %v3384_v8, %v3384_v8  ;;  %v1316_v39 = vmul.f32 0.5, %v1308_v51 }
 0x743   :  { %v1476_v23 = vmul.f32 0.7978846, %v1468_v25  ;;  %v1462_v19 = vmul.f32 0.044715, %v1454_v28  ;;  %v1448_v29 = vmul.f32 %v3388_v34, %v3388_v34  ;;  %v1438_v30 = vpop.f32.mrb[30].mxu0 }
 0x744   :  { %2759 = vtanh.f32 %v1475_v17  ;;  %v1469_v33 = vadd.f32 %v1461_v20, %v3367_v54  ;;  %v1455_v27 = vmul.f32 %v1447_v21, %v3384_v8  ;;  %v1440_v44 = vpop.f32.mrb[31].mxu0  ;;  %v3402_v47 = vadd.f32 %v1438_v30, %v1335_v40 }
 0x745   :  { %2761 = vtanh.f32 %v1476_v23  ;;  %v1470_v56 = vadd.f32 %v1462_v19, %v3370_v38  ;;  %v1456_v48 = vmul.f32 %v1448_v29, %v3388_v34  ;;  %v3404_v49 = vadd.f32 %v1440_v44, %v1339_v31 }
 0x746   :  { %2763 = vtanh.f32 %v1294_v12  ;;  %v1477_v53 = vmul.f32 0.7978846, %v1469_v33  ;;  %v1463_v37 = vmul.f32 0.044715, %v1455_v27  ;;  %v1449_v57 = vmul.f32 %v3402_v47, %v3402_v47 }
 0x747   :  { %v2758_v22 = vpop.eup %2757  ;;  %v1478_v7 = vmul.f32 0.7978846, %v1470_v56  ;;  %v1464_v55 = vmul.f32 0.044715, %v1456_v48  ;;  %v1450_v40 = vmul.f32 %v3404_v49, %v3404_v49  ;;  %v1324_v2 = vmul.f32 %v1316_v39, %v3321_v11 }
 0x748   :  { %2765 = vtanh.f32 %v1477_v53  ;;  %v1471_v62 = vadd.f32 %v1463_v37, %v3384_v8  ;;  %v1457_v31 = vmul.f32 %v1449_v57, %v3402_v47  ;;  %v1312_v4 = vadd.f32 1.0, %v2758_v22 }
 0x749   :  { %2767 = vtanh.f32 %v1478_v7  ;;  %v1472_v59 = vadd.f32 %v1464_v55, %v3388_v34  ;;  %v1458_v60 = vmul.f32 %v1450_v40, %v3404_v49  ;;  %v1519_v25 = vmul.f32 %v3377_v58, %v1324_v2 }
 0x74a   :  { %v1479_v63 = vmul.f32 0.7978846, %v1471_v62  ;;  %v1465_v10 = vmul.f32 0.044715, %v1457_v31  ;;  %v1298_v28 = vmul.f32 0.7978846, %v1290_v50  ;;  %v1534_v57 = vrot.slane %v3362_v36, %v3033_v43 }
 0x74b   :  { %v1480_v5 = vmul.f32 0.7978846, %v1472_v59  ;;  %v1466_v12 = vmul.f32 0.044715, %v1458_v60  ;;  %v1320_v17 = vmul.f32 0.5, %v1312_v4  ;;  %v1527_v21 = vadd.f32 %v3392_v15, %v1519_v25 }
 0x74c   :  { %2769 = vtanh.f32 %v1479_v63  ;;  %v1473_v20 = vadd.f32 %v1465_v10, %v3402_v47  ;;  %v1542_v31 = vrot.slane %v3362_v36, %v560_v1 }
 0x74d   :  { %2771 = vtanh.f32 %v1480_v5  ;;  %v1474_v11 = vadd.f32 %v1466_v12, %v3404_v49  ;;  %v1328_v19 = vmul.f32 %v1320_v17, %v3333_v18  ;;  %2490 = vmatprep.mubr.f32.mxu1 %v1527_v21 }
 0x74e   :  { %v2760_v23 = vpop.eup %2759  ;;  %v1481_v30 = vmul.f32 0.7978846, %v1473_v20  ;;  %2773 = vtanh.f32 %v1298_v28 }
 0x74f   :  { %v2762_v29 = vpop.eup %2761  ;;  %v1491_v51 = vadd.f32 1.0, %v2760_v23  ;;  %v1482_v27 = vmul.f32 0.7978846, %v1474_v11  ;;  %v1521_v44 = vmul.f32 %v3377_v58, %v1328_v19 }
 0x750   :  { %v2764_v32 = vpop.eup %2763  ;;  %v1492_v33 = vadd.f32 1.0, %v2762_v29  ;;  %2775 = vtanh.f32 %v1481_v30 }
 0x751   :  { %2777 = vtanh.f32 %v1482_v27  ;;  %v1529_v53 = vadd.f32 %v3392_v15, %v1521_v44  ;;  %v1499_v7 = vmul.f32 0.5, %v1491_v51  ;;  %v1310_v62 = vadd.f32 1.0, %v2764_v32 }
 0x752   :  { %v2766_v56 = vpop.eup %2765  ;;  %v1500_v48 = vmul.f32 0.5, %v1492_v33 }
 0x753   :  { %v2768_v37 = vpop.eup %2767  ;;  %v1493_v22 = vadd.f32 1.0, %v2766_v56  ;;  %2497 = vmatprep.mubr.f32.mxu0 %v1529_v53  ;;  %v1507_v2 = vmul.f32 %v1499_v7, %v3350_v35  ;;  %v1318_v25 = vmul.f32 0.5, %v1310_v62 }
 0x754   :  { %v1508_v18 = vmul.f32 %v1500_v48, %v3353_v46  ;;  %v1494_v55 = vadd.f32 1.0, %v2768_v37 }
 0x755   :  { %v1501_v39 = vmul.f32 0.5, %v1493_v22 }
 0x756   :  { %v2770_v50 = vpop.eup %2769  ;;  %v1502_v40 = vmul.f32 0.5, %v1494_v55  ;;  %v1535_v4 = vmul.f32 %v1534_v57, %v1508_v18 }
 0x757   :  { %v2772_v59 = vpop.eup %2771  ;;  %v1509_v63 = vmul.f32 %v1501_v39, %v3367_v54  ;;  %v1495_v5 = vadd.f32 1.0, %v2770_v50  ;;  %v1326_v54 = vmul.f32 %v1318_v25, %v3328_v14 }
 0x758   :  { %v1510_v46 = vmul.f32 %v1502_v40, %v3370_v38  ;;  %v1496_v60 = vadd.f32 1.0, %v2772_v59  ;;  %v2774_v43 = vpop.eup %2773  ;;  %v1543_v21 = vadd.f32 %v1542_v31, %v1535_v4 }
 0x759   :  { %v2658_v10 = vpack.c.bf16 %v1509_v63, %v1507_v2  ;;  %v1503_v1 = vmul.f32 0.5, %v1495_v5  ;;  %v1314_v19 = vadd.f32 1.0, %v2774_v43  ;;  %v1520_v27 = vmul.f32 %v3377_v58, %v1326_v54 }
 0x75a   :  { %v1504_v28 = vmul.f32 0.5, %v1496_v60  ;;  %v1536_v12 = vmul.f32 %v1534_v57, %v1510_v46  ;;  %v2776_v17 = vpop.eup %2775 }
 0x75b   :  { %v2778_v20 = vpop.eup %2777  ;;  %v1497_v23 = vadd.f32 1.0, %v2776_v17  ;;  %v1511_v30 = vmul.f32 %v1503_v1, %v3384_v8  ;;  %v1322_v44 = vmul.f32 0.5, %v1314_v19  ;;  %v1528_v53 = vadd.f32 %v3392_v15, %v1520_v27  ;;  %v1131_v1 = vld [vmem:[%s3591_s15 + $0x10] sm:$0xff] }
 0x75c   :  { %v1544_v41 = vadd.f32 %v1542_v31, %v1536_v12  ;;  %v1512_v35 = vmul.f32 %v1504_v28, %v3388_v34  ;;  %v1498_v36 = vadd.f32 1.0, %v2778_v20 }
 0x75d   :  { %v1505_v11 = vmul.f32 0.5, %v1497_v23  ;;  %v1330_v37 = vmul.f32 %v1322_v44, %v3348_v24  ;;  %v1130_v23 = vld [vmem:[%s3591_s15 + $0x8] sm:$0xff]  ;;  %v1140_v44 = vld [vmem:[%s3591_s15 + $0x58] sm:$0xff] }
 0x75e   :  { %v2650_v38 = vpack.c.bf16 %v1544_v41, %v1543_v21  ;;  %v1506_v29 = vmul.f32 0.5, %v1498_v36  ;;  %v1537_v33 = vmul.f32 %v1534_v57, %v1512_v35  ;;  %v1129_v41 = vld [vmem:[%s3591_s15] sm:$0xff]  ;;  %v1132_v36 = vld [vmem:[%s3591_s15 + $0x18] sm:$0xff] }
 0x75f   :  { %v1513_v51 = vmul.f32 %v1505_v11, %v3402_v47  ;;  %v1522_v8 = vmul.f32 %v3377_v58, %v1330_v37  ;;  %v2666_v35 = vpack.c.bf16 %v1130_v23, %v1129_v41  ;;  %v2670_v54 = vpack.c.bf16 %v1132_v36, %v1131_v1  ;;  %v1134_v11 = vld [vmem:[%s3591_s15 + $0x28] sm:$0xff]  ;;  %v1143_v37 = vld [vmem:[%s3591_s15 + $0x70] sm:$0xff] }
 0x760   :  { %2651 = vmatprep.subr.bf16.mxu1 %v2650_v38  ;;  %v1514_v32 = vmul.f32 %v1506_v29, %v3404_v49  ;;  %v1545_v14 = vadd.f32 %v1542_v31, %v1537_v33  ;;  %v1135_v29 = vld [vmem:[%s3591_s15 + $0x30] sm:$0xff]  ;;  %v1138_v33 = vld [vmem:[%s3591_s15 + $0x48] sm:$0xff] }
 0x761   :  { %2653 = vmatpush3.bf16.xpose.msra.mxu1 %v2650_v38  ;;  %v2662_v34 = vpack.c.bf16 %v1513_v51, %v1511_v30  ;;  %v1530_v47 = vadd.f32 %v3392_v15, %v1522_v8  ;;  %v1133_v38 = vld [vmem:[%s3591_s15 + $0x20] sm:$0xff]  ;;  %v1136_v30 = vld [vmem:[%s3591_s15 + $0x38] sm:$0xff] }
 0x762   :  { %2659 = vmatprep.subr.bf16.mxu1 %v2658_v10  ;;  %v1538_v56 = vmul.f32 %v1534_v57, %v1514_v32  ;;  %v2674_v19 = vpack.c.bf16 %v1134_v11, %v1133_v38  ;;  %v2678_v51 = vpack.c.bf16 %v1136_v30, %v1135_v29  ;;  %v1137_v32 = vld [vmem:[%s3591_s15 + $0x40] sm:$0xff] }
 0x763   :  { %v2682_v27 = vpack.c.bf16 %v1138_v33, %v1137_v32 }
 0x764   :  { %v1546_v48 = vadd.f32 %v1542_v31, %v1538_v56 }
 0x766   :  { %v2654_v22 = vpack.c.bf16 %v1546_v48, %v1545_v14  ;;  %v1141_v14 = vld [vmem:[%s3591_s15 + $0x60] sm:$0xff]  ;;  %v1142_v48 = vld [vmem:[%s3591_s15 + $0x68] sm:$0xff] }
 0x768   :  { %2491 = vmatmul.mubr.f32.vlgmr.msra.gmra.mrb[12].mxu1 %v1528_v53  ;;  %2655 = vmatprep.subr.bf16.mxu0 %v2654_v22  ;;  %v2690_v53 = vpack.c.bf16 %v1142_v48, %v1141_v14 }
 0x769   :  { %2661 = vmatpush3.bf16.msra.mxu1 %v2658_v10  ;;  %2657 = vmatpush3.bf16.xpose.msra.mxu0 %v2654_v22  ;;  %v1144_v22 = vld [vmem:[%s3591_s15 + $0x78] sm:$0xff] }
 0x76a   :  { %2663 = vmatprep.subr.bf16.mxu0 %v2662_v34  ;;  %2667 = vmatprep.subr.bf16.mxu1 %v2666_v35  ;;  %v2694_v8 = vpack.c.bf16 %v1144_v22, %v1143_v37 }
 0x770   :  { %2498 = vmatmul.mubr.f32.vlgmr.msra.gmra.mrb[32].mxu0 %v1530_v47  ;;  %v1151_v47 = vrot.slane %v3315_v6, %v3105_v3 }
 0x771   :  { %2665 = vmatpush3.bf16.msra.mxu0 %v2662_v34  ;;  %v1139_v34 = vld [vmem:[%s3591_s15 + $0x50] sm:$0xff] }
 0x772   :  { %v2686_v56 = vpack.c.bf16 %v1140_v44, %v1139_v34 }
 0x83b   :  { %v2492_v49 = vpop.f32.mrb[12].mxu1 }
 0x83c   :  { %v1613_v7 = vpop.f32.mrb[13].mxu1  ;;  %v1700_v18 = vsel %vm78_vm0, %v2492_v49, -inf }
 0x83d   :  { %1701 = vmax.xlane.f32.xlu1 %v1700_v18  ;;  %v1697_v55 = vsel %vm78_vm0, %v1613_v7, -inf }
 0x83e   :  { %1698 = vmax.xlane.f32.xlu0 %v1697_v55 }
 0x843   :  { %v2499_v24 = vpop.f32.mrb[32].mxu0 }
 0x844   :  { %v1688_v57 = vpop.f32.mrb[33].mxu0  ;;  %v1706_v39 = vsel %vm78_vm0, %v2499_v24, -inf }
 0x845   :  { %1707 = vmax.xlane.f32.xlu1 %v1706_v39  ;;  %v1703_v58 = vsel %vm78_vm0, %v1688_v57, -inf }
 0x846   :  { %1704 = vmax.xlane.f32.xlu0 %v1703_v58  ;;  %v1255_v58 = vadd.f32 %v3342_v26, %v1151_v47 }
 0x8ca   :  { %v1702_v50 = vpop.xlane.xlu1 %1701 }
 0x8cb   :  { %v1710_v15 = vsub.f32 %v2492_v49, %v1702_v50  ;;  %v1699_v62 = vpop.xlane.xlu0 %1698  ;;  %v1243_v49 = vadd.f32 %v3325_v13, %v1151_v47 }
 0x8cc   :  { %v1709_v40 = vsub.f32 %v1613_v7, %v1699_v62  ;;  %v1237_v7 = vadd.f32 %v3319_v9, %v1151_v47 }
 0x8cd   :  { %v1715_v59 = vmul.f32 1.442695, %v1710_v15  ;;  %v1261_v18 = vmul.f32 %v1243_v49, %v1243_v49 }
 0x8ce   :  { %v1713_v31 = vmul.f32 1.442695, %v1709_v40  ;;  %v1259_v55 = vmul.f32 %v1237_v7, %v1237_v7  ;;  %v1265_v40 = vmul.f32 %v1255_v58, %v1255_v58 }
 0x8cf   :  { %2779 = vpow2.f32 %v1715_v59 }
 0x8d0   :  { %2781 = vpow2.f32 %v1713_v31  ;;  %v1267_v39 = vmul.f32 %v1259_v55, %v1237_v7  ;;  %v1273_v6 = vmul.f32 %v1265_v40, %v1255_v58  ;;  %v2296_v55 = vld [vmem:[%s3592_s16] ss:$0 sm:$0xff] }
 0x8d2   :  { %v1708_v2 = vpop.xlane.xlu1 %1707  ;;  %v1275_v62 = vmul.f32 0.044715, %v1267_v39  ;;  %v1281_v9 = vmul.f32 0.044715, %v1273_v6 }
 0x8d3   :  { %v1712_v63 = vsub.f32 %v2499_v24, %v1708_v2  ;;  %v1705_v46 = vpop.xlane.xlu0 %1704  ;;  %v1269_v24 = vmul.f32 %v1261_v18, %v1243_v49 }
 0x8d4   :  { %v1711_v60 = vsub.f32 %v1688_v57, %v1705_v46  ;;  %v1249_v57 = vadd.f32 %v3330_v16, %v1151_v47  ;;  %v1283_v2 = vadd.f32 %v1275_v62, %v1237_v7 }
 0x8d5   :  { %v1719_v4 = vmul.f32 1.442695, %v1712_v63  ;;  %v1277_v50 = vmul.f32 0.044715, %v1269_v24 }
 0x8d6   :  { %v1717_v5 = vmul.f32 1.442695, %v1711_v60  ;;  %v1263_v15 = vmul.f32 %v1249_v57, %v1249_v57  ;;  %v1291_v46 = vmul.f32 0.7978846, %v1283_v2 }
 0x8d7   :  { %2783 = vpow2.f32 %v1719_v4  ;;  %v1285_v59 = vadd.f32 %v1277_v50, %v1243_v49  ;;  %v1289_v4 = vadd.f32 %v1281_v9, %v1255_v58 }
 0x8d8   :  { %2785 = vpow2.f32 %v1717_v5  ;;  %v1271_v31 = vmul.f32 %v1263_v15, %v1249_v57 }
 0x8d9   :  { %v2780_v10 = vpop.eup %2779  ;;  %v1293_v63 = vmul.f32 0.7978846, %v1285_v59  ;;  %v1297_v5 = vmul.f32 0.7978846, %v1289_v4 }
 0x8da   :  { %v2782_v43 = vpop.eup %2781  ;;  %v1724_v25 = vsel %vm78_vm0, %v2780_v10, 0.0  ;;  %v1279_v13 = vmul.f32 0.044715, %v1271_v31 }
 0x8db   :  { %2504 = vmatprep.mubr.msk.f32.mxu1 %vm78_vm0, %v2782_v43  ;;  %1725 = vadd.xlane.f32.xlu1 %v1724_v25  ;;  %v1721_v28 = vsel %vm78_vm0, %v2782_v43, 0.0  ;;  %2787 = vtanh.f32 %v1293_v63 }
 0x8dc   :  { %2505 = vmatmul.mubr.msk.f32.vlgmr.msra.gmra.mrb[14].mxu1 %vm78_vm0, %v2780_v10  ;;  %1722 = vadd.xlane.f32.xlu0 %v1721_v28  ;;  %v1287_v60 = vadd.f32 %v1279_v13, %v1249_v57  ;;  %2789 = vtanh.f32 %v1291_v46 }
 0x8dd   :  { %2669 = vmatpush3.bf16.msra.mxu1 %v2666_v35 }
 0x8de   :  { %2671 = vmatprep.subr.bf16.mxu1 %v2670_v54  ;;  %v1295_v16 = vmul.f32 0.7978846, %v1287_v60 }
 0x8e0   :  { %2791 = vtanh.f32 %v1295_v16 }
 0x8e1   :  { %v2784_v12 = vpop.eup %2783  ;;  %2673 = vmatpush3.bf16.msra.mxu1 %v2670_v54  ;;  %2793 = vtanh.f32 %v1297_v5 }
 0x8e2   :  { %v2786_v17 = vpop.eup %2785  ;;  %v1730_v20 = vsel %vm78_vm0, %v2784_v12, 0.0  ;;  %2675 = vmatprep.subr.bf16.mxu1 %v2674_v19 }
 0x8e3   :  { %1731 = vadd.xlane.f32.xlu1 %v1730_v20  ;;  %2511 = vmatprep.mubr.msk.f32.mxu0 %vm78_vm0, %v2786_v17  ;;  %v1727_v21 = vsel %vm78_vm0, %v2786_v17, 0.0 }
 0x8e4   :  { %2512 = vmatmul.mubr.msk.f32.vlgmr.msra.gmra.mrb[34].mxu0 %vm78_vm0, %v2784_v12  ;;  %1728 = vadd.xlane.f32.xlu0 %v1727_v21 }
 0x8e5   :  { %2677 = vmatpush3.bf16.msra.mxu1 %v2674_v19  ;;  %v2788_v43 = vpop.eup %2787 }
 0x8e6   :  { %2679 = vmatprep.subr.bf16.mxu1 %v2678_v51  ;;  %v2790_v25 = vpop.eup %2789  ;;  %v1309_v28 = vadd.f32 1.0, %v2788_v43 }
 0x8e7   :  { %v1307_v12 = vadd.f32 1.0, %v2790_v25 }
 0x8e8   :  { %v1317_v21 = vmul.f32 0.5, %v1309_v28 }
 0x8e9   :  { %2681 = vmatpush3.bf16.msra.mxu1 %v2678_v51  ;;  %v1315_v23 = vmul.f32 0.5, %v1307_v12 }
 0x8ea   :  { %2683 = vmatprep.subr.bf16.mxu1 %v2682_v27  ;;  %v2792_v41 = vpop.eup %2791  ;;  %v1325_v38 = vmul.f32 %v1317_v21, %v1243_v49 }
 0x8eb   :  { %v2794_v1 = vpop.eup %2793  ;;  %v1323_v29 = vmul.f32 %v1315_v23, %v1237_v7  ;;  %v1311_v33 = vadd.f32 1.0, %v2792_v41 }
 0x8ec   :  { %v1313_v51 = vadd.f32 1.0, %v2794_v1 }
 0x8ed   :  { %2685 = vmatpush3.bf16.msra.mxu1 %v2682_v27  ;;  %v1319_v44 = vmul.f32 0.5, %v1311_v33 }
 0x8ee   :  { %2687 = vmatprep.subr.bf16.mxu1 %v2686_v56  ;;  %v1321_v34 = vmul.f32 0.5, %v1313_v51 }
 0x8f1   :  { %2689 = vmatpush3.bf16.msra.mxu1 %v2686_v56 }
 0x8f2   :  { %2691 = vmatprep.subr.bf16.mxu1 %v2690_v53 }
 0x8f5   :  { %2693 = vmatpush3.bf16.msra.mxu1 %v2690_v53  ;;  %v1329_v53 = vmul.f32 %v1321_v34, %v1255_v58 }
 0x8f6   :  { %2695 = vmatprep.subr.bf16.mxu1 %v2694_v8 }
 0x8f9   :  { %2697 = vmatpush3.bf16.msra.mxu1 %v2694_v8  ;;  %v1327_v8 = vmul.f32 %v1319_v44, %v1249_v57 }
 0x968   :  { %v1726_v10 = vpop.xlane.xlu1 %1725 }
 0x969   :  { %v1723_v26 = vpop.xlane.xlu0 %1722  ;;  %2795 = vrcp.f32 %v1726_v10 }
 0x96a   :  { %2797 = vrcp.f32 %v1723_v26 }
 0x970   :  { %v1732_v17 = vpop.xlane.xlu1 %1731 }
 0x971   :  { %v1729_v20 = vpop.xlane.xlu0 %1728  ;;  %2799 = vrcp.f32 %v1732_v17 }
 0x972   :  { %2801 = vrcp.f32 %v1729_v20 }
 0x973   :  { %v2796_v35 = vpop.eup %2795 }
 0x974   :  { %v2798_v54 = vpop.eup %2797 }
 0x97b   :  { %v2800_v56 = vpop.eup %2799 }
 0x97c   :  { %v2802_v48 = vpop.eup %2801 }
 0x9af   :  { %v2506_v36 = vpop.f32.mrb[14].mxu1 }
 0x9b0   :  { %v1900_v11 = vmul.f32 %v2796_v35, %v2506_v36  ;;  %v1809_v19 = vpop.f32.mrb[15].mxu1 }
 0x9b1   :  { %v1899_v30 = vmul.f32 %v2798_v54, %v1809_v19 }
 0x9b2   :  { %v1904_v32 = vmul.f32 %v1900_v11, %v1325_v38 }
 0x9b3   :  { %v1903_v27 = vmul.f32 %v1899_v30, %v1323_v29 }
 0x9b5   :  { %2546 = vmatprep.mubr.f32.mxu1 %v1903_v27 }
 0x9b6   :  { %2547 = vmatmul.mubr.f32.vlgmr.msra.gmra.mrb[16].mxu1 %v1904_v32  ;;  %v1146_v32 = vld [vmem:[%s3593_s17] sm:$0x3] }
 0x9b7   :  { %v2513_v14 = vpop.f32.mrb[34].mxu0  ;;  %v2061_v34 = vrot.slane %v1146_v32, %v3105_v3 }
 0x9b8   :  { %v1902_v37 = vmul.f32 %v2800_v56, %v2513_v14  ;;  %v1890_v22 = vpop.f32.mrb[35].mxu0 }
 0x9b9   :  { %v1901_v47 = vmul.f32 %v2802_v48, %v1890_v22  ;;  %v2069_v48 = vrot.slane %v1146_v32, %v3030_v42 }
 0x9ba   :  { %v1906_v49 = vmul.f32 %v1902_v37, %v1329_v53 }
 0x9bb   :  { %v1905_v18 = vmul.f32 %v1901_v47, %v1327_v8 }
 0x9bd   :  { %2549 = vmatprep.mubr.f32.mxu1 %v1905_v18 }
 0x9be   :  { %2550 = vmatmul.mubr.f32.gmra.mrb[18].mxu1 %v1906_v49 }
 0xa89   :  { %v2548_v7 = vpop.f32.mrb[16].mxu1 }
 0xa8a   :  { %v1993_v24 = vadd.f32 %v2548_v7, %v3276_v45  ;;  %v1973_v39 = vpop.f32.mrb[17].mxu1 }
 0xa8b   :  { %v1992_v50 = vadd.f32 %v1973_v39, %v3265_v52 }
 0xa8c   :  { %v2003_v15 = vadd.f32 %v2296_v55, %v1993_v24 }
 0xa8d   :  { %v2002_v58 = vadd.f32 %v2296_v55, %v1992_v50 }
 0xa8e   :  { %v2009_v62 = vsel %vm182_vm1, %v2003_v15, 0.0 }
 0xa8f   :  { %2010 = vadd.xlane.f32.xlu1 %v2009_v62  ;;  %v2006_v57 = vsel %vm182_vm1, %v2002_v58, 0.0 }
 0xa90   :  { %2007 = vadd.xlane.f32.xlu0 %v2006_v57 }
 0xa91   :  { %v2551_v40 = vpop.f32.mrb[18].mxu1 }
 0xa92   :  { %v1995_v59 = vadd.f32 %v2551_v40, %v3288_v0  ;;  %v1983_v31 = vpop.f32.mrb[19].mxu1 }
 0xa93   :  { %v1994_v2 = vadd.f32 %v1983_v31, %v3283_v61 }
 0xa94   :  { %v2005_v6 = vadd.f32 %v2296_v55, %v1995_v59 }
 0xa95   :  { %v2004_v63 = vadd.f32 %v2296_v55, %v1994_v2 }
 0xa96   :  { %v2015_v45 = vsel %vm182_vm1, %v2005_v6, 0.0 }
 0xa97   :  { %2016 = vadd.xlane.f32.xlu1 %v2015_v45  ;;  %v2012_v52 = vsel %vm182_vm1, %v2004_v63, 0.0 }
 0xa98   :  { %2013 = vadd.xlane.f32.xlu0 %v2012_v52 }
 0xb1c   :  { %v2011_v13 = vpop.xlane.xlu1 %2010 }
 0xb1d   :  { %v2019_v46 = vmul.f32 0.03125, %v2011_v13  ;;  %v2008_v9 = vpop.xlane.xlu0 %2007 }
 0xb1e   :  { %v2018_v60 = vmul.f32 0.03125, %v2008_v9 }
 0xb1f   :  { %v2023_v4 = vsub.f32 %v2003_v15, %v2019_v46 }
 0xb20   :  { %v2022_v16 = vsub.f32 %v2002_v58, %v2018_v60 }
 0xb21   :  { %v2027_v5 = vmul.f32 %v2023_v4, %v2023_v4 }
 0xb22   :  { %v2026_v10 = vmul.f32 %v2022_v16, %v2022_v16 }
 0xb23   :  { %v2033_v0 = vsel %vm182_vm1, %v2027_v5, 0.0 }
 0xb24   :  { %2034 = vadd.xlane.f32.xlu1 %v2033_v0  ;;  %v2030_v61 = vsel %vm182_vm1, %v2026_v10, 0.0  ;;  %v2017_v26 = vpop.xlane.xlu1 %2016 }
 0xb25   :  { %2031 = vadd.xlane.f32.xlu0 %v2030_v61  ;;  %v2021_v43 = vmul.f32 0.03125, %v2017_v26  ;;  %v2014_v25 = vpop.xlane.xlu0 %2013 }
 0xb26   :  { %v2020_v28 = vmul.f32 0.03125, %v2014_v25 }
 0xb27   :  { %v2025_v12 = vsub.f32 %v2005_v6, %v2021_v43 }
 0xb28   :  { %v2024_v17 = vsub.f32 %v2004_v63, %v2020_v28  ;;  %v2150_v28 = vld [vmem:[%s3594_s19] sm:$0xff] }
 0xb29   :  { %v2029_v20 = vmul.f32 %v2025_v12, %v2025_v12 }
 0xb2a   :  { %v2028_v21 = vmul.f32 %v2024_v17, %v2024_v17 }
 0xb2b   :  { %v2039_v41 = vsel %vm182_vm1, %v2029_v20, 0.0 }
 0xb2c   :  { %2040 = vadd.xlane.f32.xlu1 %v2039_v41  ;;  %v2036_v23 = vsel %vm182_vm1, %v2028_v21, 0.0  ;;  %v2153_v21 = vld [vmem:[%s3594_s19 + $0x18] sm:$0xff] }
 0xb2d   :  { %2037 = vadd.xlane.f32.xlu0 %v2036_v23 }
 0xbb1   :  { %v2035_v1 = vpop.xlane.xlu1 %2034 }
 0xbb2   :  { %v2043_v35 = vmul.f32 0.03125, %v2035_v1  ;;  %v2032_v36 = vpop.xlane.xlu0 %2031 }
 0xbb3   :  { %v2042_v54 = vmul.f32 0.03125, %v2032_v36 }
 0xbb4   :  { %v2047_v38 = vadd.f32 1e-05, %v2043_v35 }
 0xbb5   :  { %v2046_v11 = vadd.f32 1e-05, %v2042_v54 }
 0xbb6   :  { %2803 = vrsqrt.f32 %v2047_v38 }
 0xbb7   :  { %2805 = vrsqrt.f32 %v2046_v11 }
 0xbb9   :  { %v2041_v19 = vpop.xlane.xlu1 %2040 }
 0xbba   :  { %v2045_v29 = vmul.f32 0.03125, %v2041_v19  ;;  %v2038_v30 = vpop.xlane.xlu0 %2037 }
 0xbbb   :  { %v2044_v51 = vmul.f32 0.03125, %v2038_v30 }
 0xbbc   :  { %v2049_v33 = vadd.f32 1e-05, %v2045_v29 }
 0xbbd   :  { %v2048_v27 = vadd.f32 1e-05, %v2044_v51  ;;  %v2081_v51 = vld [vmem:[%s3595_s18] sm:$0x3] }
 0xbbe   :  { %2807 = vrsqrt.f32 %v2049_v33 }
 0xbbf   :  { %2809 = vrsqrt.f32 %v2048_v27  ;;  %v2137_v27 = vrot.slane %v2081_v51, %v3105_v3 }
 0xbc0   :  { %v2804_v44 = vpop.eup %2803 }
 0xbc1   :  { %v2806_v56 = vpop.eup %2805  ;;  %v2055_v14 = vmul.f32 %v2804_v44, %v2023_v4 }
 0xbc2   :  { %v2054_v53 = vmul.f32 %v2806_v56, %v2022_v16 }
 0xbc3   :  { %v2063_v37 = vmul.f32 %v2061_v34, %v2055_v14 }
 0xbc4   :  { %v2062_v22 = vmul.f32 %v2061_v34, %v2054_v53 }
 0xbc5   :  { %v2071_v8 = vadd.f32 %v2069_v48, %v2063_v37 }
 0xbc6   :  { %v2070_v47 = vadd.f32 %v2069_v48, %v2062_v22 }
 0xbc7   :  { %v2085_v49 = vsel %vm182_vm1, %v2071_v8, 0.0  ;;  %2075 = vst.msk [vmem:[#allocation2 + $0x8] sm:$0xff] %vm182_vm1, %v2071_v8 }
 0xbc8   :  { %2086 = vadd.xlane.f32.xlu1 %v2085_v49  ;;  %v2082_v18 = vsel %vm182_vm1, %v2070_v47, 0.0  ;;  %2074 = vst.msk [vmem:[#allocation2] sm:$0xff] %vm182_vm1, %v2070_v47  ;;  %v2808_v7 = vpop.eup %2807 }
 0xbc9   :  { %2083 = vadd.xlane.f32.xlu0 %v2082_v18  ;;  %v2810_v55 = vpop.eup %2809  ;;  %v2057_v24 = vmul.f32 %v2808_v7, %v2025_v12  ;;  %v2151_v12 = vld [vmem:[%s3594_s19 + $0x8] sm:$0xff] }
 0xbca   :  { %v2056_v39 = vmul.f32 %v2810_v55, %v2024_v17  ;;  %v2152_v17 = vld [vmem:[%s3594_s19 + $0x10] sm:$0xff]  ;;  %v2698_v20 = vpack.c.bf16 %v2151_v12, %v2150_v28 }
 0xbcb   :  { %v2065_v50 = vmul.f32 %v2061_v34, %v2057_v24  ;;  %v2702_v41 = vpack.c.bf16 %v2153_v21, %v2152_v17 }
 0xbcc   :  { %v2064_v15 = vmul.f32 %v2061_v34, %v2056_v39  ;;  %2699 = vmatprep.subr.bf16.mxu0 %v2698_v20 }
 0xbcd   :  { %v2073_v58 = vadd.f32 %v2069_v48, %v2065_v50  ;;  %2701 = vmatpush3.bf16.msra.mxu0 %v2698_v20 }
 0xbce   :  { %v2072_v62 = vadd.f32 %v2069_v48, %v2064_v15  ;;  %2703 = vmatprep.subr.bf16.mxu0 %v2702_v41  ;;  %v2145_v48 = vrot.slane %v2081_v51, %v3030_v42  ;;  %v2297_v42 = vld [vmem:[%s3596_s20] ss:$0 sm:$0xff] }
 0xbcf   :  { %v2091_v57 = vsel %vm182_vm1, %v2073_v58, 0.0  ;;  %2077 = vst.msk [vmem:[#allocation2 + $0x18] sm:$0xff] %vm182_vm1, %v2073_v58 }
 0xbd0   :  { %2092 = vadd.xlane.f32.xlu1 %v2091_v57  ;;  %v2088_v40 = vsel %vm182_vm1, %v2072_v62, 0.0  ;;  %2076 = vst.msk [vmem:[#allocation2 + $0x10] sm:$0xff] %vm182_vm1, %v2072_v62 }
 0xbd1   :  { %2089 = vadd.xlane.f32.xlu0 %v2088_v40  ;;  %2705 = vmatpush3.bf16.msra.mxu0 %v2702_v41 }
 0xc55   :  { %v2087_v59 = vpop.xlane.xlu1 %2086 }
 0xc56   :  { %v2095_v31 = vmul.f32 0.03125, %v2087_v59  ;;  %v2084_v2 = vpop.xlane.xlu0 %2083 }
 0xc57   :  { %v2094_v6 = vmul.f32 0.03125, %v2084_v2 }
 0xc58   :  { %v2099_v63 = vsub.f32 %v2071_v8, %v2095_v31 }
 0xc59   :  { %v2098_v45 = vsub.f32 %v2070_v47, %v2094_v6 }
 0xc5a   :  { %v2103_v52 = vmul.f32 %v2099_v63, %v2099_v63 }
 0xc5b   :  { %v2102_v13 = vmul.f32 %v2098_v45, %v2098_v45 }
 0xc5c   :  { %v2109_v46 = vsel %vm182_vm1, %v2103_v52, 0.0 }
 0xc5d   :  { %2110 = vadd.xlane.f32.xlu1 %v2109_v46  ;;  %v2106_v9 = vsel %vm182_vm1, %v2102_v13, 0.0  ;;  %v2093_v60 = vpop.xlane.xlu1 %2092 }
 0xc5e   :  { %2107 = vadd.xlane.f32.xlu0 %v2106_v9  ;;  %v2097_v4 = vmul.f32 0.03125, %v2093_v60  ;;  %v2090_v16 = vpop.xlane.xlu0 %2089 }
 0xc5f   :  { %v2096_v5 = vmul.f32 0.03125, %v2090_v16 }
 0xc60   :  { %v2101_v10 = vsub.f32 %v2073_v58, %v2097_v4 }
 0xc61   :  { %v2100_v0 = vsub.f32 %v2072_v62, %v2096_v5 }
 0xc62   :  { %v2105_v61 = vmul.f32 %v2101_v10, %v2101_v10 }
 0xc63   :  { %v2104_v26 = vmul.f32 %v2100_v0, %v2100_v0 }
 0xc64   :  { %v2115_v43 = vsel %vm182_vm1, %v2105_v61, 0.0 }
 0xc65   :  { %2116 = vadd.xlane.f32.xlu1 %v2115_v43  ;;  %v2112_v25 = vsel %vm182_vm1, %v2104_v26, 0.0 }
 0xc66   :  { %2113 = vadd.xlane.f32.xlu0 %v2112_v25 }
 0xcea   :  { %v2111_v23 = vpop.xlane.xlu1 %2110 }
 0xceb   :  { %v2119_v1 = vmul.f32 0.03125, %v2111_v23  ;;  %v2108_v35 = vpop.xlane.xlu0 %2107 }
 0xcec   :  { %v2118_v36 = vmul.f32 0.03125, %v2108_v35 }
 0xced   :  { %v2123_v54 = vadd.f32 1e-05, %v2119_v1 }
 0xcee   :  { %v2122_v38 = vadd.f32 1e-05, %v2118_v36 }
 0xcef   :  { %2811 = vrsqrt.f32 %v2123_v54 }
 0xcf0   :  { %2813 = vrsqrt.f32 %v2122_v38 }
 0xcf2   :  { %v2117_v11 = vpop.xlane.xlu1 %2116 }
 0xcf3   :  { %v2121_v19 = vmul.f32 0.03125, %v2117_v11  ;;  %v2114_v29 = vpop.xlane.xlu0 %2113 }
 0xcf4   :  { %v2120_v30 = vmul.f32 0.03125, %v2114_v29 }
 0xcf5   :  { %v2125_v32 = vadd.f32 1e-05, %v2121_v19 }
 0xcf6   :  { %v2124_v33 = vadd.f32 1e-05, %v2120_v30 }
 0xcf7   :  { %2815 = vrsqrt.f32 %v2125_v32 }
 0xcf8   :  { %2817 = vrsqrt.f32 %v2124_v33 }
 0xcf9   :  { %v2812_v34 = vpop.eup %2811 }
 0xcfa   :  { %v2814_v44 = vpop.eup %2813  ;;  %v2131_v56 = vmul.f32 %v2812_v34, %v2099_v63 }
 0xcfb   :  { %v2130_v14 = vmul.f32 %v2814_v44, %v2098_v45 }
 0xcfc   :  { %v2139_v53 = vmul.f32 %v2137_v27, %v2131_v56 }
 0xcfd   :  { %v2138_v37 = vmul.f32 %v2137_v27, %v2130_v14 }
 0xcfe   :  { %v2147_v8 = vadd.f32 %v2145_v48, %v2139_v53 }
 0xcff   :  { %v2146_v22 = vadd.f32 %v2145_v48, %v2138_v37 }
 0xd01   :  { %2560 = vmatprep.mubr.msk.f32.mxu0 %vm182_vm1, %v2146_v22  ;;  %v2816_v47 = vpop.eup %2815 }
 0xd02   :  { %2561 = vmatmul.mubr.msk.f32.vlgmr.msra.gmra.mrb[36].mxu0 %vm182_vm1, %v2147_v8  ;;  %v2818_v49 = vpop.eup %2817  ;;  %v2133_v18 = vmul.f32 %v2816_v47, %v2101_v10 }
 0xd03   :  { %v2132_v7 = vmul.f32 %v2818_v49, %v2100_v0 }
 0xd04   :  { %v2141_v3 = vmul.f32 %v2137_v27, %v2133_v18 }
 0xd05   :  { %v2140_v55 = vmul.f32 %v2137_v27, %v2132_v7 }
 0xd06   :  { %v2149_v39 = vadd.f32 %v2145_v48, %v2141_v3 }
 0xd07   :  { %v2148_v24 = vadd.f32 %v2145_v48, %v2140_v55 }
 0xd09   :  { %2563 = vmatprep.mubr.msk.f32.mxu0 %vm182_vm1, %v2148_v24 }
 0xd0a   :  { %2564 = vmatmul.mubr.msk.f32.gmra.mrb[38].mxu0 %vm182_vm1, %v2149_v39 }
 0xdd5   :  { %v2562_v50 = vpop.f32.mrb[36].mxu0 }
 0xdd6   :  { %v2245_v15 = vadd.f32 %v2562_v50, %v2297_v42  ;;  %v2239_v58 = vpop.f32.mrb[37].mxu0 }
 0xdd7   :  { %v2240_v62 = vadd.f32 %v2297_v42, %v2239_v58 }
 0xdd8   :  { %2260 = vst.msk [vmem:[%s3597_s21 + $0x8] sm:$0xff] %vm2258_vm4, %v2245_v15 }
 0xdd9   :  { %2259 = vst.msk [vmem:[%s3597_s21] sm:$0xff] %vm2258_vm4, %v2240_v62 }
 0xddd   :  { %v2565_v57 = vpop.f32.mrb[38].mxu0 }
 0xdde   :  { %v2255_v40 = vadd.f32 %v2565_v57, %v2297_v42  ;;  %v2249_v59 = vpop.f32.mrb[39].mxu0 }
 0xddf   :  { %v2250_v31 = vadd.f32 %v2297_v42, %v2249_v59 }
 0xde0   :  { %2262 = vst.msk [vmem:[%s3597_s21 + $0x18] sm:$0xff] %vm2258_vm4, %v2255_v40 }
 0xde1   :  { %2261 = vst.msk [vmem:[%s3597_s21 + $0x10] sm:$0xff] %vm2258_vm4, %v2250_v31 }

</bundles_post_ra>
